<compile_context>
chip_gen: v7x
topology: tpu7x:2x2x1
jax: 0.10.0
libtpu: 0.0.40
codegen_flags: <defaults>
</compile_context>

<pallas_src>
import functools

import jax
import jax.numpy as jnp
from jax import lax
from jax.experimental import pallas as pl
from jax.experimental.pallas import tpu as pltpu

EPS = 1e-5


# ----------------------------- in-kernel helpers ----------------------------- #

def _pad1_hw(x):
    """(C, H, W) -> (C, H+2, W+2) zero spatial pad, via concatenate (Mosaic-safe)."""
    C, H, W = x.shape
    zr = jnp.zeros((C, 1, W), x.dtype)
    x = jnp.concatenate([zr, x, zr], axis=1)
    zc = jnp.zeros((C, H + 2, 1), x.dtype)
    return jnp.concatenate([zc, x, zc], axis=2)


def _im2col3x3(xp, H, W):
    """(C, H+2, W+2) -> (9*C, H*W). Tap order (dy, dx) row-major, channel fastest."""
    C = xp.shape[0]
    cols = [xp[:, dy:dy + H, dx:dx + W].reshape(C, H * W)
            for dy in range(3) for dx in range(3)]
    return jnp.concatenate(cols, axis=0)


def _sumstats(y):
    """Per-channel single-pass BN stats: (C, 2) = [sum, sum of squares]."""
    return jnp.concatenate(
        [jnp.sum(y, axis=1, keepdims=True),
         jnp.sum(y * y, axis=1, keepdims=True)], axis=1)


# --------------------------------- kernels ----------------------------------- #

def _conv1_kernel(x_ref, w_ref, y_ref, st_ref):
    # x_ref: (1, Cin, H, W)   w_ref: (Cout, 9*Cin) bf16
    x = x_ref[0]                                    # (Cin, H, W) f32
    _, H, W = x.shape
    xcol = _im2col3x3(_pad1_hw(x), H, W)            # (9*Cin, H*W) f32
    # one fat MXU matmul, bf16 operands, f32 accumulation (no bias: cancelled by BN)
    y = jnp.dot(w_ref[...], xcol.astype(jnp.bfloat16),
                preferred_element_type=jnp.float32)  # (Cout, H*W)
    y_ref[0] = y
    st_ref[0] = _sumstats(y)                        # per-batch partial BN1 stats


def _bn1_conv2_kernel(y1_ref, sc_ref, sh_ref, w_ref, x1_ref, y2_ref, st_ref, *, H, W):
    # y1_ref: (1, Cout, H*W)  sc/sh: (Cout, 1)  w_ref: (Cout, 9*Cout) bf16
    y1 = y1_ref[0]                                   # (Cout, H*W) f32
    C = y1.shape[0]
    x1 = jnp.maximum(y1 * sc_ref[...] + sh_ref[...], 0.0)   # fused BN1 affine + ReLU
    x1_ref[0] = x1                                   # early writeback of x1 half
    xcol = _im2col3x3(_pad1_hw(x1.reshape(C, H, W)), H, W)   # (9*Cout, H*W)
    y2 = jnp.dot(w_ref[...], xcol.astype(jnp.bfloat16),
                 preferred_element_type=jnp.float32)
    y2_ref[0] = y2
    st_ref[0] = _sumstats(y2)                        # per-batch partial BN2 stats


def _bn2_concat_kernel(x1_ref, y2_ref, sc_ref, sh_ref, out_ref):
    # out_ref: (1, 2*Cout, H*W) -- lane-dense concatenated output
    C = x1_ref.shape[1]
    out_ref[0, :C, :] = x1_ref[0]
    out_ref[0, C:, :] = jnp.maximum(y2_ref[0] * sc_ref[...] + sh_ref[...], 0.0)


# --------------------------------- wrapper ----------------------------------- #

def _bn_scale_shift(stats_partial, gamma, beta, count):
    """Finalize global BN stats (tiny): scale/shift of shape (C, 1)."""
    s = jnp.sum(stats_partial, axis=0)               # (C, 2)
    mean = s[:, 0] / count
    var = s[:, 1] / count - mean * mean              # biased variance (BN training)
    inv = gamma * lax.rsqrt(var + EPS)
    scale = inv.reshape(-1, 1).astype(jnp.float32)
    shift = (beta - mean * inv).reshape(-1, 1).astype(jnp.float32)
    return scale, shift


def fcc_forward(x_pooled_nchw, params, x_reuse=None):
    """Pallas implementation of FCC.forward (default flags). NCHW in / NCHW out."""
    del x_reuse                                       # feature_reuse=False
    w1, b1, g1, bt1, w2, b2, g2, bt2 = params
    # Conv biases cancel exactly under training-mode BN (mean subtraction).
    del b1, b2

    N, Cin, H, W = x_pooled_nchw.shape
    Cout = w1.shape[0]
    HW = H * W
    x = x_pooled_nchw.astype(jnp.float32)

    # (Cout, Cin, 3, 3) -> (Cout, 3, 3, Cin) -> (Cout, 9*Cin), bf16 for the MXU;
    # ordering matches _im2col3x3's (dy, dx, cin) layout.
    w1k = jnp.transpose(w1, (0, 2, 3, 1)).reshape(Cout, 9 * Cin).astype(jnp.bfloat16)
    w2k = jnp.transpose(w2, (0, 2, 3, 1)).reshape(Cout, 9 * Cout).astype(jnp.bfloat16)

    cp = pltpu.CompilerParams(dimension_semantics=("parallel",),
                              vmem_limit_bytes=32 * 1024 * 1024)
    f32 = jnp.float32

    # ---- stage 1: conv1 + per-batch BN1 partial stats (grid over batch) ----
    y1, st1p = pl.pallas_call(
        _conv1_kernel,
        grid=(N,),
        in_specs=[pl.BlockSpec((1, Cin, H, W), lambda b: (b, 0, 0, 0)),
                  pl.BlockSpec((Cout, 9 * Cin), lambda b: (0, 0))],
        out_specs=[pl.BlockSpec((1, Cout, HW), lambda b: (b, 0, 0)),
                   pl.BlockSpec((1, Cout, 2), lambda b: (b, 0, 0))],
        out_shape=[jax.ShapeDtypeStruct((N, Cout, HW), f32),
                   jax.ShapeDtypeStruct((N, Cout, 2), f32)],
        compiler_params=cp,
    )(x, w1k)

    sc1, sh1 = _bn_scale_shift(st1p, g1, bt1, N * HW)

    # ---- stage 2: BN1+ReLU -> x1 (early writeback), conv2, BN2 partial stats ----
    x1, y2, st2p = pl.pallas_call(
        functools.partial(_bn1_conv2_kernel, H=H, W=W),
        grid=(N,),
        in_specs=[pl.BlockSpec((1, Cout, HW), lambda b: (b, 0, 0)),
                  pl.BlockSpec((Cout, 1), lambda b: (0, 0)),
                  pl.BlockSpec((Cout, 1), lambda b: (0, 0)),
                  pl.BlockSpec((Cout, 9 * Cout), lambda b: (0, 0))],
        out_specs=[pl.BlockSpec((1, Cout, HW), lambda b: (b, 0, 0)),
                   pl.BlockSpec((1, Cout, HW), lambda b: (b, 0, 0)),
                   pl.BlockSpec((1, Cout, 2), lambda b: (b, 0, 0))],
        out_shape=[jax.ShapeDtypeStruct((N, Cout, HW), f32),
                   jax.ShapeDtypeStruct((N, Cout, HW), f32),
                   jax.ShapeDtypeStruct((N, Cout, 2), f32)],
        compiler_params=cp,
    )(y1, sc1, sh1, w2k)

    sc2, sh2 = _bn_scale_shift(st2p, g2, bt2, N * HW)

    # ---- stage 3: BN2+ReLU + channel concat, lane-dense (N, 2*Cout, H*W) ----
    out = pl.pallas_call(
        _bn2_concat_kernel,
        grid=(N,),
        in_specs=[pl.BlockSpec((1, Cout, HW), lambda b: (b, 0, 0)),
                  pl.BlockSpec((1, Cout, HW), lambda b: (b, 0, 0)),
                  pl.BlockSpec((Cout, 1), lambda b: (0, 0)),
                  pl.BlockSpec((Cout, 1), lambda b: (0, 0))],
        out_specs=pl.BlockSpec((1, 2 * Cout, HW), lambda b: (b, 0, 0)),
        out_shape=jax.ShapeDtypeStruct((N, 2 * Cout, HW), f32),
        compiler_params=cp,
    )(x1, y2, sc2, sh2)

    # (N, 2*Cout, H*W) -> (N, 2*Cout, H, W): row-major reshape, no data movement.
    return out.reshape(N, 2 * Cout, H, W)


# ------------------------------- reference ----------------------------------- #

def fcc_reference(x_nchw, params):
    """Pure-JAX f32 reference (mirrors the PyTorch forward, biases included)."""
    w1, b1, g1, bt1, w2, b2, g2, bt2 = params

    def conv(x, w, b):
        y = lax.conv_general_dilated(
            x, w, window_strides=(1, 1), padding=((1, 1), (1, 1)),
            dimension_numbers=("NCHW", "OIHW", "NCHW"),
            precision=lax.Precision.HIGHEST)
        return y + b[None, :, None, None]

    def bn_relu(y, gamma, beta):
        mean = jnp.mean(y, axis=(0, 2, 3), keepdims=True)
        var = jnp.mean((y - mean) ** 2, axis=(0, 2, 3), keepdims=True)
        yhat = (y - mean) / jnp.sqrt(var + EPS)
        return jnp.maximum(
            yhat * gamma[None, :, None, None] + beta[None, :, None, None], 0.0)

    x1 = bn_relu(conv(x_nchw, w1, b1), g1, bt1)
    x2 = bn_relu(conv(x1, w2, b2), g2, bt2)
    return jnp.concatenate([x1, x2], axis=1)


if __name__ == "__main__":
    key = jax.random.PRNGKey(0)
    N, Cin, Cout, H, W = 2, 8, 8, 16, 16
    ks = jax.random.split(key, 9)

    x_pooled = jax.random.normal(ks[0], (N, Cin, H, W), jnp.float32)

    # Deterministic synthetic parameters (PyTorch shapes).
    w1 = 0.1 * jax.random.normal(ks[1], (Cout, Cin, 3, 3), jnp.float32)
    b1 = 0.1 * jax.random.normal(ks[2], (Cout,), jnp.float32)
    w2 = 0.1 * jax.random.normal(ks[3], (Cout, Cout, 3, 3), jnp.float32)
    b2 = 0.1 * jax.random.normal(ks[4], (Cout,), jnp.float32)
    g1 = 1.0 + 0.1 * jax.random.normal(ks[5], (Cout,), jnp.float32)
    bt1 = 0.1 * jax.random.normal(ks[6], (Cout,), jnp.float32)
    g2 = 1.0 + 0.1 * jax.random.normal(ks[7], (Cout,), jnp.float32)
    bt2 = 0.1 * jax.random.normal(ks[8], (Cout,), jnp.float32)

    params = (w1, b1, g1, bt1, w2, b2, g2, bt2)

    out = jax.block_until_ready(jax.jit(fcc_forward)(x_pooled, params))
    assert out.shape == (N, 2 * Cout, H, W), out.shape

    ref = jax.block_until_ready(fcc_reference(x_pooled, params))
    err = float(jnp.max(jnp.abs(out - ref)))
    # bf16 MXU operands (f32 accumulation) vs full-f32 reference: error is O(1e-2)
    # after two BN-renormalized conv layers.
    assert err < 1e-1, f"max abs error too large: {err}"

    print("KERNEL_OK")
</pallas_src>

<mosaic_0001>
module attributes {stable_mosaic.version = 11 : i64} {
  func.func @_conv1_kernel(%arg0: i32, %arg1: memref<1x8x16x16xf32, #tpu.memory_space<vmem>>, %arg2: memref<8x72xbf16, #tpu.memory_space<vmem>>, %arg3: memref<1x8x256xf32, #tpu.memory_space<vmem>>, %arg4: memref<1x8x2xf32, #tpu.memory_space<vmem>>) attributes {dimension_semantics = [#tpu.dimension_semantics<parallel>], iteration_bounds = array<i64: 2>, scalar_prefetch = 0 : i64, scratch_operands = 0 : i64, tpu.core_type = #tpu.core_type<tc>, window_params = [{transform_indices = @transform_0, window_bounds = array<i64: 1, 8, 16, 16>}, {pipeline_mode = #tpu.pipeline_mode<synchronous>, transform_indices = @transform_1, window_bounds = array<i64: 8, 72>}, {transform_indices = @transform_2, window_bounds = array<i64: 1, 8, 256>}, {transform_indices = @transform_3, window_bounds = array<i64: 1, 8, 2>}]} {
    %c0 = arith.constant 0 : index
    %c0_0 = arith.constant 0 : index
    %c0_1 = arith.constant 0 : index
    %c0_2 = arith.constant 0 : index
    %0 = vector.load %arg1[%c0, %c0_0, %c0_1, %c0_2] : memref<1x8x16x16xf32, #tpu.memory_space<vmem>>, vector<1x8x16x16xf32>
    %1 = vector.shape_cast %0 : vector<1x8x16x16xf32> to vector<8x16x16xf32>
    %cst = arith.constant 0.000000e+00 : f32
    %2 = vector.broadcast %cst : f32 to vector<8x1x16xf32>
    %3 = tpu.concatenate %2, %1, %2 in 1 : vector<8x1x16xf32>, vector<8x16x16xf32>, vector<8x1x16xf32> -> vector<8x18x16xf32>
    %cst_3 = arith.constant 0.000000e+00 : f32
    %4 = vector.broadcast %cst_3 : f32 to vector<8x18x1xf32>
    %5 = tpu.concatenate %4, %3, %4 in 2 : vector<8x18x1xf32>, vector<8x18x16xf32>, vector<8x18x1xf32> -> vector<8x18x18xf32>
    %6 = vector.extract_strided_slice %5 {offsets = [0, 0, 0], sizes = [8, 16, 16], strides = [1, 1, 1]} : vector<8x18x18xf32> to vector<8x16x16xf32>
    %7 = vector.shape_cast %6 : vector<8x16x16xf32> to vector<8x256xf32>
    %8 = vector.extract_strided_slice %5 {offsets = [0, 0, 1], sizes = [8, 16, 16], strides = [1, 1, 1]} : vector<8x18x18xf32> to vector<8x16x16xf32>
    %9 = vector.shape_cast %8 : vector<8x16x16xf32> to vector<8x256xf32>
    %10 = vector.extract_strided_slice %5 {offsets = [0, 0, 2], sizes = [8, 16, 16], strides = [1, 1, 1]} : vector<8x18x18xf32> to vector<8x16x16xf32>
    %11 = vector.shape_cast %10 : vector<8x16x16xf32> to vector<8x256xf32>
    %12 = vector.extract_strided_slice %5 {offsets = [0, 1, 0], sizes = [8, 16, 16], strides = [1, 1, 1]} : vector<8x18x18xf32> to vector<8x16x16xf32>
    %13 = vector.shape_cast %12 : vector<8x16x16xf32> to vector<8x256xf32>
    %14 = vector.extract_strided_slice %5 {offsets = [0, 1, 1], sizes = [8, 16, 16], strides = [1, 1, 1]} : vector<8x18x18xf32> to vector<8x16x16xf32>
    %15 = vector.shape_cast %14 : vector<8x16x16xf32> to vector<8x256xf32>
    %16 = vector.extract_strided_slice %5 {offsets = [0, 1, 2], sizes = [8, 16, 16], strides = [1, 1, 1]} : vector<8x18x18xf32> to vector<8x16x16xf32>
    %17 = vector.shape_cast %16 : vector<8x16x16xf32> to vector<8x256xf32>
    %18 = vector.extract_strided_slice %5 {offsets = [0, 2, 0], sizes = [8, 16, 16], strides = [1, 1, 1]} : vector<8x18x18xf32> to vector<8x16x16xf32>
    %19 = vector.shape_cast %18 : vector<8x16x16xf32> to vector<8x256xf32>
    %20 = vector.extract_strided_slice %5 {offsets = [0, 2, 1], sizes = [8, 16, 16], strides = [1, 1, 1]} : vector<8x18x18xf32> to vector<8x16x16xf32>
    %21 = vector.shape_cast %20 : vector<8x16x16xf32> to vector<8x256xf32>
    %22 = vector.extract_strided_slice %5 {offsets = [0, 2, 2], sizes = [8, 16, 16], strides = [1, 1, 1]} : vector<8x18x18xf32> to vector<8x16x16xf32>
    %23 = vector.shape_cast %22 : vector<8x16x16xf32> to vector<8x256xf32>
    %24 = tpu.concatenate %7, %9, %11, %13, %15, %17, %19, %21, %23 in 0 : vector<8x256xf32>, vector<8x256xf32>, vector<8x256xf32>, vector<8x256xf32>, vector<8x256xf32>, vector<8x256xf32>, vector<8x256xf32>, vector<8x256xf32>, vector<8x256xf32> -> vector<72x256xf32>
    %c0_4 = arith.constant 0 : index
    %c0_5 = arith.constant 0 : index
    %25 = vector.load %arg2[%c0_4, %c0_5] : memref<8x72xbf16, #tpu.memory_space<vmem>>, vector<8x72xbf16>
    %26 = arith.truncf %24 : vector<72x256xf32> to vector<72x256xbf16>
    %cst_6 = arith.constant dense<0.000000e+00> : vector<8x256xf32>
    %27 = tpu.matmul %25, %26, %cst_6 {dimension_numbers = #tpu.dot_dimension_numbers<[1], [0], [0], [1], [0, 0, 1, 1], [], []>} : vector<8x72xbf16>, vector<72x256xbf16>, vector<8x256xf32> -> vector<8x256xf32>
    %c0_7 = arith.constant 0 : index
    %c0_8 = arith.constant 0 : index
    %c0_9 = arith.constant 0 : index
    %28 = vector.load %arg3[%c0_7, %c0_8, %c0_9] : memref<1x8x256xf32, #tpu.memory_space<vmem>>, vector<1x8x256xf32>
    %29 = vector.shape_cast %28 : vector<1x8x256xf32> to vector<8x256xf32>
    %30 = vector.shape_cast %27 : vector<8x256xf32> to vector<1x8x256xf32>
    tpu.vector_store %arg3[%c0_7, %c0_8, %c0_9], %30 {strides = array<i32>} : memref<1x8x256xf32, #tpu.memory_space<vmem>>, vector<1x8x256xf32>,
    %cst_10 = arith.constant dense<0.000000e+00> : vector<8xf32>
    %31 = vector.multi_reduction <add>, %27, %cst_10 [1] : vector<8x256xf32> to vector<8xf32>
    %32 = vector.shape_cast %31 : vector<8xf32> to vector<8x1xf32>
    %33 = arith.mulf %27, %27 : vector<8x256xf32>
    %cst_11 = arith.constant dense<0.000000e+00> : vector<8xf32>
    %34 = vector.multi_reduction <add>, %33, %cst_11 [1] : vector<8x256xf32> to vector<8xf32>
    %35 = vector.shape_cast %34 : vector<8xf32> to vector<8x1xf32>
    %36 = tpu.concatenate %32, %35 in 1 : vector<8x1xf32>, vector<8x1xf32> -> vector<8x2xf32>
    %c0_12 = arith.constant 0 : index
    %c0_13 = arith.constant 0 : index
    %c0_14 = arith.constant 0 : index
    %37 = vector.load %arg4[%c0_12, %c0_13, %c0_14] : memref<1x8x2xf32, #tpu.memory_space<vmem>>, vector<1x8x2xf32>
    %38 = vector.shape_cast %37 : vector<1x8x2xf32> to vector<8x2xf32>
    %39 = vector.shape_cast %36 : vector<8x2xf32> to vector<1x8x2xf32>
    tpu.vector_store %arg4[%c0_12, %c0_13, %c0_14], %39 {strides = array<i32>} : memref<1x8x2xf32, #tpu.memory_space<vmem>>, vector<1x8x2xf32>,
    return
  }
  func.func @transform_0(%arg0: i32) -> (i32, i32, i32, i32) {
    %c0_i32 = arith.constant 0 : i32
    %c0_i32_0 = arith.constant 0 : i32
    %c0_i32_1 = arith.constant 0 : i32
    %c0_i32_2 = arith.constant 0 : i32
    return %arg0, %c0_i32, %c0_i32_0, %c0_i32_1 : i32, i32, i32, i32
  }
  func.func @transform_1(%arg0: i32) -> (i32, i32) {
    %c0_i32 = arith.constant 0 : i32
    %c0_i32_0 = arith.constant 0 : i32
    %c0_i32_1 = arith.constant 0 : i32
    return %c0_i32, %c0_i32_0 : i32, i32
  }
  func.func @transform_2(%arg0: i32) -> (i32, i32, i32) {
    %c0_i32 = arith.constant 0 : i32
    %c0_i32_0 = arith.constant 0 : i32
    %c0_i32_1 = arith.constant 0 : i32
    return %arg0, %c0_i32, %c0_i32_0 : i32, i32, i32
  }
  func.func @transform_3(%arg0: i32) -> (i32, i32, i32) {
    %c0_i32 = arith.constant 0 : i32
    %c0_i32_0 = arith.constant 0 : i32
    %c0_i32_1 = arith.constant 0 : i32
    return %arg0, %c0_i32, %c0_i32_0 : i32, i32, i32
  }
}

module attributes {stable_mosaic.version = 11 : i64} {
  func.func @_bn2_concat_kernel(%arg0: i32, %arg1: memref<1x8x256xf32, #tpu.memory_space<vmem>>, %arg2: memref<1x8x256xf32, #tpu.memory_space<vmem>>, %arg3: memref<8x1xf32, #tpu.memory_space<vmem>>, %arg4: memref<8x1xf32, #tpu.memory_space<vmem>>, %arg5: memref<1x16x256xf32, #tpu.memory_space<vmem>>) attributes {dimension_semantics = [#tpu.dimension_semantics<parallel>], iteration_bounds = array<i64: 2>, scalar_prefetch = 0 : i64, scratch_operands = 0 : i64, tpu.core_type = #tpu.core_type<tc>, window_params = [{transform_indices = @transform_0, window_bounds = array<i64: 1, 8, 256>}, {transform_indices = @transform_1, window_bounds = array<i64: 1, 8, 256>}, {pipeline_mode = #tpu.pipeline_mode<synchronous>, transform_indices = @transform_2, window_bounds = array<i64: 8, 1>}, {pipeline_mode = #tpu.pipeline_mode<synchronous>, transform_indices = @transform_3, window_bounds = array<i64: 8, 1>}, {transform_indices = @transform_4, window_bounds = array<i64: 1, 16, 256>}]} {
    %c0 = arith.constant 0 : index
    %c0_0 = arith.constant 0 : index
    %c0_1 = arith.constant 0 : index
    %0 = vector.load %arg1[%c0, %c0_0, %c0_1] : memref<1x8x256xf32, #tpu.memory_space<vmem>>, vector<1x8x256xf32>
    %1 = vector.shape_cast %0 : vector<1x8x256xf32> to vector<8x256xf32>
    %c0_2 = arith.constant 0 : index
    %c0_3 = arith.constant 0 : index
    %c0_4 = arith.constant 0 : index
    %2 = vector.load %arg5[%c0_2, %c0_3, %c0_4] : memref<1x16x256xf32, #tpu.memory_space<vmem>>, vector<1x8x256xf32>
    %3 = vector.shape_cast %2 : vector<1x8x256xf32> to vector<8x256xf32>
    %4 = vector.shape_cast %1 : vector<8x256xf32> to vector<1x8x256xf32>
    tpu.vector_store %arg5[%c0_2, %c0_3, %c0_4], %4 {strides = array<i32>} : memref<1x16x256xf32, #tpu.memory_space<vmem>>, vector<1x8x256xf32>,
    %c0_5 = arith.constant 0 : index
    %c0_6 = arith.constant 0 : index
    %c0_7 = arith.constant 0 : index
    %5 = vector.load %arg2[%c0_5, %c0_6, %c0_7] : memref<1x8x256xf32, #tpu.memory_space<vmem>>, vector<1x8x256xf32>
    %6 = vector.shape_cast %5 : vector<1x8x256xf32> to vector<8x256xf32>
    %c0_8 = arith.constant 0 : index
    %c0_9 = arith.constant 0 : index
    %7 = vector.load %arg3[%c0_8, %c0_9] : memref<8x1xf32, #tpu.memory_space<vmem>>, vector<8x1xf32>
    %8 = vector.broadcast %7 : vector<8x1xf32> to vector<8x256xf32>
    %9 = arith.mulf %6, %8 : vector<8x256xf32>
    %c0_10 = arith.constant 0 : index
    %c0_11 = arith.constant 0 : index
    %10 = vector.load %arg4[%c0_10, %c0_11] : memref<8x1xf32, #tpu.memory_space<vmem>>, vector<8x1xf32>
    %11 = vector.broadcast %10 : vector<8x1xf32> to vector<8x256xf32>
    %12 = arith.addf %9, %11 : vector<8x256xf32>
    %cst = arith.constant 0.000000e+00 : f32
    %13 = vector.broadcast %cst : f32 to vector<8x256xf32>
    %14 = arith.maximumf %12, %13 : vector<8x256xf32>
    %c0_12 = arith.constant 0 : index
    %c8 = arith.constant 8 : index
    %c0_13 = arith.constant 0 : index
    %15 = vector.load %arg5[%c0_12, %c8, %c0_13] : memref<1x16x256xf32, #tpu.memory_space<vmem>>, vector<1x8x256xf32>
    %16 = vector.shape_cast %15 : vector<1x8x256xf32> to vector<8x256xf32>
    %17 = vector.shape_cast %14 : vector<8x256xf32> to vector<1x8x256xf32>
    tpu.vector_store %arg5[%c0_12, %c8, %c0_13], %17 {strides = array<i32>} : memref<1x16x256xf32, #tpu.memory_space<vmem>>, vector<1x8x256xf32>,
    return
  }
  func.func @transform_0(%arg0: i32) -> (i32, i32, i32) {
    %c0_i32 = arith.constant 0 : i32
    %c0_i32_0 = arith.constant 0 : i32
    %c0_i32_1 = arith.constant 0 : i32
    return %arg0, %c0_i32, %c0_i32_0 : i32, i32, i32
  }
  func.func @transform_1(%arg0: i32) -> (i32, i32, i32) {
    %c0_i32 = arith.constant 0 : i32
    %c0_i32_0 = arith.constant 0 : i32
    %c0_i32_1 = arith.constant 0 : i32
    return %arg0, %c0_i32, %c0_i32_0 : i32, i32, i32
  }
  func.func @transform_2(%arg0: i32) -> (i32, i32) {
    %c0_i32 = arith.constant 0 : i32
    %c0_i32_0 = arith.constant 0 : i32
    %c0_i32_1 = arith.constant 0 : i32
    return %c0_i32, %c0_i32_0 : i32, i32
  }
  func.func @transform_3(%arg0: i32) -> (i32, i32) {
    %c0_i32 = arith.constant 0 : i32
    %c0_i32_0 = arith.constant 0 : i32
    %c0_i32_1 = arith.constant 0 : i32
    return %c0_i32, %c0_i32_0 : i32, i32
  }
  func.func @transform_4(%arg0: i32) -> (i32, i32, i32) {
    %c0_i32 = arith.constant 0 : i32
    %c0_i32_0 = arith.constant 0 : i32
    %c0_i32_1 = arith.constant 0 : i32
    return %arg0, %c0_i32, %c0_i32_0 : i32, i32, i32
  }
}

module attributes {stable_mosaic.version = 11 : i64} {
  func.func @_bn1_conv2_kernel(%arg0: i32, %arg1: memref<1x8x256xf32, #tpu.memory_space<vmem>>, %arg2: memref<8x1xf32, #tpu.memory_space<vmem>>, %arg3: memref<8x1xf32, #tpu.memory_space<vmem>>, %arg4: memref<8x72xbf16, #tpu.memory_space<vmem>>, %arg5: memref<1x8x256xf32, #tpu.memory_space<vmem>>, %arg6: memref<1x8x256xf32, #tpu.memory_space<vmem>>, %arg7: memref<1x8x2xf32, #tpu.memory_space<vmem>>) attributes {dimension_semantics = [#tpu.dimension_semantics<parallel>], iteration_bounds = array<i64: 2>, scalar_prefetch = 0 : i64, scratch_operands = 0 : i64, tpu.core_type = #tpu.core_type<tc>, window_params = [{transform_indices = @transform_0, window_bounds = array<i64: 1, 8, 256>}, {pipeline_mode = #tpu.pipeline_mode<synchronous>, transform_indices = @transform_1, window_bounds = array<i64: 8, 1>}, {pipeline_mode = #tpu.pipeline_mode<synchronous>, transform_indices = @transform_2, window_bounds = array<i64: 8, 1>}, {pipeline_mode = #tpu.pipeline_mode<synchronous>, transform_indices = @transform_3, window_bounds = array<i64: 8, 72>}, {transform_indices = @transform_4, window_bounds = array<i64: 1, 8, 256>}, {transform_indices = @transform_5, window_bounds = array<i64: 1, 8, 256>}, {transform_indices = @transform_6, window_bounds = array<i64: 1, 8, 2>}]} {
    %c0 = arith.constant 0 : index
    %c0_0 = arith.constant 0 : index
    %c0_1 = arith.constant 0 : index
    %0 = vector.load %arg1[%c0, %c0_0, %c0_1] : memref<1x8x256xf32, #tpu.memory_space<vmem>>, vector<1x8x256xf32>
    %1 = vector.shape_cast %0 : vector<1x8x256xf32> to vector<8x256xf32>
    %c0_2 = arith.constant 0 : index
    %c0_3 = arith.constant 0 : index
    %2 = vector.load %arg2[%c0_2, %c0_3] : memref<8x1xf32, #tpu.memory_space<vmem>>, vector<8x1xf32>
    %3 = vector.broadcast %2 : vector<8x1xf32> to vector<8x256xf32>
    %4 = arith.mulf %1, %3 : vector<8x256xf32>
    %c0_4 = arith.constant 0 : index
    %c0_5 = arith.constant 0 : index
    %5 = vector.load %arg3[%c0_4, %c0_5] : memref<8x1xf32, #tpu.memory_space<vmem>>, vector<8x1xf32>
    %6 = vector.broadcast %5 : vector<8x1xf32> to vector<8x256xf32>
    %7 = arith.addf %4, %6 : vector<8x256xf32>
    %cst = arith.constant 0.000000e+00 : f32
    %8 = vector.broadcast %cst : f32 to vector<8x256xf32>
    %9 = arith.maximumf %7, %8 : vector<8x256xf32>
    %c0_6 = arith.constant 0 : index
    %c0_7 = arith.constant 0 : index
    %c0_8 = arith.constant 0 : index
    %10 = vector.load %arg5[%c0_6, %c0_7, %c0_8] : memref<1x8x256xf32, #tpu.memory_space<vmem>>, vector<1x8x256xf32>
    %11 = vector.shape_cast %10 : vector<1x8x256xf32> to vector<8x256xf32>
    %12 = vector.shape_cast %9 : vector<8x256xf32> to vector<1x8x256xf32>
    tpu.vector_store %arg5[%c0_6, %c0_7, %c0_8], %12 {strides = array<i32>} : memref<1x8x256xf32, #tpu.memory_space<vmem>>, vector<1x8x256xf32>,
    %13 = vector.shape_cast %9 : vector<8x256xf32> to vector<8x16x16xf32>
    %cst_9 = arith.constant 0.000000e+00 : f32
    %14 = vector.broadcast %cst_9 : f32 to vector<8x1x16xf32>
    %15 = tpu.concatenate %14, %13, %14 in 1 : vector<8x1x16xf32>, vector<8x16x16xf32>, vector<8x1x16xf32> -> vector<8x18x16xf32>
    %cst_10 = arith.constant 0.000000e+00 : f32
    %16 = vector.broadcast %cst_10 : f32 to vector<8x18x1xf32>
    %17 = tpu.concatenate %16, %15, %16 in 2 : vector<8x18x1xf32>, vector<8x18x16xf32>, vector<8x18x1xf32> -> vector<8x18x18xf32>
    %18 = vector.extract_strided_slice %17 {offsets = [0, 0, 0], sizes = [8, 16, 16], strides = [1, 1, 1]} : vector<8x18x18xf32> to vector<8x16x16xf32>
    %19 = vector.shape_cast %18 : vector<8x16x16xf32> to vector<8x256xf32>
    %20 = vector.extract_strided_slice %17 {offsets = [0, 0, 1], sizes = [8, 16, 16], strides = [1, 1, 1]} : vector<8x18x18xf32> to vector<8x16x16xf32>
    %21 = vector.shape_cast %20 : vector<8x16x16xf32> to vector<8x256xf32>
    %22 = vector.extract_strided_slice %17 {offsets = [0, 0, 2], sizes = [8, 16, 16], strides = [1, 1, 1]} : vector<8x18x18xf32> to vector<8x16x16xf32>
    %23 = vector.shape_cast %22 : vector<8x16x16xf32> to vector<8x256xf32>
    %24 = vector.extract_strided_slice %17 {offsets = [0, 1, 0], sizes = [8, 16, 16], strides = [1, 1, 1]} : vector<8x18x18xf32> to vector<8x16x16xf32>
    %25 = vector.shape_cast %24 : vector<8x16x16xf32> to vector<8x256xf32>
    %26 = vector.extract_strided_slice %17 {offsets = [0, 1, 1], sizes = [8, 16, 16], strides = [1, 1, 1]} : vector<8x18x18xf32> to vector<8x16x16xf32>
    %27 = vector.shape_cast %26 : vector<8x16x16xf32> to vector<8x256xf32>
    %28 = vector.extract_strided_slice %17 {offsets = [0, 1, 2], sizes = [8, 16, 16], strides = [1, 1, 1]} : vector<8x18x18xf32> to vector<8x16x16xf32>
    %29 = vector.shape_cast %28 : vector<8x16x16xf32> to vector<8x256xf32>
    %30 = vector.extract_strided_slice %17 {offsets = [0, 2, 0], sizes = [8, 16, 16], strides = [1, 1, 1]} : vector<8x18x18xf32> to vector<8x16x16xf32>
    %31 = vector.shape_cast %30 : vector<8x16x16xf32> to vector<8x256xf32>
    %32 = vector.extract_strided_slice %17 {offsets = [0, 2, 1], sizes = [8, 16, 16], strides = [1, 1, 1]} : vector<8x18x18xf32> to vector<8x16x16xf32>
    %33 = vector.shape_cast %32 : vector<8x16x16xf32> to vector<8x256xf32>
    %34 = vector.extract_strided_slice %17 {offsets = [0, 2, 2], sizes = [8, 16, 16], strides = [1, 1, 1]} : vector<8x18x18xf32> to vector<8x16x16xf32>
    %35 = vector.shape_cast %34 : vector<8x16x16xf32> to vector<8x256xf32>
    %36 = tpu.concatenate %19, %21, %23, %25, %27, %29, %31, %33, %35 in 0 : vector<8x256xf32>, vector<8x256xf32>, vector<8x256xf32>, vector<8x256xf32>, vector<8x256xf32>, vector<8x256xf32>, vector<8x256xf32>, vector<8x256xf32>, vector<8x256xf32> -> vector<72x256xf32>
    %c0_11 = arith.constant 0 : index
    %c0_12 = arith.constant 0 : index
    %37 = vector.load %arg4[%c0_11, %c0_12] : memref<8x72xbf16, #tpu.memory_space<vmem>>, vector<8x72xbf16>
    %38 = arith.truncf %36 : vector<72x256xf32> to vector<72x256xbf16>
    %cst_13 = arith.constant dense<0.000000e+00> : vector<8x256xf32>
    %39 = tpu.matmul %37, %38, %cst_13 {dimension_numbers = #tpu.dot_dimension_numbers<[1], [0], [0], [1], [0, 0, 1, 1], [], []>} : vector<8x72xbf16>, vector<72x256xbf16>, vector<8x256xf32> -> vector<8x256xf32>
    %c0_14 = arith.constant 0 : index
    %c0_15 = arith.constant 0 : index
    %c0_16 = arith.constant 0 : index
    %40 = vector.load %arg6[%c0_14, %c0_15, %c0_16] : memref<1x8x256xf32, #tpu.memory_space<vmem>>, vector<1x8x256xf32>
    %41 = vector.shape_cast %40 : vector<1x8x256xf32> to vector<8x256xf32>
    %42 = vector.shape_cast %39 : vector<8x256xf32> to vector<1x8x256xf32>
    tpu.vector_store %arg6[%c0_14, %c0_15, %c0_16], %42 {strides = array<i32>} : memref<1x8x256xf32, #tpu.memory_space<vmem>>, vector<1x8x256xf32>,
    %cst_17 = arith.constant dense<0.000000e+00> : vector<8xf32>
    %43 = vector.multi_reduction <add>, %39, %cst_17 [1] : vector<8x256xf32> to vector<8xf32>
    %44 = vector.shape_cast %43 : vector<8xf32> to vector<8x1xf32>
    %45 = arith.mulf %39, %39 : vector<8x256xf32>
    %cst_18 = arith.constant dense<0.000000e+00> : vector<8xf32>
    %46 = vector.multi_reduction <add>, %45, %cst_18 [1] : vector<8x256xf32> to vector<8xf32>
    %47 = vector.shape_cast %46 : vector<8xf32> to vector<8x1xf32>
    %48 = tpu.concatenate %44, %47 in 1 : vector<8x1xf32>, vector<8x1xf32> -> vector<8x2xf32>
    %c0_19 = arith.constant 0 : index
    %c0_20 = arith.constant 0 : index
    %c0_21 = arith.constant 0 : index
    %49 = vector.load %arg7[%c0_19, %c0_20, %c0_21] : memref<1x8x2xf32, #tpu.memory_space<vmem>>, vector<1x8x2xf32>
    %50 = vector.shape_cast %49 : vector<1x8x2xf32> to vector<8x2xf32>
    %51 = vector.shape_cast %48 : vector<8x2xf32> to vector<1x8x2xf32>
    tpu.vector_store %arg7[%c0_19, %c0_20, %c0_21], %51 {strides = array<i32>} : memref<1x8x2xf32, #tpu.memory_space<vmem>>, vector<1x8x2xf32>,
    return
  }
  func.func @transform_0(%arg0: i32) -> (i32, i32, i32) {
    %c0_i32 = arith.constant 0 : i32
    %c0_i32_0 = arith.constant 0 : i32
    %c0_i32_1 = arith.constant 0 : i32
    return %arg0, %c0_i32, %c0_i32_0 : i32, i32, i32
  }
  func.func @transform_1(%arg0: i32) -> (i32, i32) {
    %c0_i32 = arith.constant 0 : i32
    %c0_i32_0 = arith.constant 0 : i32
    %c0_i32_1 = arith.constant 0 : i32
    return %c0_i32, %c0_i32_0 : i32, i32
  }
  func.func @transform_2(%arg0: i32) -> (i32, i32) {
    %c0_i32 = arith.constant 0 : i32
    %c0_i32_0 = arith.constant 0 : i32
    %c0_i32_1 = arith.constant 0 : i32
    return %c0_i32, %c0_i32_0 : i32, i32
  }
  func.func @transform_3(%arg0: i32) -> (i32, i32) {
    %c0_i32 = arith.constant 0 : i32
    %c0_i32_0 = arith.constant 0 : i32
    %c0_i32_1 = arith.constant 0 : i32
    return %c0_i32, %c0_i32_0 : i32, i32
  }
  func.func @transform_4(%arg0: i32) -> (i32, i32, i32) {
    %c0_i32 = arith.constant 0 : i32
    %c0_i32_0 = arith.constant 0 : i32
    %c0_i32_1 = arith.constant 0 : i32
    return %arg0, %c0_i32, %c0_i32_0 : i32, i32, i32
  }
  func.func @transform_5(%arg0: i32) -> (i32, i32, i32) {
    %c0_i32 = arith.constant 0 : i32
    %c0_i32_0 = arith.constant 0 : i32
    %c0_i32_1 = arith.constant 0 : i32
    return %arg0, %c0_i32, %c0_i32_0 : i32, i32, i32
  }
  func.func @transform_6(%arg0: i32) -> (i32, i32, i32) {
    %c0_i32 = arith.constant 0 : i32
    %c0_i32_0 = arith.constant 0 : i32
    %c0_i32_1 = arith.constant 0 : i32
    return %arg0, %c0_i32, %c0_i32_0 : i32, i32, i32
  }
}

</mosaic_0001>

<bundles_post_ra>
// kernel: fcc_forward.5
= control target key start
LH: loop header
LB: loop body
LE: loop exit
PB: predicated region body
PF: predicated region fallthrough
CT: control target
= control target key end

     0   :  { %s371_s15 = smov 0   ;;  %s397_s0 = inlined_call_operand.vmem [shape: f32[2,8,256], index: 0, kind: input, shape index: {}]   ;;  %s398_s1 = inlined_call_operand.vmem [shape: f32[2,8,256], index: 1, kind: input, shape index: {}]   ;;  %s399_s2 = inlined_call_operand.vmem [shape: f32[8,1], index: 2, kind: input, shape index: {}]   ;;  %s400_s3 = inlined_call_operand.vmem [shape: f32[8,1], index: 3, kind: input, shape index: {}]   ;;  %s401_s4 = inlined_call_operand.vmem [shape: f32[2,16,256], index: 4, kind: output, shape index: {}]  }
   0x1 LB: > { %s311_s16 = sadd.s32 4294967295, %s343_s15   ;;  %p315_p0 = scmp.ge.s32.totalorder %s343_s15, 1  ;;  %s343_s15 = sphi %s371_s15, %s14_s15  }
   0x2   : > { %p172_p1 = scmp.lt.s32.totalorder %s343_s15, 3 }
   0x4   : > { %p173_p2 = pnand %p315_p0, %p172_p1 }
   0x5   : > { %v224_v0 = vld [vmem:[%s399_s2] sm:$0xff] (!%p173_p2)  ;;  %p203_p3 = scmp.lt.s32.totalorder (!%p173_p2), %s311_s16, 1  ;;  %v345_v1 = vmov (!%p173_p2), 0  }
   0x6   : > { %176 = sbr.rel (%p173_p2) target bundleno = 144 (0x90), region = 36  ;;  %336 = vset.pattern.permute.xlu0 (!%p173_p2), %v345_v1  ;;  %v232_v2 = vld [vmem:[%s400_s3] sm:$0xff] (!%p173_p2) }
   0x7   : > { %227 = vperm.xlu0 (!%p173_p2), %336, %v224_v0  }
   0xb   : > { %235 = vperm.xlu0 (!%p173_p2), %336, %v232_v2  }
   0xd   : > { %s403_s16 = smov (!%p203_p3, %s311_s16), 1 }
   0xe   : > { %s324_s21 = sshll.u32 %s403_s16, 4  ;;  %s326_s25 = sshll.u32 %s403_s16, 5 }
   0xf   : > { %s207_s24 = scalar_lea.vmem %s397_s0, %s324_s21  ;;  %s217_s28 = scalar_lea.vmem %s401_s4, %s326_s25 }
  0x10   : > { %v218_v3 = vld [vmem:[%s207_s24] sm:$0xff]  ;;  %v219_v4 = vld [vmem:[%s207_s24 + $0x8] sm:$0xff]  ;;  %s212_s5 = scalar_lea.vmem %s398_s1, %s324_s21 }
  0x11   : > { %220 = vst [vmem:[%s217_s28] sm:$0xff] %v218_v3  ;;  %221 = vst [vmem:[%s217_s28 + $0x8] sm:$0xff] %v219_v4  ;;  %v222_v6 = vld [vmem:[%s212_s5] sm:$0xff]  ;;  %v223_v7 = vld [vmem:[%s212_s5 + $0x8] sm:$0xff] }
  0x86   : > { %v228_v5 = vpop.permute.xlu0 %227 }
  0x87   : > { %v230_v8 = vmul.f32 %v228_v5, %v222_v6  ;;  %v231_v9 = vmul.f32 %v228_v5, %v223_v7 }
  0x8a   : > { %v236_v10 = vpop.permute.xlu0 %235 }
  0x8b   : > { %v238_v11 = vadd.f32 %v236_v10, %v230_v8  ;;  %v239_v12 = vadd.f32 %v236_v10, %v231_v9 }
  0x8d   : > { %v240_v13 = vmax.f32 %v238_v11, 0.0  ;;  %v241_v14 = vmax.f32 %v239_v12, 0.0 }
  0x8f   : > { %242 = vst [vmem:[%s217_s28 + $0x10] sm:$0xff] %v240_v13  ;;  %243 = vst [vmem:[%s217_s28 + $0x18] sm:$0xff] %v241_v14 }
  0x90 PF: > { %s14_s15 = sadd.s32 1, %s343_s15  }
  0x91   : > { %p11_p4 = scmp.ge.s32.totalorder %s14_s15, 4  }
  0x93   :  { %13 = sbr.rel (!%p11_p4) target bundleno = 1 (0x1), region = 69 }

// kernel: fcc_forward.4
= control target key start
LH: loop header
LB: loop body
LE: loop exit
PB: predicated region body
PF: predicated region fallthrough
CT: control target
= control target key end

     0   :  { %s4943_s21 = smov 0   ;;  %s7530_s0 = inlined_call_operand.vmem [shape: f32[2,8,256], index: 0, kind: input, shape index: {}]   ;;  %s7531_s1 = inlined_call_operand.vmem [shape: f32[8,1], index: 1, kind: input, shape index: {}]   ;;  %s7532_s2 = inlined_call_operand.vmem [shape: f32[8,1], index: 2, kind: input, shape index: {}]   ;;  %s7533_s3 = inlined_call_operand.vmem [shape: bf16[8,72], index: 3, kind: input, shape index: {}]   ;;  %s7534_s4 = inlined_call_operand.vmem [shape: f32[2,8,256], index: 4, kind: output, shape index: {0}]   ;;  %s7535_s5 = inlined_call_operand.vmem [shape: f32[2,8,256], index: 5, kind: output, shape index: {1}]   ;;  %s7536_s6 = inlined_call_operand.vmem [shape: f32[2,8,2], index: 6, kind: output, shape index: {2}]  }
   0x1 LB: > { %s4531_s22 = sadd.s32 4294967295, %s4893_s21   ;;  %p4535_p0 = scmp.ge.s32.totalorder %s4893_s21, 1  ;;  %s4893_s21 = sphi %s4943_s21, %s17_s21  }
   0x2   : > { %p217_p1 = scmp.lt.s32.totalorder %s4893_s21, 3 }
   0x4   : > { %p218_p2 = pnand %p4535_p0, %p217_p1 }
   0x6   : > { %221 = sbr.rel (%p218_p2) target bundleno = 1251 (0x4e3), region = 36 }
   0xd   : > { %v278_v0 = vld [vmem:[%s7531_s1] sm:$0xff]  ;;  %v4895_v1 = vmov 0   ;;  %p256_p3 = scmp.lt.s32.totalorder %s4531_s22, 1  ;;  %s4896_s10 = smov 80   ;;  %v4903_v15 = vmov 1983009808   ;;  %v347_v17 = vlaneseq }
   0xe   : > { %4571 = vset.pattern.permute.xlu0 %v4895_v1  ;;  %4390 = vmatprep.mubr.bf16.mxu0 %v4895_v1  ;;  %v286_v2 = vld [vmem:[%s7532_s2] sm:$0xff]  ;;  %s4897_s11 = smov 112   ;;  %s4898_s12 = smov 48   ;;  %v345_v16 = vunpack.c.l.s4 %v4903_v15  ;;  %v4904_v25 = vmov 1934713408   ;;  %vm630_vm0 = vcmask 1040384  }
   0xf   : > { %281 = vperm.xlu0 %4571, %v278_v0   ;;  %s7962_s22 = smov (!%p256_p3, %s4531_s22), 1  ;;  %s4899_s13 = smov 96   ;;  %v348_v21 = vshrl.u32 %v347_v17, 7  ;;  %v409_v26 = vunpack.c.l.s4 %v4904_v25  ;;  %vm775_vm1 = vcmask 7168   ;;  %vm800_vm2 = vcmask 138240  }
  0x10   : > { %s4960_s27 = sshll.u32 %s7962_s22, 4  ;;  %s4900_s14 = smov 16   ;;  %v346_v20 = vunpack.c.0.s8 %v345_v16  ;;  %vm3157_vm3 = vcmask 1045504   ;;  %vm1978_vm4 = vcmask 1046528   ;;  %vm1153_vm5 = vcmask 130048  }
  0x11   : > { %s260_s30 = scalar_lea.vmem %s7530_s0, %s4960_s27  ;;  %s265_s9 = scalar_lea.vmem %s7534_s4, %s4960_s27  ;;  %v410_v33 = vunpack.c.0.s8 %v409_v26  ;;  %vm1155_vm6 = vcmask 261120   ;;  %vm1157_vm7 = vcmask 392192   ;;  %vm1159_vm8 = vcmask 523264  }
  0x12   : > { %v276_v4 = vld [vmem:[%s260_s30] sm:$0xff]  ;;  %v277_v5 = vld [vmem:[%s260_s30 + $0x8] sm:$0xff]  ;;  %s4901_s15 = smov 64   ;;  %s4902_s16 = smov 32   ;;  %v5009_v27 = vsub.s32 %v346_v20, %v348_v21  ;;  %vm1161_vm9 = vcmask 654336   ;;  %vm1163_vm10 = vcmask 785408  }
  0x13   : > { %289 = vperm.xlu0 %4571, %v286_v2   ;;  %v5023_v40 = vsub.s32 %v410_v33, %v348_v21  ;;  %s4905_s17 = smov 1   ;;  %s4906_s18 = smov 127   ;;  %vm1165_vm11 = vcmask 916480   ;;  %vm4351_vm12 = vcmask 1043456   ;;  %vm4347_vm13 = vcmask 588800  }
  0x14   : > { %s4907_s19 = smov 126   ;;  %s270_s26 = scalar_lea.vmem %s7535_s5, %s4960_s27  ;;  %vm4410_vm14 = vcmask 15360  }
  0x15   : > { %s4542_s28 = sshll.u32 %s7962_s22, 3 }
  0x16   : > { %s274_s7 = scalar_lea.vmem %s7536_s6, %s4542_s28 }
  0x8e   : > { %v282_v3 = vpop.permute.xlu0 %281 }
  0x8f   : > { %v284_v6 = vmul.f32 %v282_v3, %v276_v4  ;;  %v285_v7 = vmul.f32 %v282_v3, %v277_v5 }
  0x92   : > { %v290_v8 = vpop.permute.xlu0 %289 }
  0x93   : > { %v292_v9 = vadd.f32 %v290_v8, %v284_v6  ;;  %v293_v10 = vadd.f32 %v290_v8, %v285_v7 }
  0x95   : > { %v4970_v11 = vmax.f32 %v292_v9, 0.0  ;;  %v4972_v12 = vmax.f32 %v293_v10, 0.0 }
  0x97   : > { %296 = vst [vmem:[%s265_s9] sm:$0xff] %v4970_v11  ;;  %297 = vst [vmem:[%s265_s9 + $0x8] sm:$0xff] %v4972_v12  ;;  %305 = vrot.lane.b32.xlu0 %v4970_v11, %s4896_s10  ;;  %299 = vrot.lane.b32.xlu1 %v4970_v11, %s4897_s11 }
  0x9b   : > { %311 = vrot.lane.b32.xlu0 %v4970_v11, %s4898_s12  ;;  %302 = vrot.lane.b32.xlu1 %v4970_v11, %s4899_s13 }
  0x9f   : > { %317 = vrot.lane.b32.xlu0 %v4970_v11, %s4900_s14  ;;  %308 = vrot.lane.b32.xlu1 %v4970_v11, %s4901_s15 }
  0xa3   : > { %324 = vrot.lane.b32.xlu0 %v4972_v12, %s4899_s13  ;;  %314 = vrot.lane.b32.xlu1 %v4970_v11, %s4902_s16 }
  0xa7   : > { %330 = vrot.lane.b32.xlu0 %v4972_v12, %s4901_s15  ;;  %321 = vrot.lane.b32.xlu1 %v4972_v12, %s4897_s11 }
  0xab   : > { %336 = vrot.lane.b32.xlu0 %v4972_v12, %s4902_s16  ;;  %327 = vrot.lane.b32.xlu1 %v4972_v12, %s4896_s10 }
  0xaf   : > { %333 = vrot.lane.b32.xlu1 %v4972_v12, %s4898_s12 }
  0xb3   : > { %339 = vrot.lane.b32.xlu1 %v4972_v12, %s4900_s14 }
 0x109   : > { %v5004_v13 = vpop.permute.xlu0 %305  ;;  %v5006_v14 = vpop.permute.xlu1 %299 }
 0x10a   : > { %v358_v28 = vcombine.low %v5006_v14, %v5004_v13  ;;  %v359_v58 = vcombine.high %v5006_v14, %v5004_v13 }
 0x10c   : > { %v5017_v35 = vrot.slane %v358_v28, %v5009_v27 }
 0x10d   : > { %v312_v18 = vpop.permute.xlu0 %311  ;;  %v303_v19 = vpop.permute.xlu1 %302 }
 0x10e   : > { %v342_v22 = vcombine.low %v4970_v11, %v303_v19  ;;  %v343_v59 = vcombine.high %v4970_v11, %v303_v19 }
 0x110   : > { %v5014_v30 = vrot.slane %v342_v22, %v5009_v27  ;;  %v357_v11 = vrot.slane %v343_v59, %v5009_v27 }
 0x111   : > { %v318_v23 = vpop.permute.xlu0 %317  ;;  %v309_v24 = vpop.permute.xlu1 %308 }
 0x112   : > { %v390_v29 = vcombine.low %v312_v18, %v318_v23  ;;  %v406_v38 = vcombine.low %v5014_v30, %v5017_v35  ;;  %v391_v60 = vcombine.high %v312_v18, %v318_v23  ;;  %v407_v14 = vcombine.high %v5014_v30, %v5017_v35 }
 0x113   : > { %v373_v18 = vrot.slane %v359_v58, %v5009_v27 }
 0x114   : > { %v398_v36 = vrot.slane %v390_v29, %v5009_v27  ;;  %v5029_v45 = vrot.slane %v406_v38, %v5023_v40 }
 0x115   : > { %v325_v31 = vpop.permute.xlu0 %324  ;;  %v315_v32 = vpop.permute.xlu1 %314  ;;  %v422_v26 = vcombine.low %v357_v11, %v373_v18 }
 0x116   : > { %v374_v34 = vcombine.low %v309_v24, %v315_v32  ;;  %v478_v51 = vcombine.low %v4972_v12, %v325_v31  ;;  %v375_v52 = vcombine.high %v309_v24, %v315_v32  ;;  %v479_v61 = vcombine.high %v4972_v12, %v325_v31 }
 0x117   : > { %v405_v12 = vrot.slane %v391_v60, %v5009_v27  ;;  %v421_v31 = vrot.slane %v407_v14, %v5023_v40 }
 0x118   : > { %v382_v37 = vrot.slane %v374_v34, %v5009_v27  ;;  %v486_v63 = vrot.slane %v478_v51, %v5009_v27  ;;  %v389_v0 = vrot.slane %v375_v52, %v5009_v27  ;;  %v493_v13 = vrot.slane %v479_v61, %v5009_v27 }
 0x119   : > { %v322_v39 = vpop.permute.xlu1 %321  ;;  %v331_v42 = vpop.permute.xlu0 %330  ;;  %v423_v34 = vcombine.high %v357_v11, %v373_v18 }
 0x11a   : > { %v438_v41 = vcombine.low %v382_v37, %v398_v36  ;;  %v439_v3 = vcombine.high %v382_v37, %v398_v36  ;;  %v454_v19 = vcombine.low %v389_v0, %v405_v12  ;;  %v455_v35 = vcombine.high %v389_v0, %v405_v12 }
 0x11b   : > { %v437_v58 = vrot.slane %v423_v34, %v5023_v40 }
 0x11c   : > { %v5026_v43 = vrot.slane %v438_v41, %v5023_v40  ;;  %v453_v21 = vrot.slane %v439_v3, %v5023_v40 }
 0x11d   : > { %v328_v44 = vpop.permute.xlu1 %327  ;;  %v337_v47 = vpop.permute.xlu0 %336 }
 0x11e   : > { %v470_v46 = vcombine.low %v5029_v45, %v5026_v43  ;;  %v494_v48 = vcombine.low %v322_v39, %v328_v44  ;;  %v510_v53 = vcombine.low %v331_v42, %v337_v47  ;;  %v511_v54 = vcombine.high %v331_v42, %v337_v47 }
 0x11f   : > { %v495_v55 = vcombine.high %v322_v39, %v328_v44  ;;  %v472_v39 = vcombine.low %v421_v31, %v453_v21  ;;  %v471_v41 = vcombine.high %v5029_v45, %v5026_v43  ;;  %v462_v42 = vrot.slane %v454_v19, %v5023_v40 }
 0x120   : > { %v5033_v50 = vrot.slane %v470_v46, 7  ;;  %v502_v57 = vrot.slane %v494_v48, %v5009_v27  ;;  %v518_v4 = vrot.slane %v510_v53, %v5009_v27  ;;  %v525_v5 = vrot.slane %v511_v54, %v5009_v27 }
 0x121   : > { %v334_v49 = vpop.permute.xlu1 %333  ;;  %v509_v6 = vrot.slane %v495_v55, %v5009_v27  ;;  %v430_v44 = vrot.slane %v422_v26, %v5023_v40  ;;  %v469_v43 = vrot.slane %v455_v35, %v5023_v40  ;;  %v637_v54 = vrot.slane %v472_v39, 7 }
 0x122   : > { %v671_v56 = vsel %vm630_vm0, 0.0, %v5033_v50  ;;  %v542_v7 = vcombine.low %v486_v63, %v502_v57  ;;  %v543_v8 = vcombine.high %v486_v63, %v502_v57  ;;  %v634_v55 = vrot.slane %v471_v41, 7 }
 0x123   : > { %703 = vrot.lane.b32.xlu0 %v671_v56, %s4905_s17  ;;  %v558_v20 = vcombine.low %v493_v13, %v509_v6  ;;  %v559_v36 = vcombine.high %v493_v13, %v509_v6  ;;  %v474_v56 = vcombine.low %v430_v44, %v462_v42  ;;  %v473_v57 = vcombine.high %v421_v31, %v453_v21 }
 0x124   : > { %v550_v22 = vrot.slane %v542_v7, %v5023_v40  ;;  %v557_v24 = vrot.slane %v543_v8, %v5023_v40  ;;  %v475_v3 = vcombine.high %v430_v44, %v462_v42  ;;  %v477_v11 = vcombine.high %v437_v58, %v469_v43 }
 0x125   : > { %v340_v62 = vpop.permute.xlu1 %339  ;;  %v566_v37 = vrot.slane %v558_v20, %v5023_v40  ;;  %v573_v45 = vrot.slane %v559_v36, %v5023_v40  ;;  %v643_v0 = vrot.slane %v474_v56, 7  ;;  %v673_v19 = vsel %vm630_vm0, 0.0, %v637_v54 }
 0x126   : > { %v526_v1 = vcombine.low %v334_v49, %v340_v62  ;;  %v527_v2 = vcombine.high %v334_v49, %v340_v62 }
 0x127   : > { %v675_v21 = vsel %vm630_vm0, 0.0, %v643_v0 }
 0x128   : > { %v534_v9 = vrot.slane %v526_v1, %v5009_v27  ;;  %v541_v10 = vrot.slane %v527_v2, %v5009_v27  ;;  %v640_v1 = vrot.slane %v473_v57, 7  ;;  %v476_v2 = vcombine.low %v437_v58, %v469_v43 }
 0x12a   : > { %v574_v15 = vcombine.low %v518_v4, %v534_v9  ;;  %v575_v16 = vcombine.high %v518_v4, %v534_v9  ;;  %v590_v17 = vcombine.low %v525_v5, %v541_v10  ;;  %v591_v28 = vcombine.high %v525_v5, %v541_v10 }
 0x12b   : > { %v649_v9 = vrot.slane %v476_v2, 7  ;;  %v646_v10 = vrot.slane %v475_v3, 7  ;;  %v674_v18 = vsel %vm630_vm0, 0.0, %v640_v1 }
 0x12c   : > { %v582_v23 = vrot.slane %v574_v15, %v5023_v40  ;;  %v589_v25 = vrot.slane %v575_v16, %v5023_v40  ;;  %v598_v29 = vrot.slane %v590_v17, %v5023_v40  ;;  %v605_v48 = vrot.slane %v591_v28, %v5023_v40 }
 0x12d   : > { %v652_v15 = vrot.slane %v477_v11, 7  ;;  %v672_v16 = vsel %vm630_vm0, 0.0, %v634_v55  ;;  %v676_v20 = vsel %vm630_vm0, 0.0, %v646_v10 }
 0x12e   : > { %v606_v30 = vcombine.low %v550_v22, %v582_v23  ;;  %v608_v32 = vcombine.low %v557_v24, %v589_v25  ;;  %v607_v33 = vcombine.high %v550_v22, %v582_v23  ;;  %v610_v46 = vcombine.low %v566_v37, %v598_v29 }
 0x12f   : > { %v609_v47 = vcombine.high %v557_v24, %v589_v25  ;;  %v612_v59 = vcombine.low %v573_v45, %v605_v48  ;;  %v611_v60 = vcombine.high %v566_v37, %v598_v29  ;;  %v613_v4 = vcombine.high %v573_v45, %v605_v48 }
 0x130   : > { %v632_v38 = vrot.slane %v606_v30, 7  ;;  %v638_v52 = vrot.slane %v608_v32, 7  ;;  %v635_v53 = vrot.slane %v607_v33, 7  ;;  %v644_v62 = vrot.slane %v610_v46, 7 }
 0x131   : > { %v641_v63 = vrot.slane %v609_v47, 7  ;;  %v650_v7 = vrot.slane %v612_v59, 7  ;;  %v647_v8 = vrot.slane %v611_v60, 7  ;;  %v653_v14 = vrot.slane %v613_v4, 7 }
 0x132   : > { %v679_v49 = vsel %vm630_vm0, %v632_v38, 0.0  ;;  %v633_v51 = vsel %vm630_vm0, %v5033_v50, %v632_v38  ;;  %v639_v50 = vsel %vm630_vm0, %v637_v54, %v638_v52  ;;  %v636_v61 = vsel %vm630_vm0, %v634_v55, %v635_v53 }
 0x133   : > { %707 = vrot.lane.b32.xlu0 %v679_v49, %s4905_s17  ;;  %705 = vrot.lane.b32.xlu1 %v633_v51, %s4905_s17  ;;  %v645_v5 = vsel %vm630_vm0, %v643_v0, %v644_v62  ;;  %v642_v6 = vsel %vm630_vm0, %v640_v1, %v641_v63  ;;  %v651_v12 = vsel %vm630_vm0, %v649_v9, %v650_v7  ;;  %v678_v22 = vsel %vm630_vm0, 0.0, %v652_v15 }
 0x134   : > { %v648_v13 = vsel %vm630_vm0, %v646_v10, %v647_v8  ;;  %v654_v17 = vsel %vm630_vm0, %v652_v15, %v653_v14  ;;  %v677_v23 = vsel %vm630_vm0, 0.0, %v649_v9  ;;  %v681_v24 = vsel %vm630_vm0, %v638_v52, 0.0 }
 0x135   : > { %v680_v25 = vsel %vm630_vm0, %v635_v53, 0.0  ;;  %v683_v26 = vsel %vm630_vm0, %v644_v62, 0.0  ;;  %v682_v28 = vsel %vm630_vm0, %v641_v63, 0.0  ;;  %v685_v29 = vsel %vm630_vm0, %v650_v7, 0.0 }
 0x136   : > { %v684_v30 = vsel %vm630_vm0, %v647_v8, 0.0  ;;  %v686_v31 = vsel %vm630_vm0, %v653_v14, 0.0 }
 0x137   : > { %717 = vrot.lane.b32.xlu0 %v639_v50, %s4905_s17  ;;  %711 = vrot.lane.b32.xlu1 %v636_v61, %s4905_s17 }
 0x13b   : > { %729 = vrot.lane.b32.xlu0 %v645_v5, %s4905_s17  ;;  %723 = vrot.lane.b32.xlu1 %v642_v6, %s4905_s17 }
 0x13f   : > { %741 = vrot.lane.b32.xlu0 %v651_v12, %s4905_s17  ;;  %735 = vrot.lane.b32.xlu1 %v648_v13, %s4905_s17 }
 0x143   : > { %709 = vrot.lane.b32.xlu0 %v672_v16, %s4905_s17  ;;  %747 = vrot.lane.b32.xlu1 %v654_v17, %s4905_s17 }
 0x147   : > { %721 = vrot.lane.b32.xlu0 %v674_v18, %s4905_s17  ;;  %715 = vrot.lane.b32.xlu1 %v673_v19, %s4905_s17 }
 0x14b   : > { %733 = vrot.lane.b32.xlu0 %v676_v20, %s4905_s17  ;;  %727 = vrot.lane.b32.xlu1 %v675_v21, %s4905_s17 }
 0x14f   : > { %745 = vrot.lane.b32.xlu0 %v678_v22, %s4905_s17  ;;  %739 = vrot.lane.b32.xlu1 %v677_v23, %s4905_s17 }
 0x153   : > { %719 = vrot.lane.b32.xlu0 %v681_v24, %s4905_s17  ;;  %713 = vrot.lane.b32.xlu1 %v680_v25, %s4905_s17 }
 0x157   : > { %731 = vrot.lane.b32.xlu0 %v683_v26, %s4905_s17  ;;  %725 = vrot.lane.b32.xlu1 %v682_v28, %s4905_s17 }
 0x15b   : > { %743 = vrot.lane.b32.xlu0 %v685_v29, %s4905_s17  ;;  %737 = vrot.lane.b32.xlu1 %v684_v30, %s4905_s17 }
 0x15f   : > { %749 = vrot.lane.b32.xlu1 %v686_v31, %s4905_s17 }
 0x195   : > { %v704_v32 = vpop.permute.xlu0 %703 }
 0x196   : > { %v776_v33 = vsel %vm775_vm1, 0.0, %v704_v32 }
 0x197   : > { %v5122_v36 = vsel %vm800_vm2, %v776_v33, 0.0 }
 0x198   : > { %v3158_v48 = vrot.slane %v5122_v36, 2 }
 0x1a5   : > { %v708_v34 = vpop.permute.xlu0 %707  ;;  %v706_v35 = vpop.permute.xlu1 %705 }
 0x1a6   : > { %v778_v37 = vsel %vm775_vm1, 0.0, %v708_v34  ;;  %v777_v38 = vsel %vm775_vm1, 0.0, %v706_v35 }
 0x1a7   : > { %v5127_v39 = vsel %vm800_vm2, %v778_v37, 0.0  ;;  %v5130_v41 = vsel %vm800_vm2, %v777_v38, 0.0 }
 0x1a8   : > { %v3161_v42 = vrot.slane %v5127_v39, 2  ;;  %1192 = vrot.lane.b32.xlu1 %v5130_v41, %s4906_s18  ;;  %v3159_v44 = vrot.slane %v5130_v41, 2 }
 0x1a9   : > { %v718_v46 = vpop.permute.xlu0 %717  ;;  %v712_v47 = vpop.permute.xlu1 %711 }
 0x1aa   : > { %v783_v49 = vsel %vm775_vm1, 0.0, %v718_v46  ;;  %v780_v51 = vsel %vm775_vm1, 0.0, %v712_v47  ;;  %v5146_v43 = vsel %vm3157_vm3, %v3159_v44, %v3161_v42  ;;  %v5149_v45 = vsel %vm3157_vm3, %v3158_v48, %v3159_v44 }
 0x1ab   : > { %v5140_v52 = vsel %vm800_vm2, %v783_v49, 0.0  ;;  %v5143_v53 = vsel %vm800_vm2, %v780_v51, 0.0  ;;  %7679 = vst [vmem:[#allocation2_spill] sm:$0xff] %v5146_v43  ;;  %7680 = vst [vmem:[#allocation3_spill] sm:$0xff] %v5149_v45 }
 0x1ac   : > { %v961_v54 = vcombine.low %v5130_v41, %v5140_v52  ;;  %v962_v55 = vcombine.high %v5130_v41, %v5140_v52  ;;  %1200 = vrot.lane.b32.xlu1 %v5140_v52, %s4906_s18  ;;  %1196 = vrot.lane.b32.xlu0 %v5143_v53, %s4906_s18  ;;  %v3164_v23 = vrot.slane %v5143_v53, 2 }
 0x1ad   : > { %v730_v56 = vpop.permute.xlu0 %729  ;;  %v724_v57 = vpop.permute.xlu1 %723 }
 0x1ae   : > { %v789_v58 = vsel %vm775_vm1, 0.0, %v730_v56  ;;  %v786_v59 = vsel %vm775_vm1, 0.0, %v724_v57  ;;  %v5181_v4 = vrot.slane %v961_v54, %v5009_v27  ;;  %v5207_v16 = vrot.slane %v962_v55, %v5009_v27 }
 0x1af   : > { %v5162_v60 = vsel %vm800_vm2, %v789_v58, 0.0  ;;  %v5165_v50 = vsel %vm800_vm2, %v786_v59, 0.0 }
 0x1b0   : > { %v977_v61 = vcombine.low %v5143_v53, %v5165_v50  ;;  %v978_v62 = vcombine.high %v5143_v53, %v5165_v50  ;;  %1208 = vrot.lane.b32.xlu1 %v5162_v60, %s4906_s18  ;;  %1204 = vrot.lane.b32.xlu0 %v5165_v50, %s4906_s18  ;;  %v7544_v25 = vrot.slane %v5165_v50, 2 }
 0x1b1   : > { %v742_v63 = vpop.permute.xlu0 %741  ;;  %v736_v0 = vpop.permute.xlu1 %735 }
 0x1b2   : > { %v5176_v1 = vrot.slane %v977_v61, %v5009_v27  ;;  %v795_v2 = vsel %vm775_vm1, 0.0, %v742_v63  ;;  %v792_v3 = vsel %vm775_vm1, 0.0, %v736_v0  ;;  %v5198_v9 = vrot.slane %v978_v62, %v5009_v27 }
 0x1b3   : > { %v5184_v5 = vsel %vm800_vm2, %v795_v2, 0.0  ;;  %v5187_v6 = vsel %vm800_vm2, %v792_v3, 0.0  ;;  %v1982_v63 = vrot.slane %v5127_v39, 1  ;;  %v1980_v3 = vrot.slane %v5130_v41, 1 }
 0x1b4   : > { %v993_v7 = vcombine.low %v5162_v60, %v5184_v5  ;;  %1216 = vrot.lane.b32.xlu1 %v5184_v5, %s4906_s18  ;;  %1212 = vrot.lane.b32.xlu0 %v5187_v6, %s4906_s18  ;;  %v7540_v13 = vrot.slane %v5184_v5, 1  ;;  %v7543_v37 = vrot.slane %v5187_v6, 1 }
 0x1b5   : > { %v710_v10 = vpop.permute.xlu0 %709  ;;  %v748_v11 = vpop.permute.xlu1 %747 }
 0x1b6   : > { %v779_v14 = vsel %vm775_vm1, 0.0, %v710_v10  ;;  %v798_v15 = vsel %vm775_vm1, 0.0, %v748_v11  ;;  %v5490_v19 = vrot.slane %v993_v7, %v5009_v27 }
 0x1b7   : > { %v5210_v17 = vsel %vm800_vm2, %v779_v14, 0.0  ;;  %v5213_v18 = vsel %vm800_vm2, %v798_v15, 0.0 }
 0x1b8   : > { %1190 = vrot.lane.b32.xlu1 %v5122_v36, %s4906_s18  ;;  %1220 = vrot.lane.b32.xlu0 %v5213_v18, %s4906_s18  ;;  %v3163_v24 = vrot.slane %v5210_v17, 2 }
 0x1b9   : > { %v722_v21 = vpop.permute.xlu0 %721  ;;  %v716_v22 = vpop.permute.xlu1 %715 }
 0x1ba   : > { %v785_v28 = vsel %vm775_vm1, 0.0, %v722_v21  ;;  %v782_v29 = vsel %vm775_vm1, 0.0, %v716_v22  ;;  %v5240_v32 = vsel %vm3157_vm3, %v3163_v24, %v3164_v23  ;;  %v5301_v24 = vsel %vm1978_vm4, %v1980_v3, %v1982_v63 }
 0x1bb   : > { %v5232_v30 = vsel %vm800_vm2, %v785_v28, 0.0  ;;  %v5235_v31 = vsel %vm800_vm2, %v782_v29, 0.0  ;;  %7681 = vst [vmem:[#allocation4_spill] sm:$0xff] %v5240_v32  ;;  %v7541_v28 = vrot.slane %v5140_v52, 1 }
 0x1bc   : > { %1194 = vrot.lane.b32.xlu0 %v5210_v17, %s4906_s18  ;;  %1198 = vrot.lane.b32.xlu1 %v5235_v31, %s4906_s18 }
 0x1bd   : > { %v734_v38 = vpop.permute.xlu0 %733  ;;  %v728_v42 = vpop.permute.xlu1 %727 }
 0x1be   : > { %v788_v44 = vsel %vm775_vm1, 0.0, %v728_v42  ;;  %v791_v46 = vsel %vm775_vm1, 0.0, %v734_v38  ;;  %v7539_v42 = vrot.slane %v5143_v53, 1 }
 0x1bf   : > { %v5257_v47 = vsel %vm800_vm2, %v788_v44, 0.0  ;;  %v5266_v55 = vsel %vm800_vm2, %v791_v46, 0.0  ;;  %v3169_v44 = vrot.slane %v5140_v52, 2 }
 0x1c0   : > { %1202 = vrot.lane.b32.xlu0 %v5232_v30, %s4906_s18  ;;  %1206 = vrot.lane.b32.xlu1 %v5257_v47, %s4906_s18 }
 0x1c1   : > { %v746_v48 = vpop.permute.xlu0 %745  ;;  %v740_v49 = vpop.permute.xlu1 %739 }
 0x1c2   : > { %v797_v51 = vsel %vm775_vm1, 0.0, %v746_v48  ;;  %v794_v54 = vsel %vm775_vm1, 0.0, %v740_v49 }
 0x1c3   : > { %v5269_v56 = vsel %vm800_vm2, %v797_v51, 0.0  ;;  %v5272_v57 = vsel %vm800_vm2, %v794_v54, 0.0  ;;  %v7537_v51 = vrot.slane %v5162_v60, 1 }
 0x1c4   : > { %1210 = vrot.lane.b32.xlu0 %v5266_v55, %s4906_s18  ;;  %1214 = vrot.lane.b32.xlu1 %v5272_v57, %s4906_s18 }
 0x1c5   : > { %v720_v0 = vpop.permute.xlu0 %719  ;;  %v714_v2 = vpop.permute.xlu1 %713 }
 0x1c6   : > { %v784_v10 = vsel %vm775_vm1, 0.0, %v720_v0  ;;  %v781_v11 = vsel %vm775_vm1, 0.0, %v714_v2  ;;  %v7538_v2 = vrot.slane %v5165_v50, 1 }
 0x1c7   : > { %v809_v14 = vsel %vm800_vm2, %v784_v10, 0.0  ;;  %v5294_v39 = vsel %vm800_vm2, %v781_v11, 0.0 }
 0x1c8   : > { %1218 = vrot.lane.b32.xlu0 %v5269_v56, %s4906_s18  ;;  %v1992_v15 = vrot.slane %v809_v14, 1  ;;  %1582 = vrot.lane.b32.xlu1 %v5130_v41, %s4907_s19  ;;  %v1987_v54 = vrot.slane %v5294_v39, 1  ;;  %v3171_v10 = vrot.slane %v809_v14, 2  ;;  %v7697_v41 = vcombine.low %v5187_v6, %v5213_v18 }
 0x1c9   : > { %v732_v21 = vpop.permute.xlu0 %731  ;;  %v726_v22 = vpop.permute.xlu1 %725 }
 0x1ca   : > { %v790_v29 = vsel %vm775_vm1, 0.0, %v732_v21  ;;  %v787_v38 = vsel %vm775_vm1, 0.0, %v726_v22  ;;  %v5317_v49 = vsel %vm1978_vm4, %v7541_v28, %v1992_v15  ;;  %v5513_v7 = vrot.slane %v7697_v41, %v5009_v27 }
 0x1cb   : > { %v5309_v46 = vsel %vm800_vm2, %v790_v29, 0.0  ;;  %v5312_v48 = vsel %vm800_vm2, %v787_v38, 0.0  ;;  %v2171_v21 = vcombine.low %v5301_v24, %v5317_v49  ;;  %v2172_v22 = vcombine.high %v5301_v24, %v5317_v49 }
 0x1cc   : > { %v2002_v63 = vrot.slane %v5309_v46, 1  ;;  %v1997_v0 = vrot.slane %v5312_v48, 1  ;;  %1586 = vrot.lane.b32.xlu0 %v5143_v53, %s4907_s19  ;;  %1590 = vrot.lane.b32.xlu1 %v5140_v52, %s4907_s19  ;;  %v7545_v29 = vrot.slane %v5162_v60, 2 }
 0x1cd   : > { %v744_v11 = vpop.permute.xlu0 %743  ;;  %v738_v15 = vpop.permute.xlu1 %737  ;;  %v5377_v58 = vrot.slane %v2172_v22, %v5009_v27  ;;  %v3181_v22 = vrot.slane %v5309_v46, 2  ;;  %v3189_v46 = vrot.slane %v5184_v5, 2 }
 0x1ce   : > { %v796_v38 = vsel %vm775_vm1, 0.0, %v744_v11  ;;  %v793_v26 = vsel %vm775_vm1, 0.0, %v738_v15  ;;  %v5338_v14 = vsel %vm1978_vm4, %v7538_v2, %v1997_v0  ;;  %v5352_v0 = vsel %vm1978_vm4, %v7539_v42, %v1987_v54 }
 0x1cf   : > { %v821_v62 = vsel %vm800_vm2, %v796_v38, 0.0  ;;  %v5343_v59 = vsel %vm800_vm2, %v793_v26, 0.0  ;;  %v5357_v11 = vsel %vm1978_vm4, %v7537_v51, %v2002_v63  ;;  %v7542_v26 = vrot.slane %v5213_v18, 1  ;;  %7683 = vst [vmem:[#allocation6_spill] sm:$0xff] %v5377_v58 }
 0x1d0   : > { %v2012_v34 = vrot.slane %v821_v62, 1  ;;  %1594 = vrot.lane.b32.xlu0 %v5165_v50, %s4907_s19  ;;  %1598 = vrot.lane.b32.xlu1 %v5162_v60, %s4907_s19  ;;  %v5363_v38 = vrot.slane %v2171_v21, %v5009_v27  ;;  %v2187_v20 = vcombine.low %v5352_v0, %v5338_v14  ;;  %v2188_v54 = vcombine.high %v5352_v0, %v5338_v14 }
 0x1d1   : > { %v750_v15 = vpop.permute.xlu1 %749  ;;  %v5372_v63 = vsel %vm3157_vm3, %v3169_v44, %v3171_v10  ;;  %v2007_v51 = vrot.slane %v5343_v59, 1 }
 0x1d2   : > { %7682 = vst [vmem:[#allocation5_spill] sm:$0xff] %v5372_v63  ;;  %v799_v61 = vsel %vm775_vm1, 0.0, %v750_v15  ;;  %v5382_v21 = vsel %vm1978_vm4, %v7540_v13, %v2012_v34  ;;  %v5386_v42 = vrot.slane %v2187_v20, %v5009_v27  ;;  %v5389_v10 = vrot.slane %v2188_v54, %v5009_v27 }
 0x1d3   : > { %v824_v2 = vsel %vm800_vm2, %v799_v61, 0.0  ;;  %v2203_v35 = vcombine.low %v5357_v11, %v5382_v21  ;;  %v3166_v15 = vrot.slane %v5294_v39, 2  ;;  %v2204_v34 = vcombine.high %v5357_v11, %v5382_v21 }
 0x1d4   : > { %7684 = vst [vmem:[#allocation7_spill] sm:$0xff] %v5389_v10  ;;  %v2017_v33 = vrot.slane %v824_v2, 1  ;;  %1602 = vrot.lane.b32.xlu0 %v5187_v6, %s4907_s19  ;;  %1606 = vrot.lane.b32.xlu1 %v5184_v5, %s4907_s19  ;;  %v3176_v54 = vrot.slane %v5312_v48, 2  ;;  %v3191_v13 = vrot.slane %v821_v62, 2  ;;  %v5413_v12 = vsel %vm1978_vm4, %v7543_v37, %v2007_v51 }
 0x1d5   : > { %v3184_v62 = vrot.slane %v5187_v6, 2  ;;  %v3186_v48 = vrot.slane %v5343_v59, 2  ;;  %v3196_v28 = vrot.slane %v824_v2, 2  ;;  %v5437_v51 = vsel %vm3157_vm3, %v7545_v29, %v3181_v22 }
 0x1d6   : > { %v5418_v20 = vsel %vm1978_vm4, %v7542_v26, %v2017_v33  ;;  %v5432_v33 = vsel %vm3157_vm3, %v3164_v23, %v3166_v15  ;;  %7687 = vst [vmem:[#allocation10_spill] sm:$0xff] %v5437_v51  ;;  %v5442_v26 = vrot.slane %v2203_v35, %v5009_v27  ;;  %v5445_v59 = vrot.slane %v2204_v34, %v5009_v27 }
 0x1d7   : > { %7685 = vst [vmem:[#allocation8_spill] sm:$0xff] %v5418_v20  ;;  %v2219_v61 = vcombine.low %v5413_v12, %v5418_v20  ;;  %v2220_v39 = vcombine.high %v5413_v12, %v5418_v20  ;;  %7686 = vst [vmem:[#allocation9_spill] sm:$0xff] %v5432_v33  ;;  %v5456_v15 = vsel %vm3157_vm3, %v7544_v25, %v3176_v54  ;;  %v3194_v35 = vrot.slane %v5213_v18, 2 }
 0x1d8   : > { %1610 = vrot.lane.b32.xlu0 %v5213_v18, %s4907_s19  ;;  %1580 = vrot.lane.b32.xlu1 %v5122_v36, %s4907_s19  ;;  %7688 = vst [vmem:[#allocation11_spill] sm:$0xff] %v5445_v59  ;;  %7690 = vst [vmem:[#allocation13_spill] sm:$0xff] %v5456_v15  ;;  %v5459_v22 = vsel %vm3157_vm3, %v3189_v46, %v3191_v13  ;;  %v3168_v37 = vrot.slane %v5235_v31, 2  ;;  %v1979_v13 = vrot.slane %v5122_v36, 1  ;;  %v1989_v25 = vrot.slane %v5235_v31, 1 }
 0x1d9   : > { %v5448_v2 = vrot.slane %v2219_v61, %v5009_v27  ;;  %v5451_v23 = vrot.slane %v2220_v39, %v5009_v27  ;;  %7691 = vst [vmem:[#allocation14_spill] sm:$0xff] %v5459_v22  ;;  %v1984_v34 = vrot.slane %v5210_v17, 1  ;;  %v1994_v61 = vrot.slane %v5232_v30, 1 }
 0x1da   : > { %v5480_v29 = vsel %vm3157_vm3, %v3184_v62, %v3186_v48  ;;  %v5483_v39 = vsel %vm3157_vm3, %v3194_v35, %v3196_v28  ;;  %v3173_v54 = vrot.slane %v5232_v30, 2  ;;  %v5495_v8 = vsel %vm1978_vm4, %v1979_v13, %v1980_v3 }
 0x1db   : > { %7689 = vst [vmem:[#allocation12_spill] sm:$0xff] %v5451_v23  ;;  %7692 = vst [vmem:[#allocation15_spill] sm:$0xff] %v5480_v29  ;;  %v5500_v48 = vsel %vm3157_vm3, %v3168_v37, %v3169_v44  ;;  %v3178_v28 = vrot.slane %v5257_v47, 2  ;;  %v7696_v23 = vcombine.high %v5162_v60, %v5184_v5  ;;  %v7698_v37 = vrot.slane %v5140_v52, 1 }
 0x1dc   : > { %1584 = vrot.lane.b32.xlu0 %v5210_v17, %s4907_s19  ;;  %1588 = vrot.lane.b32.xlu1 %v5235_v31, %s4907_s19  ;;  %7693 = vst [vmem:[#allocation16_spill] sm:$0xff] %v5483_v39  ;;  %7694 = vst [vmem:[#allocation17_spill] sm:$0xff] %v5495_v8  ;;  %v7700_v44 = vcombine.high %v5181_v4, %v5176_v1  ;;  %v7701_v13 = vcombine.low %v5210_v17, %v5232_v30  ;;  %v7703_v52 = vrot.slane %v5143_v53, 1 }
 0x1dd   : > { %7695 = vst [vmem:[#allocation18_spill] sm:$0xff] %v5500_v48  ;;  %v5507_v59 = vrot.slane %v7696_v23, %v5009_v27  ;;  %v5520_v3 = vsel %vm1978_vm4, %v1989_v25, %v7698_v37  ;;  %v7702_v10 = vcombine.low %v5122_v36, %v5235_v31  ;;  %v7705_v37 = vrot.slane %v5165_v50, 1 }
 0x1de   : > { %7699 = vst [vmem:[#allocation19_spill] sm:$0xff] %v5520_v3  ;;  %v5526_v23 = vrot.slane %v7700_v44, %v5023_v40  ;;  %v849_v41 = vrot.slane %v7701_v13, %v5009_v27  ;;  %v5541_v25 = vsel %vm1978_vm4, %v1984_v34, %v7703_v52  ;;  %v7707_v13 = vrot.slane %v5162_v60, 2 }
 0x1df   : > { %v833_v58 = vrot.slane %v7702_v10, %v5009_v27  ;;  %7704 = vst [vmem:[#allocation20_spill] sm:$0xff] %v5541_v25  ;;  %v5546_v44 = vsel %vm1978_vm4, %v1994_v61, %v7705_v37  ;;  %v7709_v10 = vrot.slane %v5165_v50, 2  ;;  %v3188_v53 = vrot.slane %v5272_v57, 2 }
 0x1e0   : > { %1592 = vrot.lane.b32.xlu0 %v5232_v30, %s4907_s19  ;;  %1596 = vrot.lane.b32.xlu1 %v5257_v47, %s4907_s19  ;;  %7706 = vst [vmem:[#allocation21_spill] sm:$0xff] %v5546_v44  ;;  %v5551_v32 = vsel %vm3157_vm3, %v3178_v28, %v7707_v13  ;;  %v3183_v34 = vrot.slane %v5266_v55, 2  ;;  %v7711_v52 = vcombine.low %v5266_v55, %v5269_v56 }
 0x1e1   : > { %7708 = vst [vmem:[#allocation22_spill] sm:$0xff] %v5551_v32  ;;  %v5556_v45 = vsel %vm3157_vm3, %v3173_v54, %v7709_v10  ;;  %v7712_v37 = vcombine.low %v5257_v47, %v5272_v57  ;;  %v2035_v50 = vcombine.low %v5495_v8, %v5520_v3  ;;  %v1999_v54 = vrot.slane %v5257_v47, 1 }
 0x1e2   : > { %7710 = vst [vmem:[#allocation23_spill] sm:$0xff] %v5556_v45  ;;  %v881_v61 = vrot.slane %v7711_v52, %v5009_v27  ;;  %v2051_v13 = vcombine.low %v5541_v25, %v5546_v44  ;;  %v2009_v10 = vrot.slane %v5272_v57, 1  ;;  %v2004_v52 = vrot.slane %v5266_v55, 1 }
 0x1e3   : > { %v865_v28 = vrot.slane %v7712_v37, %v5009_v27  ;;  %v2014_v45 = vrot.slane %v5269_v56, 1  ;;  %v5581_v37 = vsel %vm3157_vm3, %v3188_v53, %v3189_v46  ;;  %v5584_v3 = vsel %vm3157_vm3, %v3183_v34, %v3184_v62 }
 0x1e4   : > { %1600 = vrot.lane.b32.xlu0 %v5266_v55, %s4907_s19  ;;  %1604 = vrot.lane.b32.xlu1 %v5272_v57, %s4907_s19  ;;  %7713 = vst [vmem:[#allocation24_spill] sm:$0xff] %v5581_v37  ;;  %7714 = vst [vmem:[#allocation25_spill] sm:$0xff] %v5584_v3  ;;  %v3193_v8 = vrot.slane %v5269_v56, 2  ;;  %v890_v48 = vcombine.high %v833_v58, %v849_v41  ;;  %v7715_v44 = vcombine.high %v5187_v6, %v5213_v18 }
 0x1e5   : > { %v7716_v20 = vcombine.high %v5210_v17, %v5232_v30  ;;  %v7717_v46 = vcombine.high %v5122_v36, %v5235_v31  ;;  %v7718_v62 = vcombine.low %v5181_v4, %v5176_v1  ;;  %v5606_v22 = vrot.slane %v2035_v50, %v5009_v27 }
 0x1e6   : > { %v1024_v25 = vrot.slane %v7715_v44, %v5009_v27  ;;  %v5609_v44 = vsel %vm3157_vm3, %v3193_v8, %v3194_v35  ;;  %v922_v3 = vcombine.high %v865_v28, %v881_v61  ;;  %v1058_v17 = vcombine.high %v5490_v19, %v5513_v7 }
 0x1e7   : > { %v856_v51 = vrot.slane %v7716_v20, %v5009_v27  ;;  %v840_v53 = vrot.slane %v7717_v46, %v5009_v27  ;;  %v5603_v34 = vrot.slane %v7718_v62, %v5023_v40  ;;  %7720 = vst [vmem:[#allocation27_spill] sm:$0xff] %v5609_v44  ;;  %v7721_v36 = vcombine.high %v5266_v55, %v5269_v56 }
 0x1e8   : > { %1608 = vrot.lane.b32.xlu0 %v5269_v56, %s4907_s19  ;;  %v7722_v1 = vrot.slane %v5162_v60, 1  ;;  %v5625_v8 = vrot.slane %v2051_v13, %v5009_v27  ;;  %v7723_v31 = vrot.slane %v5184_v5, 1  ;;  %v7724_v55 = vcombine.high %v5257_v47, %v5272_v57  ;;  %2379 = vrot.lane.b32.xlu1 %v5301_v24, %s4906_s18 }
 0x1e9   : > { %7719 = vst [vmem:[#allocation26_spill] sm:$0xff] %v5603_v34  ;;  %v888_v30 = vrot.slane %v7721_v36, %v5009_v27  ;;  %v7725_v60 = vrot.slane %v5187_v6, 1  ;;  %v7726_v50 = vrot.slane %v5213_v18, 1  ;;  %v936_v13 = vrot.slane %v922_v3, %v5023_v40 }
 0x1ea   : > { %v5622_v4 = vsel %vm1978_vm4, %v1999_v54, %v7722_v1  ;;  %v5630_v20 = vsel %vm1978_vm4, %v2009_v10, %v7723_v31  ;;  %v872_v35 = vrot.slane %v7724_v55, %v5009_v27  ;;  %v904_v54 = vrot.slane %v890_v48, %v5023_v40 }
 0x1eb   : > { %v5641_v56 = vsel %vm1978_vm4, %v2004_v52, %v7725_v60  ;;  %v5646_v5 = vsel %vm1978_vm4, %v2014_v45, %v7726_v50  ;;  %v1072_v47 = vrot.slane %v1058_v17, %v5023_v40  ;;  %v889_v57 = vcombine.low %v833_v58, %v849_v41 }
 0x1ec   : > { %v921_v10 = vcombine.low %v865_v28, %v881_v61  ;;  %v2067_v46 = vcombine.low %v5622_v4, %v5630_v20  ;;  %v1057_v18 = vcombine.low %v5490_v19, %v5513_v7  ;;  %v905_v52 = vcombine.low %v840_v53, %v856_v51  ;;  %2383 = vrot.lane.b32.xlu0 %v5352_v0, %s4906_s18 }
 0x1ed   : > { %v955_v45 = vcombine.low %v904_v54, %v936_v13  ;;  %v1091_v48 = vcombine.low %v5526_v23, %v1072_v47  ;;  %v5661_v3 = vrot.slane %v889_v57, %v5023_v40  ;;  %2387 = vrot.lane.b32.xlu1 %v5317_v49, %s4906_s18  ;;  %v2083_v41 = vcombine.low %v5641_v56, %v5646_v5 }
 0x1ee   : > { %v5664_v58 = vrot.slane %v921_v10, %v5023_v40  ;;  %v3366_v19 = vcombine.low %v5432_v33, %v5456_v15  ;;  %v3398_v7 = vcombine.low %v5480_v29, %v5483_v39  ;;  %v3246_v61 = vcombine.low %v5551_v32, %v5581_v37 }
 0x1ef   : > { %7727 = vst [vmem:[#allocation28_spill] sm:$0xff] %v5661_v3  ;;  %v5676_v28 = vpack.i.bf16 %v1091_v48, %v955_v45  ;;  %v5681_v17 = vrot.slane %v1057_v18, %v5023_v40  ;;  %v913_v36 = vrot.slane %v905_v52, %v5023_v40  ;;  %v937_v1 = vcombine.low %v872_v35, %v888_v30 }
 0x1f0   : > { %7728 = vst [vmem:[#allocation29_spill] sm:$0xff] %v5664_v58  ;;  %v954_v62 = vcombine.high %v5661_v3, %v5664_v58  ;;  %v7731_v31 = vcombine.low %v5207_v16, %v5198_v9  ;;  %v1073_v60 = vcombine.low %v5507_v59, %v1024_v25  ;;  %v956_v50 = vcombine.high %v904_v54, %v936_v13 }
 0x1f1   : > { %7729 = vst [vmem:[#allocation30_spill] sm:$0xff] %v5676_v28  ;;  %7730 = vst [vmem:[#allocation31_spill] sm:$0xff] %v5681_v17  ;;  %2391 = vrot.lane.b32.xlu0 %v5338_v14, %s4906_s18  ;;  %v1090_v57 = vcombine.high %v5603_v34, %v5681_v17  ;;  %v1092_v10 = vcombine.high %v5526_v23, %v1072_v47  ;;  %v906_v18 = vcombine.high %v840_v53, %v856_v51 }
 0x1f2   : > { %v1049_v55 = vrot.slane %v7731_v31, %v5023_v40  ;;  %v938_v45 = vcombine.high %v872_v35, %v888_v30  ;;  %2395 = vrot.lane.b32.xlu1 %v5357_v11, %s4906_s18  ;;  %v945_v52 = vrot.slane %v937_v1, %v5023_v40  ;;  %v1081_v48 = vrot.slane %v1073_v60, %v5023_v40 }
 0x1f3   : > { %v7732_v54 = vcombine.high %v5207_v16, %v5198_v9  ;;  %v1074_v31 = vcombine.high %v5507_v59, %v1024_v25  ;;  %v5703_v6 = vpack.i.bf16 %v1090_v57, %v954_v62  ;;  %v5705_v28 = vpack.i.bf16 %v1092_v10, %v956_v50 }
 0x1f4   : > { %v920_v51 = vrot.slane %v906_v18, %v5023_v40  ;;  %v952_v23 = vrot.slane %v938_v45, %v5023_v40  ;;  %v957_v53 = vcombine.low %v913_v36, %v945_v52  ;;  %v1093_v30 = vcombine.low %v1049_v55, %v1081_v48 }
 0x1f5   : > { %v1056_v13 = vrot.slane %v7732_v54, %v5023_v40  ;;  %7733 = vst [vmem:[#allocation32_spill] sm:$0xff] %v5703_v6  ;;  %7734 = vst [vmem:[#allocation33_spill] sm:$0xff] %v5705_v28  ;;  %v1088_v35 = vrot.slane %v1074_v31, %v5023_v40  ;;  %v958_v47 = vcombine.high %v913_v36, %v945_v52  ;;  %2399 = vrot.lane.b32.xlu0 %v5413_v12, %s4906_s18  ;;  %v7747_v31 = vld [vmem:[#allocation10_spill] sm:$0xff] }
 0x1f6   : > { %v959_v9 = vcombine.low %v920_v51, %v952_v23  ;;  %v1094_v16 = vcombine.high %v1049_v55, %v1081_v48  ;;  %v960_v1 = vcombine.high %v920_v51, %v952_v23  ;;  %v7735_v59 = vcombine.high %v5363_v38, %v5386_v42  ;;  %2403 = vrot.lane.b32.xlu1 %v5382_v21, %s4906_s18  ;;  %v7740_v55 = vld [vmem:[#allocation25_spill] sm:$0xff] }
 0x1f7   : > { %v5720_v62 = vpack.i.bf16 %v1093_v30, %v957_v53  ;;  %v1095_v60 = vcombine.low %v1056_v13, %v1088_v35  ;;  %v1096_v50 = vcombine.high %v1056_v13, %v1088_v35  ;;  %v7738_v36 = vcombine.high %v5442_v26, %v5448_v2  ;;  %v7746_v13 = vld [vmem:[#allocation14_spill] sm:$0xff] }
 0x1f8   : > { %v5716_v25 = vrot.slane %v7735_v59, %v5023_v40  ;;  %v3262_v10 = vcombine.low %v7740_v55, %v5609_v44  ;;  %v5730_v18 = vpack.i.bf16 %v1094_v16, %v958_v47  ;;  %v7742_v45 = vcombine.low %v5363_v38, %v5386_v42  ;;  %v7750_v42 = vld [vmem:[#allocation8_spill] sm:$0xff]  ;;  %v7751_v35 = vld [vmem:[#allocation18_spill] sm:$0xff]  ;;  %v7753_v47 = vld [vmem:[#allocation23_spill] sm:$0xff] }
 0x1f9   : > { %7737 = vst [vmem:[#allocation35_spill] sm:$0xff] %v5720_v62  ;;  %v5726_v57 = vrot.slane %v7738_v36, %v5023_v40  ;;  %v7744_v48 = vcombine.low %v5442_v26, %v5448_v2  ;;  %v3382_v51 = vcombine.low %v7747_v31, %v7746_v13  ;;  %v5746_v23 = vpack.i.bf16 %v1095_v60, %v959_v9  ;;  %v7752_v26 = vld [vmem:[#allocation3_spill] sm:$0xff]  ;;  %v7754_v16 = vld [vmem:[#allocation4_spill] sm:$0xff] }
 0x1fa   : > { %7736 = vst [vmem:[#allocation34_spill] sm:$0xff] %v5716_v25  ;;  %7741 = vst [vmem:[#allocation37_spill] sm:$0xff] %v5730_v18  ;;  %v5736_v52 = vrot.slane %v7742_v45, %v5023_v40  ;;  %v5748_v53 = vpack.i.bf16 %v1096_v50, %v960_v1  ;;  %2407 = vrot.lane.b32.xlu0 %v7750_v42, %s4906_s18  ;;  %v5755_v38 = vrot.slane %v2067_v46, %v5009_v27 }
 0x1fb   : > { %7739 = vst [vmem:[#allocation36_spill] sm:$0xff] %v5726_v57  ;;  %v5742_v54 = vrot.slane %v7744_v48, %v5023_v40  ;;  %7748 = vst [vmem:[#allocation40_spill] sm:$0xff] %v5746_v23  ;;  %v3214_v2 = vcombine.low %v7752_v26, %v7751_v35  ;;  %v3230_v59 = vcombine.low %v7754_v16, %v7753_v47  ;;  %2769 = vrot.lane.b32.xlu1 %v5301_v24, %s4907_s19  ;;  %v7761_v48 = vld [vmem:[#allocation7_spill] sm:$0xff] }
 0x1fc   : > { %7743 = vst [vmem:[#allocation38_spill] sm:$0xff] %v5736_v52  ;;  %7749 = vst [vmem:[#allocation41_spill] sm:$0xff] %v5748_v53  ;;  %v5766_v1 = vrot.slane %v2083_v41, %v5009_v27  ;;  %v7755_v46 = vcombine.low %v5146_v43, %v5372_v63  ;;  %v5775_v50 = vrot.slane %v3398_v7, %v5009_v27  ;;  %v7760_v41 = vld [vmem:[#allocation6_spill] sm:$0xff]  ;;  %v7765_v53 = vld [vmem:[#allocation12_spill] sm:$0xff] }
 0x1fd   : > { %7745 = vst [vmem:[#allocation39_spill] sm:$0xff] %v5742_v54  ;;  %v5780_v45 = vrot.slane %v3246_v61, %v5009_v27  ;;  %v5783_v24 = vrot.slane %v3262_v10, %v5009_v27  ;;  %v7762_v30 = vcombine.high %v7760_v41, %v7761_v48  ;;  %v5798_v36 = vrot.slane %v3366_v19, %v5009_v27 }
 0x1fe   : > { %v5772_v60 = vrot.slane %v7755_v46, %v5009_v27  ;;  %7757 = vst [vmem:[#allocation42_spill] sm:$0xff] %v5775_v50  ;;  %v7764_v46 = vld [vmem:[#allocation11_spill] sm:$0xff]  ;;  %v5801_v61 = vrot.slane %v3382_v51, %v5009_v27  ;;  %v7770_v10 = vcombine.low %v7760_v41, %v7761_v48  ;;  %2773 = vrot.lane.b32.xlu0 %v5352_v0, %s4907_s19 }
 0x1ff   : > { %7758 = vst [vmem:[#allocation43_spill] sm:$0xff] %v5780_v45  ;;  %7759 = vst [vmem:[#allocation44_spill] sm:$0xff] %v5783_v24  ;;  %v5789_v9 = vrot.slane %v7762_v30, %v5023_v40  ;;  %v7766_v7 = vcombine.high %v7764_v46, %v7765_v53  ;;  %v7772_v30 = vcombine.low %v7764_v46, %v7765_v53  ;;  %2777 = vrot.lane.b32.xlu1 %v5317_v49, %s4907_s19 }
 0x200   : > { %7756 = vst [vmem:[#allocation8_spill] sm:$0xff] %v5772_v60  ;;  %7768 = vst [vmem:[#allocation11_spill] sm:$0xff] %v5798_v36  ;;  %v5807_v57 = vrot.slane %v7770_v10, %v5023_v40  ;;  %v5818_v19 = vrot.slane %v3214_v2, %v5009_v27  ;;  %v5821_v51 = vrot.slane %v3230_v59, %v5009_v27 }
 0x201   : > { %7763 = vst [vmem:[#allocation6_spill] sm:$0xff] %v5789_v9  ;;  %v5795_v18 = vrot.slane %v7766_v7, %v5023_v40  ;;  %7769 = vst [vmem:[#allocation12_spill] sm:$0xff] %v5801_v61  ;;  %v5813_v25 = vrot.slane %v7772_v30, %v5023_v40  ;;  %v2131_v53 = vcombine.low %v5755_v38, %v5766_v1 }
 0x202   : > { %7771 = vst [vmem:[#allocation45_spill] sm:$0xff] %v5807_v57  ;;  %7774 = vst [vmem:[#allocation47_spill] sm:$0xff] %v5818_v19  ;;  %v3446_v0 = vcombine.low %v5801_v61, %v5775_v50  ;;  %v3310_v46 = vcombine.low %v5780_v45, %v5783_v24  ;;  %v2099_v7 = vcombine.low %v5606_v22, %v5625_v8  ;;  %2781 = vrot.lane.b32.xlu0 %v5338_v14, %s4907_s19 }
 0x203   : > { %7767 = vst [vmem:[#allocation7_spill] sm:$0xff] %v5795_v18  ;;  %7773 = vst [vmem:[#allocation46_spill] sm:$0xff] %v5813_v25  ;;  %v3414_v49 = vcombine.low %v5772_v60, %v5798_v36  ;;  %v3278_v10 = vcombine.low %v5818_v19, %v5821_v51  ;;  %2785 = vrot.lane.b32.xlu1 %v5357_v11, %s4907_s19  ;;  %v5850_v30 = vrot.slane %v2131_v53, %v5023_v40 }
 0x204   : > { %7775 = vst [vmem:[#allocation48_spill] sm:$0xff] %v5821_v51  ;;  %v5853_v59 = vrot.slane %v3446_v0, %v5023_v40  ;;  %v5856_v48 = vrot.slane %v3310_v46, %v5023_v40  ;;  %v5863_v41 = vrot.slane %v2099_v7, %v5023_v40  ;;  %v7785_v46 = vld [vmem:[#allocation21_spill] sm:$0xff] }
 0x205   : > { %7776 = vst [vmem:[#allocation49_spill] sm:$0xff] %v5850_v30  ;;  %v5866_v11 = vrot.slane %v3414_v49, %v5023_v40  ;;  %v5871_v53 = vrot.slane %v3278_v10, %v5023_v40  ;;  %v7783_v10 = vld [vmem:[#allocation20_spill] sm:$0xff] }
 0x206   : > { %7777 = vst [vmem:[#allocation50_spill] sm:$0xff] %v5853_v59  ;;  %7778 = vst [vmem:[#allocation51_spill] sm:$0xff] %v5856_v48  ;;  %2789 = vrot.lane.b32.xlu0 %v5413_v12, %s4907_s19  ;;  %v7782_v12 = vld [vmem:[#allocation17_spill] sm:$0xff] }
 0x207   : > { %7779 = vst [vmem:[#allocation52_spill] sm:$0xff] %v5863_v41  ;;  %7780 = vst [vmem:[#allocation53_spill] sm:$0xff] %v5866_v11  ;;  %2793 = vrot.lane.b32.xlu1 %v5382_v21, %s4907_s19  ;;  %v7784_v21 = vld [vmem:[#allocation19_spill] sm:$0xff] }
 0x208   : > { %7781 = vst [vmem:[#allocation54_spill] sm:$0xff] %v5871_v53 }
 0x20a   : > { %2797 = vrot.lane.b32.xlu0 %v7750_v42, %s4907_s19 }
 0x20b   : > { %2377 = vrot.lane.b32.xlu1 %v7782_v12, %s4906_s18 }
 0x20e   : > { %2381 = vrot.lane.b32.xlu0 %v7783_v10, %s4906_s18 }
 0x20f   : > { %2385 = vrot.lane.b32.xlu1 %v7784_v21, %s4906_s18 }
 0x212   : > { %2389 = vrot.lane.b32.xlu0 %v7785_v46, %s4906_s18 }
 0x213   : > { %2393 = vrot.lane.b32.xlu1 %v5622_v4, %s4906_s18 }
 0x216   : > { %2397 = vrot.lane.b32.xlu0 %v5641_v56, %s4906_s18 }
 0x217   : > { %2401 = vrot.lane.b32.xlu1 %v5630_v20, %s4906_s18 }
 0x21a   : > { %2405 = vrot.lane.b32.xlu0 %v5646_v5, %s4906_s18  ;;  %v5903_v42 = vpop.permute.xlu1 %1192 }
 0x21b   : > { %2767 = vrot.lane.b32.xlu1 %v7782_v12, %s4907_s19 }
 0x21e   : > { %2771 = vrot.lane.b32.xlu0 %v7783_v10, %s4907_s19  ;;  %v5909_v49 = vpop.permute.xlu0 %1196  ;;  %v5911_v7 = vpop.permute.xlu1 %1200 }
 0x21f   : > { %2775 = vrot.lane.b32.xlu1 %v7784_v21, %s4907_s19  ;;  %v1374_v17 = vcombine.low %v5903_v42, %v5911_v7 }
 0x221   : > { %v5951_v11 = vrot.slane %v1374_v17, %v5009_v27 }
 0x222   : > { %2779 = vrot.lane.b32.xlu0 %v7785_v46, %s4907_s19  ;;  %v5917_v0 = vpop.permute.xlu0 %1204  ;;  %v5919_v2 = vpop.permute.xlu1 %1208 }
 0x223   : > { %2783 = vrot.lane.b32.xlu1 %v5622_v4, %s4907_s19  ;;  %v1390_v3 = vcombine.low %v5909_v49, %v5917_v0 }
 0x225   : > { %v5944_v45 = vrot.slane %v1390_v3, %v5009_v27 }
 0x226   : > { %2787 = vrot.lane.b32.xlu0 %v5641_v56, %s4907_s19  ;;  %v5925_v14 = vpop.permute.xlu0 %1212  ;;  %v5927_v58 = vpop.permute.xlu1 %1216 }
 0x227   : > { %2791 = vrot.lane.b32.xlu1 %v5630_v20, %s4907_s19  ;;  %v1406_v34 = vcombine.low %v5919_v2, %v5927_v58  ;;  %v1438_v51 = vcombine.low %v5951_v11, %v5944_v45 }
 0x229   : > { %v5954_v59 = vrot.slane %v1406_v34, %v5009_v27 }
 0x22a   : > { %2795 = vrot.lane.b32.xlu0 %v5646_v5, %s4907_s19  ;;  %v5939_v53 = vpop.permute.xlu0 %1220  ;;  %v5941_v48 = vpop.permute.xlu1 %1190 }
 0x22b   : > { %3558 = vrot.lane.b32.xlu1 %v5146_v43, %s4906_s18  ;;  %7786 = vst [vmem:[#allocation17_spill] sm:$0xff] %v5941_v48  ;;  %v1422_v24 = vcombine.low %v5925_v14, %v5939_v53  ;;  %7787 = vst [vmem:[#allocation20_spill] sm:$0xff] %v5954_v59 }
 0x22d   : > { %v5957_v19 = vrot.slane %v1422_v24, %v5009_v27  ;;  %v5979_v24 = vrot.slane %v1438_v51, %v5023_v40 }
 0x22e   : > { %3562 = vrot.lane.b32.xlu0 %v5432_v33, %s4906_s18  ;;  %v5961_v3 = vpop.permute.xlu0 %1194  ;;  %v5967_v50 = vpop.permute.xlu1 %1198 }
 0x22f   : > { %7788 = vst [vmem:[#allocation19_spill] sm:$0xff] %v5957_v19  ;;  %3566 = vrot.lane.b32.xlu1 %v5372_v63, %s4906_s18  ;;  %v1470_v61 = vcombine.low %v5954_v59, %v5957_v19  ;;  %7790 = vst [vmem:[#allocation55_spill] sm:$0xff] %v5979_v24  ;;  %v1238_v54 = vcombine.low %v5941_v48, %v5967_v50 }
 0x231   : > { %v5972_v34 = vrot.slane %v1470_v61, %v5023_v40  ;;  %v6027_v62 = vrot.slane %v1238_v54, %v5009_v27 }
 0x232   : > { %3570 = vrot.lane.b32.xlu0 %v5456_v15, %s4906_s18  ;;  %v5976_v17 = vpop.permute.xlu0 %1202  ;;  %v5981_v60 = vpop.permute.xlu1 %1206 }
 0x233   : > { %7789 = vst [vmem:[#allocation21_spill] sm:$0xff] %v5972_v34  ;;  %3574 = vrot.lane.b32.xlu1 %v7747_v31, %s4906_s18  ;;  %v1254_v51 = vcombine.low %v5961_v3, %v5976_v17  ;;  %7794 = vst [vmem:[#allocation59_spill] sm:$0xff] %v6027_v62 }
 0x235   : > { %v6017_v24 = vrot.slane %v1254_v51, %v5009_v27 }
 0x236   : > { %3578 = vrot.lane.b32.xlu0 %v5480_v29, %s4906_s18  ;;  %v5989_v36 = vpop.permute.xlu0 %1210  ;;  %v5991_v25 = vpop.permute.xlu1 %1214 }
 0x237   : > { %3582 = vrot.lane.b32.xlu1 %v7746_v13, %s4906_s18  ;;  %v1270_v57 = vcombine.low %v5981_v60, %v5991_v25  ;;  %7792 = vst [vmem:[#allocation57_spill] sm:$0xff] %v6017_v24 }
 0x239   : > { %v6020_v34 = vrot.slane %v1270_v57, %v5009_v27  ;;  %v1302_v57 = vcombine.low %v6027_v62, %v6017_v24 }
 0x23a   : > { %3586 = vrot.lane.b32.xlu0 %v5483_v39, %s4906_s18  ;;  %v6001_v18 = vpop.permute.xlu0 %1218  ;;  %v6005_v9 = vpop.permute.xlu1 %1582 }
 0x23b   : > { %3556 = vrot.lane.b32.xlu1 %v7752_v26, %s4906_s18  ;;  %v1286_v61 = vcombine.low %v5989_v36, %v6001_v18  ;;  %7793 = vst [vmem:[#allocation58_spill] sm:$0xff] %v6020_v34  ;;  %v6049_v54 = vrot.slane %v1302_v57, %v5023_v40 }
 0x23d   : > { %v6012_v52 = vrot.slane %v1286_v61, %v5009_v27  ;;  %7797 = vst [vmem:[#allocation62_spill] sm:$0xff] %v6049_v54 }
 0x23e   : > { %3560 = vrot.lane.b32.xlu0 %v7754_v16, %s4906_s18  ;;  %v6022_v23 = vpop.permute.xlu0 %1586  ;;  %v6024_v28 = vpop.permute.xlu1 %1590 }
 0x23f   : > { %7791 = vst [vmem:[#allocation56_spill] sm:$0xff] %v6012_v52  ;;  %3564 = vrot.lane.b32.xlu1 %v7751_v35, %s4906_s18  ;;  %v1334_v61 = vcombine.low %v6020_v34, %v6012_v52  ;;  %v1764_v48 = vcombine.low %v6005_v9, %v6024_v28 }
 0x241   : > { %v6042_v59 = vrot.slane %v1334_v61, %v5023_v40 }
 0x242   : > { %3568 = vrot.lane.b32.xlu0 %v7753_v47, %s4906_s18  ;;  %v6037_v51 = vpop.permute.xlu0 %1594  ;;  %v6039_v6 = vpop.permute.xlu1 %1598 }
 0x243   : > { %3572 = vrot.lane.b32.xlu1 %v5551_v32, %s4906_s18  ;;  %7795 = vst [vmem:[#allocation60_spill] sm:$0xff] %v6039_v6  ;;  %7796 = vst [vmem:[#allocation61_spill] sm:$0xff] %v6042_v59  ;;  %v1780_v62 = vcombine.low %v6022_v23, %v6037_v51 }
 0x246   : > { %3576 = vrot.lane.b32.xlu0 %v7740_v55, %s4906_s18  ;;  %v6051_v19 = vpop.permute.xlu0 %1602  ;;  %v6053_v34 = vpop.permute.xlu1 %1606 }
 0x247   : > { %3580 = vrot.lane.b32.xlu1 %v5581_v37, %s4906_s18  ;;  %7798 = vst [vmem:[#allocation63_spill] sm:$0xff] %v6051_v19  ;;  %7799 = vst [vmem:[#allocation64_spill] sm:$0xff] %v6053_v34  ;;  %v1796_v57 = vcombine.low %v6039_v6, %v6053_v34 }
 0x249   : > { %v6084_v6 = vrot.slane %v1796_v57, %v5009_v27 }
 0x24a   : > { %3584 = vrot.lane.b32.xlu0 %v5609_v44, %s4906_s18  ;;  %v6065_v24 = vpop.permute.xlu0 %1610  ;;  %v6069_v39 = vpop.permute.xlu1 %1580 }
 0x24b   : > { %3946 = vrot.lane.b32.xlu1 %v7752_v26, %s4907_s19  ;;  %7800 = vst [vmem:[#allocation65_spill] sm:$0xff] %v6065_v24  ;;  %v1812_v52 = vcombine.low %v6051_v19, %v6065_v24  ;;  %v6081_v26 = vrot.slane %v1780_v62, %v5009_v27  ;;  %7801 = vst [vmem:[#allocation66_spill] sm:$0xff] %v6084_v6  ;;  %v6091_v24 = vrot.slane %v1764_v48, %v5009_v27 }
 0x24c   : > { %v2068_v48 = vcombine.high %v5622_v4, %v5630_v20 }
 0x24d   : > { %v6076_v61 = vrot.slane %v1812_v52, %v5009_v27  ;;  %v1828_v62 = vcombine.low %v6091_v24, %v6081_v26 }
 0x24e   : > { %3948 = vrot.lane.b32.xlu0 %v5146_v43, %s4907_s19  ;;  %v6086_v34 = vpop.permute.xlu0 %1584  ;;  %v6088_v19 = vpop.permute.xlu1 %1588 }
 0x24f   : > { %3950 = vrot.lane.b32.xlu1 %v7754_v16, %s4907_s19  ;;  %v1860_v52 = vcombine.low %v6084_v6, %v6076_v61  ;;  %v2084_v16 = vcombine.high %v5641_v56, %v5646_v5  ;;  %v6121_v4 = vrot.slane %v1828_v62, %v5023_v40  ;;  %v2082_v5 = vrot.slane %v2068_v48, %v5009_v27 }
 0x250   : > { %v2132_v62 = vcombine.high %v5755_v38, %v5766_v1 }
 0x251   : > { %v6110_v6 = vrot.slane %v1860_v52, %v5023_v40  ;;  %7803 = vst [vmem:[#allocation68_spill] sm:$0xff] %v6121_v4  ;;  %v2098_v52 = vrot.slane %v2084_v16, %v5009_v27 }
 0x252   : > { %3952 = vrot.lane.b32.xlu0 %v5432_v33, %s4907_s19  ;;  %v6101_v57 = vpop.permute.xlu0 %1592  ;;  %v6103_v43 = vpop.permute.xlu1 %1596  ;;  %v2036_v33 = vcombine.high %v7782_v12, %v7784_v21  ;;  %v2100_v12 = vcombine.high %v5606_v22, %v5625_v8  ;;  %v1391_v22 = vcombine.high %v5909_v49, %v5917_v0  ;;  %v1628_v8 = vcombine.low %v6069_v39, %v6088_v19 }
 0x253   : > { %3954 = vrot.lane.b32.xlu1 %v7751_v35, %s4907_s19  ;;  %7802 = vst [vmem:[#allocation67_spill] sm:$0xff] %v6110_v6  ;;  %v2052_v35 = vcombine.high %v7783_v10, %v7785_v46  ;;  %v2147_v16 = vcombine.low %v2082_v5, %v2098_v52  ;;  %v2148_v4 = vcombine.high %v2082_v5, %v2098_v52 }
 0x254   : > { %v2050_v46 = vrot.slane %v2036_v33, %v5009_v27  ;;  %v6179_v0 = vrot.slane %v2100_v12, %v5023_v40  ;;  %v1423_v5 = vcombine.high %v5925_v14, %v5939_v53 }
 0x255   : > { %v2066_v10 = vrot.slane %v2052_v35, %v5009_v27  ;;  %v1644_v35 = vcombine.low %v6086_v34, %v6101_v57 }
 0x256   : > { %3956 = vrot.lane.b32.xlu0 %v5372_v63, %s4907_s19  ;;  %v6123_v20 = vpop.permute.xlu0 %1600  ;;  %v6125_v56 = vpop.permute.xlu1 %1604  ;;  %v6160_v63 = vrot.slane %v2132_v62, %v5023_v40 }
 0x257   : > { %3958 = vrot.lane.b32.xlu1 %v7753_v47, %s4907_s19  ;;  %v2115_v33 = vcombine.low %v2050_v46, %v2066_v10  ;;  %v1660_v38 = vcombine.low %v6103_v43, %v6125_v56  ;;  %v1375_v47 = vcombine.high %v5903_v42, %v5911_v7  ;;  %v2116_v49 = vcombine.high %v2050_v46, %v2066_v10 }
 0x258   : > { %v6182_v62 = vrot.slane %v1644_v35, %v5009_v27  ;;  %v1405_v10 = vrot.slane %v1391_v22, %v5009_v27  ;;  %v6202_v35 = vrot.slane %v1628_v8, %v5009_v27  ;;  %v1287_v22 = vcombine.high %v5989_v36, %v6001_v18 }
 0x259   : > { %v1389_v52 = vrot.slane %v1375_v47, %v5009_v27  ;;  %v1407_v46 = vcombine.high %v5919_v2, %v5927_v58  ;;  %v1255_v47 = vcombine.high %v5961_v3, %v5976_v17  ;;  %v1271_v18 = vcombine.high %v5981_v60, %v5991_v25  ;;  %v7811_v3 = vld [vmem:[#allocation17_spill] sm:$0xff]  ;;  %v7813_v25 = vld [vmem:[#allocation16_spill] sm:$0xff] }
 0x25a   : > { %3960 = vrot.lane.b32.xlu0 %v5456_v15, %s4907_s19  ;;  %v6137_v21 = vpop.permute.xlu0 %1608  ;;  %v6141_v48 = vpop.permute.xlu1 %2379  ;;  %v6236_v58 = vrot.slane %v2116_v49, %v5023_v40  ;;  %v6239_v2 = vrot.slane %v2148_v4, %v5023_v40  ;;  %v1239_v17 = vcombine.high %v7811_v3, %v5967_v50  ;;  %v1301_v49 = vrot.slane %v1287_v22, %v5009_v27 }
 0x25b   : > { %3962 = vrot.lane.b32.xlu1 %v5551_v32, %s4907_s19  ;;  %7804 = vst [vmem:[#allocation69_spill] sm:$0xff] %v6141_v48  ;;  %v1676_v15 = vcombine.low %v6123_v20, %v6137_v21  ;;  %v1454_v14 = vcombine.low %v1389_v52, %v1405_v10  ;;  %v1455_v53 = vcombine.high %v1389_v52, %v1405_v10  ;;  %v7814_v52 = vld [vmem:[#allocation30_spill] sm:$0xff] }
 0x25c   : > { %v1421_v50 = vrot.slane %v1407_v46, %v5009_v27  ;;  %v1269_v3 = vrot.slane %v1255_v47, %v5009_v27  ;;  %v1285_v22 = vrot.slane %v1271_v18, %v5009_v27  ;;  %v7821_v47 = vld [vmem:[#allocation20_spill] sm:$0xff] }
 0x25d   : > { %v7824_v18 = vld [vmem:[#allocation32_spill] sm:$0xff] }
 0x25e   : > { %3964 = vrot.lane.b32.xlu0 %v7747_v31, %s4907_s19  ;;  %v6155_v1 = vpop.permute.xlu0 %2383  ;;  %v6167_v31 = vrot.slane %v1676_v15, %v5009_v27  ;;  %v6185_v15 = vrot.slane %v1660_v38, %v5009_v27  ;;  %v1439_v38 = vcombine.high %v5951_v11, %v5944_v45  ;;  %v1692_v45 = vcombine.low %v6202_v35, %v6182_v62 }
 0x25f   : > { %3966 = vrot.lane.b32.xlu1 %v7740_v55, %s4907_s19  ;;  %v6157_v32 = vpop.permute.xlu1 %2387  ;;  %v6172_v55 = vrot.slane %v2147_v16, %v5023_v40  ;;  %v6190_v16 = vrot.slane %v2115_v33, %v5023_v40 }
 0x260   : > { %7805 = vst [vmem:[#allocation70_spill] sm:$0xff] %v6157_v32  ;;  %v1724_v33 = vcombine.low %v6185_v15, %v6167_v31  ;;  %v6249_v60 = vrot.slane %v1439_v38, %v5023_v40  ;;  %v2561_v4 = vcombine.low %v6141_v48, %v6157_v32  ;;  %v6262_v38 = vrot.slane %v1692_v45, %v5023_v40 }
 0x261   : > { %7806 = vst [vmem:[#allocation71_spill] sm:$0xff] %v6172_v55  ;;  %7807 = vst [vmem:[#allocation72_spill] sm:$0xff] %v6190_v16  ;;  %v1253_v45 = vrot.slane %v1239_v17, %v5009_v27  ;;  %v7822_v16 = vld [vmem:[#allocation57_spill] sm:$0xff]  ;;  %v7828_v17 = vld [vmem:[#allocation35_spill] sm:$0xff] }
 0x262   : > { %3968 = vrot.lane.b32.xlu0 %v5480_v29, %s4907_s19  ;;  %v6244_v42 = vrot.slane %v1724_v33, %v5023_v40  ;;  %v1437_v33 = vrot.slane %v1423_v5, %v5009_v27  ;;  %7815 = vst [vmem:[#allocation30_spill] sm:$0xff] %v6262_v38  ;;  %v7820_v5 = vld [vmem:[#allocation19_spill] sm:$0xff] }
 0x263   : > { %3970 = vrot.lane.b32.xlu1 %v5581_v37, %s4907_s19  ;;  %v6187_v29 = vpop.permute.xlu0 %2391  ;;  %v1471_v55 = vcombine.high %v7821_v47, %v7820_v5  ;;  %v1318_v47 = vcombine.low %v1253_v45, %v1269_v3 }
 0x264   : > { %v6192_v7 = vpop.permute.xlu1 %2395  ;;  %v2577_v36 = vcombine.low %v6155_v1, %v6187_v29  ;;  %7812 = vst [vmem:[#allocation17_spill] sm:$0xff] %v6244_v42 }
 0x265   : > { %7808 = vst [vmem:[#allocation73_spill] sm:$0xff] %v6192_v7 }
 0x266   : > { %3972 = vrot.lane.b32.xlu0 %v7746_v13, %s4907_s19  ;;  %v7817_v13 = vld [vmem:[#allocation56_spill] sm:$0xff]  ;;  %v6270_v37 = vrot.slane %v2577_v36, %v5009_v27  ;;  %v1350_v36 = vcombine.low %v1285_v22, %v1301_v49 }
 0x267   : > { %3974 = vrot.lane.b32.xlu1 %v5609_v44, %s4907_s19  ;;  %v6227_v11 = vpop.permute.xlu0 %2399 }
 0x268   : > { %7809 = vst [vmem:[#allocation74_spill] sm:$0xff] %v6227_v11  ;;  %v6233_v8 = vpop.permute.xlu1 %2403  ;;  %7819 = vst [vmem:[#allocation56_spill] sm:$0xff] %v6270_v37 }
 0x269   : > { %7810 = vst [vmem:[#allocation75_spill] sm:$0xff] %v6233_v8  ;;  %v2593_v10 = vcombine.low %v6192_v7, %v6233_v8  ;;  %v7823_v7 = vld [vmem:[#allocation59_spill] sm:$0xff] }
 0x26a   : > { %3976 = vrot.lane.b32.xlu0 %v7813_v25, %s4907_s19  ;;  %v7818_v25 = vld [vmem:[#allocation58_spill] sm:$0xff]  ;;  %v1303_v8 = vcombine.high %v7823_v7, %v7822_v16  ;;  %v1486_v16 = vcombine.low %v1421_v50, %v1437_v33  ;;  %v1487_v7 = vcombine.high %v1421_v50, %v1437_v33  ;;  %v6309_v50 = vrot.slane %v1455_v53, %v5023_v40 }
 0x26b   : > { %4578 = vrot.lane.b32.xlu1 %v7814_v52, %s4902_s16  ;;  %v1335_v44 = vcombine.high %v7818_v25, %v7817_v13  ;;  %v6286_v25 = vrot.slane %v2561_v4, %v5009_v27  ;;  %v1319_v33 = vcombine.high %v1253_v45, %v1269_v3 }
 0x26c   : > { %v6264_v12 = vpop.permute.xlu0 %2407  ;;  %v1494_v32 = vrot.slane %v1486_v16, %v5023_v40 }
 0x26d   : > { %7816 = vst [vmem:[#allocation76_spill] sm:$0xff] %v6264_v12  ;;  %v2609_v46 = vcombine.low %v6227_v11, %v6264_v12  ;;  %v6274_v52 = vpop.permute.xlu1 %2769  ;;  %7825 = vst [vmem:[#allocation58_spill] sm:$0xff] %v6286_v25  ;;  %v6289_v11 = vrot.slane %v2593_v10, %v5009_v27  ;;  %v1349_v13 = vrot.slane %v1335_v44, %v5023_v40  ;;  %v7829_v44 = vld [vmem:[#allocation33_spill] sm:$0xff] }
 0x26e   : > { %4573 = vrot.lane.b32.xlu0 %v7824_v18, %s4900_s14  ;;  %v1351_v18 = vcombine.high %v1285_v22, %v1301_v49  ;;  %v2625_v4 = vcombine.low %v6286_v25, %v6270_v37  ;;  %v1485_v49 = vrot.slane %v1471_v55, %v5023_v40  ;;  %v1317_v22 = vrot.slane %v1303_v8, %v5023_v40 }
 0x26f   : > { %7826 = vst [vmem:[#allocation19_spill] sm:$0xff] %v6289_v11  ;;  %v6292_v5 = vrot.slane %v2609_v46, %v5009_v27  ;;  %4588 = vrot.lane.b32.xlu1 %v7828_v17, %s4901_s15  ;;  %v1367_v46 = vcombine.high %v6049_v54, %v6042_v59  ;;  %v1462_v17 = vrot.slane %v1454_v14, %v5023_v40  ;;  %v7831_v59 = vld [vmem:[#allocation40_spill] sm:$0xff]  ;;  %v7832_v14 = vld [vmem:[#allocation21_spill] sm:$0xff]  ;;  %v7833_v54 = vld [vmem:[#allocation55_spill] sm:$0xff] }
 0x270   : > { %v6296_v12 = vpop.permute.xlu0 %2773  ;;  %v1358_v25 = vrot.slane %v1350_v36, %v5023_v40  ;;  %v1503_v53 = vcombine.high %v7833_v54, %v7832_v14  ;;  %v6325_v55 = vrot.slane %v1487_v7, %v5023_v40  ;;  %v6328_v3 = vrot.slane %v1351_v18, %v5023_v40  ;;  %v7835_v14 = vld [vmem:[#allocation65_spill] sm:$0xff]  ;;  %v7836_v54 = vld [vmem:[#allocation63_spill] sm:$0xff] }
 0x271   : > { %7827 = vst [vmem:[#allocation20_spill] sm:$0xff] %v6292_v5  ;;  %v2657_v10 = vcombine.low %v6289_v11, %v6292_v5  ;;  %v6303_v48 = vpop.permute.xlu1 %2777  ;;  %v1781_v8 = vcombine.high %v6022_v23, %v6037_v51  ;;  %v1326_v36 = vrot.slane %v1318_v47, %v5023_v40  ;;  %v1369_v16 = vcombine.high %v1317_v22, %v1349_v13  ;;  %v7837_v51 = vld [vmem:[#allocation37_spill] sm:$0xff] }
 0x272   : > { %4583 = vrot.lane.b32.xlu0 %v7829_v44, %s4898_s12  ;;  %v4607_v44 = vpack.i.bf16 %v1367_v46, %v1503_v53  ;;  %v6341_v7 = vrot.slane %v1319_v33, %v5023_v40  ;;  %v1765_v18 = vcombine.high %v6005_v9, %v6024_v28  ;;  %v1813_v23 = vcombine.high %v7836_v54, %v7835_v14  ;;  %v7838_v28 = vld [vmem:[#allocation64_spill] sm:$0xff] }
 0x273   : > { %v6317_v37 = vrot.slane %v2657_v10, %v5023_v40  ;;  %4598 = vrot.lane.b32.xlu1 %v7831_v59, %s4899_s13  ;;  %v6336_v59 = vrot.slane %v2625_v4, %v5023_v40  ;;  %v1505_v47 = vcombine.high %v6249_v60, %v1485_v49  ;;  %v1368_v4 = vcombine.low %v1317_v22, %v1349_v13  ;;  %v7839_v9 = vld [vmem:[#allocation60_spill] sm:$0xff]  ;;  %v7840_v13 = vld [vmem:[#allocation66_spill] sm:$0xff] }
 0x274   : > { %v6332_v45 = vpop.permute.xlu0 %2781  ;;  %v1371_v11 = vcombine.high %v1326_v36, %v1358_v25  ;;  %v1370_v46 = vcombine.low %v1326_v36, %v1358_v25  ;;  %v6354_v53 = vrot.slane %v1781_v8, %v5009_v27  ;;  %v1797_v5 = vcombine.high %v7839_v9, %v7838_v28 }
 0x275   : > { %7830 = vst [vmem:[#allocation57_spill] sm:$0xff] %v6317_v37  ;;  %7834 = vst [vmem:[#allocation59_spill] sm:$0xff] %v6336_v59  ;;  %v6338_v10 = vpop.permute.xlu1 %2785  ;;  %v1504_v14 = vcombine.low %v6249_v60, %v1485_v49  ;;  %v1861_v22 = vcombine.high %v7840_v13, %v6076_v61  ;;  %v4617_v36 = vpack.i.bf16 %v1369_v16, %v1505_v47  ;;  %v7841_v60 = vld [vmem:[#allocation41_spill] sm:$0xff] }
 0x276   : > { %4593 = vrot.lane.b32.xlu0 %v7837_v51, %s4896_s10  ;;  %v1372_v51 = vcombine.low %v6341_v7, %v6328_v3  ;;  %v1506_v33 = vcombine.low %v1462_v17, %v1494_v32  ;;  %v1779_v8 = vrot.slane %v1765_v18, %v5009_v27  ;;  %v1829_v28 = vcombine.high %v6091_v24, %v6081_v26 }
 0x277   : > { %4608 = vrot.lane.b32.xlu1 %v4607_v44, %s4900_s14  ;;  %v1507_v44 = vcombine.high %v1462_v17, %v1494_v32  ;;  %v1827_v9 = vrot.slane %v1813_v23, %v5009_v27  ;;  %v1508_v49 = vcombine.low %v6309_v50, %v6325_v55  ;;  %v4612_v61 = vpack.i.bf16 %v1368_v4, %v1504_v14 }
 0x278   : > { %v6358_v54 = vpop.permute.xlu0 %2789  ;;  %v4622_v16 = vpack.i.bf16 %v1370_v46, %v1506_v33  ;;  %v1509_v32 = vcombine.high %v6309_v50, %v6325_v55  ;;  %v1844_v17 = vcombine.low %v1779_v8, %v6354_v53  ;;  %v1811_v26 = vrot.slane %v1797_v5, %v5009_v27 }
 0x279   : > { %v6365_v25 = vpop.permute.xlu1 %2793  ;;  %v4627_v13 = vpack.i.bf16 %v1371_v11, %v1507_v44  ;;  %v1677_v24 = vcombine.high %v6123_v20, %v6137_v21  ;;  %v4637_v23 = vpack.i.bf16 %v1372_v51, %v1508_v49  ;;  %v1845_v47 = vcombine.high %v1779_v8, %v6354_v53 }
 0x27a   : > { %4603 = vrot.lane.b32.xlu0 %v7841_v60, %s4897_s11  ;;  %v1725_v11 = vcombine.high %v6185_v15, %v6167_v31  ;;  %v6395_v5 = vrot.slane %v1829_v28, %v5023_v40  ;;  %v1876_v20 = vcombine.low %v1811_v26, %v1827_v9  ;;  %v1645_v21 = vcombine.high %v6086_v34, %v6101_v57 }
 0x27b   : > { %4618 = vrot.lane.b32.xlu1 %v4617_v36, %s4898_s12  ;;  %v6386_v36 = vrot.slane %v1861_v22, %v5023_v40  ;;  %v1661_v4 = vcombine.high %v6103_v43, %v6125_v56  ;;  %v1877_v46 = vcombine.high %v1811_v26, %v1827_v9  ;;  %v1693_v31 = vcombine.high %v6202_v35, %v6182_v62  ;;  %v7842_v56 = vld [vmem:[#allocation68_spill] sm:$0xff]  ;;  %v7843_v26 = vld [vmem:[#allocation38_spill] sm:$0xff] }
 0x27c   : > { %v6382_v18 = vpop.permute.xlu0 %2797  ;;  %v2967_v15 = vcombine.low %v6296_v12, %v6332_v45  ;;  %v2983_v33 = vcombine.low %v6338_v10, %v6365_v25  ;;  %v1629_v34 = vcombine.high %v6069_v39, %v6088_v19  ;;  %v1691_v57 = vrot.slane %v1677_v24, %v5009_v27  ;;  %v7844_v24 = vld [vmem:[#allocation39_spill] sm:$0xff] }
 0x27d   : > { %v2999_v50 = vcombine.low %v6358_v54, %v6382_v18  ;;  %v6392_v55 = vpop.permute.xlu1 %2377  ;;  %v1893_v53 = vcombine.high %v7842_v56, %v6110_v6  ;;  %v1373_v62 = vcombine.high %v6341_v7, %v6328_v3  ;;  %v6419_v35 = vrot.slane %v1725_v11, %v5023_v40 }
 0x27e   : > { %4613 = vrot.lane.b32.xlu0 %v4612_v61, %s4902_s16  ;;  %v2951_v14 = vcombine.low %v6274_v52, %v6303_v48  ;;  %v1894_v19 = vcombine.low %v6395_v5, %v6386_v36  ;;  %v6431_v22 = vrot.slane %v1845_v47, %v5023_v40  ;;  %v6434_v44 = vrot.slane %v1876_v20, %v5023_v40 }
 0x27f   : > { %4628 = vrot.lane.b32.xlu1 %v4627_v13, %s4896_s10  ;;  %v6424_v51 = vrot.slane %v2999_v50, %v5009_v27  ;;  %v1659_v3 = vrot.slane %v1645_v21, %v5009_v27  ;;  %v1675_v7 = vrot.slane %v1661_v4, %v5009_v27  ;;  %v1891_v8 = vrot.slane %v1877_v46, %v5023_v40  ;;  %v7847_v4 = vld [vmem:[#allocation36_spill] sm:$0xff] }
 0x280   : > { %v6412_v43 = vpop.permute.xlu0 %2381  ;;  %v1707_v28 = vrot.slane %v1693_v31, %v5023_v40  ;;  %v6442_v9 = vrot.slane %v2967_v15, %v5009_v27  ;;  %v6445_v60 = vrot.slane %v2983_v33, %v5009_v27  ;;  %v1643_v49 = vrot.slane %v1629_v34, %v5009_v27 }
 0x281   : > { %v6426_v39 = vpop.permute.xlu1 %2385  ;;  %v1740_v61 = vcombine.low %v1675_v7, %v1691_v57  ;;  %v1757_v11 = vcombine.high %v6262_v38, %v6244_v42  ;;  %v6457_v50 = vrot.slane %v2951_v14, %v5009_v27  ;;  %v1852_v33 = vrot.slane %v1844_v17, %v5023_v40 }
 0x282   : > { %4623 = vrot.lane.b32.xlu0 %v4622_v16, %s4901_s15  ;;  %v7845_v16 = vcombine.high %v7843_v26, %v7844_v24  ;;  %v3047_v20 = vcombine.low %v6445_v60, %v6424_v51  ;;  %v1758_v15 = vcombine.low %v1707_v28, %v6419_v35  ;;  %v1708_v34 = vcombine.low %v1643_v49, %v1659_v3  ;;  %v7862_v24 = vld [vmem:[#allocation19_spill] sm:$0xff] }
 0x283   : > { %4638 = vrot.lane.b32.xlu1 %v4637_v23, %s4899_s13  ;;  %v7846_v23 = vld [vmem:[#allocation34_spill] sm:$0xff]  ;;  %v4652_v42 = vpack.i.bf16 %v1373_v62, %v1509_v32  ;;  %v1896_v14 = vcombine.low %v1852_v33, %v6434_v44 }
 0x284   : > { %v6449_v13 = vpop.permute.xlu0 %2389  ;;  %v4632_v47 = vpack.i.bf16 %v7845_v16, %v1893_v53  ;;  %v7848_v46 = vcombine.low %v7846_v23, %v7847_v4  ;;  %v1895_v53 = vcombine.high %v6395_v5, %v6386_v36  ;;  %v3015_v16 = vcombine.low %v6457_v50, %v6442_v9 }
 0x285   : > { %v6461_v21 = vpop.permute.xlu1 %2393  ;;  %v7849_v36 = vcombine.high %v5863_v41, %v5850_v30  ;;  %v6487_v6 = vrot.slane %v3047_v20, %v5023_v40  ;;  %v2441_v32 = vcombine.low %v6412_v43, %v6449_v13  ;;  %v1716_v17 = vrot.slane %v1708_v34, %v5023_v40  ;;  %v7857_v34 = vld [vmem:[#allocation46_spill] sm:$0xff] }
 0x286   : > { %v4647_v31 = vpack.i.bf16 %v7848_v46, %v1894_v19  ;;  %4633 = vrot.lane.b32.xlu0 %v4632_v47, %s4900_s14  ;;  %v1898_v19 = vcombine.low %v6431_v22, %v1891_v8  ;;  %v1741_v46 = vcombine.high %v1675_v7, %v1691_v57  ;;  %v1748_v47 = vrot.slane %v1740_v61, %v5023_v40 }
 0x287   : > { %v4642_v5 = vpack.i.bf16 %v7849_v36, %v1757_v11  ;;  %7850 = vst [vmem:[#allocation32_spill] sm:$0xff] %v6487_v6  ;;  %v7851_v57 = vcombine.low %v6179_v0, %v6160_v63  ;;  %v1759_v61 = vcombine.high %v1707_v28, %v6419_v35  ;;  %v7852_v11 = vcombine.high %v7846_v23, %v7847_v4  ;;  %v7854_v28 = vld [vmem:[#allocation7_spill] sm:$0xff] }
 0x288   : > { %4648 = vrot.lane.b32.xlu1 %v4647_v31, %s4902_s16  ;;  %v6480_v38 = vpop.permute.xlu0 %2397  ;;  %v1709_v31 = vcombine.high %v1643_v49, %v1659_v3  ;;  %v1899_v36 = vcombine.high %v6431_v22, %v1891_v8  ;;  %v6504_v30 = vrot.slane %v3015_v16, %v5023_v40  ;;  %v2425_v41 = vcombine.low %v6392_v55, %v6426_v39  ;;  %v7853_v3 = vld [vmem:[#allocation6_spill] sm:$0xff]  ;;  %v7856_v8 = vld [vmem:[#allocation45_spill] sm:$0xff] }
 0x289   : > { %v6491_v62 = vpop.permute.xlu1 %2401  ;;  %v4657_v7 = vpack.i.bf16 %v7851_v57, %v1758_v15  ;;  %v4662_v20 = vpack.i.bf16 %v7852_v11, %v1895_v53  ;;  %v7855_v49 = vcombine.low %v7853_v3, %v7854_v28  ;;  %v1755_v23 = vrot.slane %v1741_v46, %v5023_v40 }
 0x28a   : > { %4643 = vrot.lane.b32.xlu0 %v4642_v5, %s4900_s14  ;;  %v2457_v35 = vcombine.low %v6461_v21, %v6491_v62  ;;  %v1760_v22 = vcombine.low %v1716_v17, %v1748_v47  ;;  %v7858_v53 = vcombine.low %v7856_v8, %v7857_v34  ;;  %v1897_v5 = vcombine.high %v1852_v33, %v6434_v44 }
 0x28b   : > { %v4692_v15 = vpack.i.bf16 %v7855_v49, %v1898_v19  ;;  %v6522_v57 = vrot.slane %v2441_v32, %v5009_v27  ;;  %v7859_v19 = vcombine.high %v6179_v0, %v6160_v63  ;;  %v1723_v56 = vrot.slane %v1709_v31, %v5023_v40  ;;  %v7870_v49 = vld [vmem:[#allocation72_spill] sm:$0xff] }
 0x28c   : > { %4658 = vrot.lane.b32.xlu1 %v4657_v7, %s4902_s16  ;;  %v6515_v4 = vpop.permute.xlu0 %2405  ;;  %v4672_v16 = vpack.i.bf16 %v7858_v53, %v1896_v14  ;;  %v2578_v44 = vcombine.high %v6155_v1, %v6187_v29  ;;  %v7860_v33 = vcombine.high %v7853_v3, %v7854_v28  ;;  %v1761_v32 = vcombine.high %v1716_v17, %v1748_v47  ;;  %v7861_v53 = vld [vmem:[#allocation20_spill] sm:$0xff]  ;;  %v7864_v1 = vld [vmem:[#allocation69_spill] sm:$0xff]  ;;  %v7866_v3 = vld [vmem:[#allocation58_spill] sm:$0xff] }
 0x28d   : > { %v2473_v7 = vcombine.low %v6480_v38, %v6515_v4  ;;  %v6526_v11 = vpop.permute.xlu1 %2767  ;;  %v4667_v46 = vpack.i.bf16 %v7859_v19, %v1759_v61  ;;  %v2658_v63 = vcombine.high %v7862_v24, %v7861_v53  ;;  %v6545_v0 = vrot.slane %v2425_v41, %v5009_v27  ;;  %v7869_v19 = vld [vmem:[#allocation73_spill] sm:$0xff] }
 0x28e   : > { %4653 = vrot.lane.b32.xlu0 %v4652_v42, %s4897_s11  ;;  %v6540_v14 = vpack.i.bf16 %v7860_v33, %v1899_v36  ;;  %v6548_v61 = vrot.slane %v2457_v35, %v5009_v27  ;;  %v7865_v36 = vld [vmem:[#allocation56_spill] sm:$0xff]  ;;  %v7867_v41 = vcombine.high %v7856_v8, %v7857_v34  ;;  %v1762_v28 = vcombine.low %v1723_v56, %v1755_v23  ;;  %v7868_v35 = vld [vmem:[#allocation75_spill] sm:$0xff]  ;;  %v7874_v34 = vld [vmem:[#allocation74_spill] sm:$0xff] }
 0x28f   : > { %v6551_v31 = vrot.slane %v2473_v7, %v5009_v27  ;;  %v2626_v17 = vcombine.high %v7866_v3, %v7865_v36  ;;  %v2594_v33 = vcombine.high %v7869_v19, %v7868_v35  ;;  %v2489_v7 = vcombine.low %v6545_v0, %v6522_v57  ;;  %v7871_v36 = vld [vmem:[#allocation71_spill] sm:$0xff]  ;;  %v7873_v8 = vld [vmem:[#allocation76_spill] sm:$0xff] }
 0x290   : > { %4668 = vrot.lane.b32.xlu1 %v4667_v46, %s4898_s12  ;;  %v6558_v47 = vpop.permute.xlu0 %2771  ;;  %v4682_v24 = vpack.i.bf16 %v7867_v41, %v1897_v5  ;;  %v7872_v3 = vcombine.low %v7870_v49, %v7871_v36  ;;  %v6575_v26 = vrot.slane %v2578_v44, %v5009_v27  ;;  %v2610_v5 = vcombine.high %v7874_v34, %v7873_v8 }
 0x291   : > { %v2521_v46 = vcombine.low %v6548_v61, %v6551_v31  ;;  %v6569_v53 = vpop.permute.xlu1 %2775  ;;  %v2952_v41 = vcombine.high %v6274_v52, %v6303_v48  ;;  %v1763_v35 = vcombine.high %v1723_v56, %v1755_v23  ;;  %v6583_v19 = vrot.slane %v2658_v63, %v5023_v40 }
 0x292   : > { %v4677_v42 = vpack.i.bf16 %v7872_v3, %v1760_v22  ;;  %4663 = vrot.lane.b32.xlu0 %v4662_v20, %s4898_s12  ;;  %v3048_v29 = vcombine.high %v6445_v60, %v6424_v51  ;;  %v7876_v44 = vcombine.high %v7870_v49, %v7871_v36  ;;  %v6595_v48 = vrot.slane %v2626_v17, %v5023_v40  ;;  %v7890_v17 = vld [vmem:[#allocation11_spill] sm:$0xff] }
 0x293   : > { %v6588_v22 = vrot.slane %v2521_v46, %v5023_v40  ;;  %v2968_v52 = vcombine.high %v6296_v12, %v6332_v45  ;;  %v3016_v56 = vcombine.high %v6457_v50, %v6442_v9  ;;  %v7877_v51 = vcombine.low %v6236_v58, %v6239_v2 }
 0x294   : > { %4678 = vrot.lane.b32.xlu1 %v4677_v42, %s4901_s15  ;;  %v4687_v3 = vpack.i.bf16 %v7876_v44, %v1761_v32  ;;  %v2780_v20 = vpop.permute.xlu0 %2779  ;;  %v6607_v23 = vrot.slane %v2594_v33, %v5009_v27  ;;  %v2984_v49 = vcombine.high %v6338_v10, %v6365_v25  ;;  %v3000_v32 = vcombine.high %v6358_v54, %v6382_v18 }
 0x295   : > { %7875 = vst [vmem:[#allocation35_spill] sm:$0xff] %v6588_v22  ;;  %v6604_v60 = vpack.i.bf16 %v7877_v51, %v1762_v28  ;;  %v6614_v12 = vrot.slane %v2489_v7, %v5023_v40  ;;  %v2784_v45 = vpop.permute.xlu1 %2783  ;;  %v6617_v9 = vrot.slane %v2610_v5, %v5009_v27  ;;  %v6620_v50 = vrot.slane %v2952_v41, %v5009_v27 }
 0x296   : > { %v2831_v63 = vcombine.low %v6558_v47, %v2780_v20  ;;  %4673 = vrot.lane.b32.xlu0 %v4672_v16, %s4901_s15  ;;  %v7879_v10 = vcombine.high %v6236_v58, %v6239_v2  ;;  %v6630_v54 = vrot.slane %v3048_v29, %v5023_v40  ;;  %v2690_v18 = vcombine.high %v6336_v59, %v6317_v37 }
 0x297   : > { %7878 = vst [vmem:[#allocation33_spill] sm:$0xff] %v6614_v12  ;;  %v2691_v42 = vcombine.low %v6595_v48, %v6583_v19  ;;  %v6640_v16 = vrot.slane %v2968_v52, %v5009_v27  ;;  %v6643_v58 = vrot.slane %v3016_v56, %v5023_v40  ;;  %v2815_v2 = vcombine.low %v6526_v11, %v6569_v53 }
 0x298   : > { %v6627_v25 = vpack.i.bf16 %v7879_v10, %v1763_v35  ;;  %4693 = vrot.lane.b32.xlu1 %v4692_v15, %s4899_s13  ;;  %v2788_v29 = vpop.permute.xlu0 %2787  ;;  %v2692_v15 = vcombine.high %v6595_v48, %v6583_v19  ;;  %v6650_v28 = vrot.slane %v2984_v49, %v5009_v27  ;;  %v6653_v33 = vrot.slane %v3000_v32, %v5009_v27 }
 0x299   : > { %v2426_v7 = vcombine.high %v6392_v55, %v6426_v39  ;;  %v2792_v46 = vpop.permute.xlu1 %2791  ;;  %v3080_v36 = vcombine.high %v6504_v30, %v6487_v6  ;;  %v2442_v8 = vcombine.high %v6412_v43, %v6449_v13  ;;  %v2474_v34 = vcombine.high %v6480_v38, %v6515_v4 }
 0x29a   : > { %v2832_v5 = vcombine.high %v6558_v47, %v2780_v20  ;;  %v2839_v41 = vrot.slane %v2831_v63, %v5009_v27  ;;  %4683 = vrot.lane.b32.xlu0 %v4682_v24, %s4896_s10  ;;  %v2847_v35 = vcombine.low %v2784_v45, %v2792_v46  ;;  %v2848_v19 = vcombine.high %v2784_v45, %v2792_v46 }
 0x29b   : > { %v3081_v55 = vcombine.low %v6643_v58, %v6630_v54  ;;  %v3082_v43 = vcombine.high %v6643_v58, %v6630_v54  ;;  %v2458_v38 = vcombine.high %v6461_v21, %v6491_v62  ;;  %v2522_v39 = vcombine.high %v6548_v61, %v6551_v31 }
 0x29c   : > { %4703 = vrot.lane.b32.xlu1 %v6540_v14, %s4897_s11  ;;  %v2816_v13 = vcombine.high %v6526_v11, %v6569_v53  ;;  %v2823_v4 = vrot.slane %v2815_v2, %v5009_v27  ;;  %v2796_v47 = vpop.permute.xlu0 %2795  ;;  %v2490_v14 = vcombine.high %v6545_v0, %v6522_v57  ;;  %v4712_v52 = vpack.i.bf16 %v3080_v36, %v2690_v18 }
 0x29d   : > { %v2863_v24 = vcombine.low %v2788_v29, %v2796_v47  ;;  %v2864_v44 = vcombine.high %v2788_v29, %v2796_v47  ;;  %v6681_v48 = vpop.permute.xlu1 %3558  ;;  %v6684_v56 = vrot.slane %v2474_v34, %v5009_v27  ;;  %v6687_v21 = vrot.slane %v2832_v5, %v5009_v27 }
 0x29e   : > { %v2879_v62 = vcombine.low %v2823_v4, %v2839_v41  ;;  %v2880_v61 = vcombine.high %v2823_v4, %v2839_v41  ;;  %4688 = vrot.lane.b32.xlu0 %v4687_v3, %s4896_s10  ;;  %v2855_v11 = vrot.slane %v2847_v35, %v5009_v27  ;;  %v6692_v31 = vrot.slane %v2848_v19, %v5009_v27 }
 0x29f   : > { %v2871_v57 = vrot.slane %v2863_v24, %v5009_v27  ;;  %v6696_v0 = vrot.slane %v2864_v44, %v5009_v27  ;;  %v6700_v53 = vrot.slane %v2442_v8, %v5009_v27  ;;  %v6703_v20 = vrot.slane %v2458_v38, %v5009_v27 }
 0x2a0   : > { %4713 = vrot.lane.b32.xlu1 %v4712_v52, %s4900_s14  ;;  %v2536_v3 = vrot.slane %v2522_v39, %v5023_v40  ;;  %v6707_v51 = vrot.slane %v2816_v13, %v5009_v27  ;;  %v6709_v49 = vpop.permute.xlu0 %3562  ;;  %v4722_v54 = vpack.i.bf16 %v3081_v55, %v2691_v42  ;;  %v6716_v18 = vrot.slane %v2426_v7, %v5009_v27  ;;  %v7882_v13 = vld [vmem:[#allocation70_spill] sm:$0xff] }
 0x2a1   : > { %v2911_v32 = vcombine.low %v2855_v11, %v2871_v57  ;;  %v2912_v45 = vcombine.high %v2855_v11, %v2871_v57  ;;  %v2927_v63 = vcombine.low %v6692_v31, %v6696_v0  ;;  %v6713_v10 = vpop.permute.xlu1 %3566  ;;  %v2504_v58 = vrot.slane %v2490_v14, %v5023_v40 }
 0x2a2   : > { %v2537_v2 = vcombine.low %v6703_v20, %v6684_v56  ;;  %v2895_v29 = vcombine.low %v6707_v51, %v6687_v21  ;;  %4698 = vrot.lane.b32.xlu0 %v6604_v60, %s4899_s13  ;;  %v6726_v46 = vrot.slane %v2879_v62, %v5023_v40  ;;  %v2894_v36 = vrot.slane %v2880_v61, %v5023_v40 }
 0x2a3   : > { %v6730_v42 = vrot.slane %v2911_v32, %v5023_v40  ;;  %v2926_v7 = vrot.slane %v2912_v45, %v5023_v40  ;;  %v3063_v8 = vcombine.low %v6650_v28, %v6653_v33  ;;  %v2505_v34 = vcombine.low %v6716_v18, %v6700_v53 }
 0x2a4   : > { %7880 = vst [vmem:[#allocation40_spill] sm:$0xff] %v6726_v46  ;;  %4723 = vrot.lane.b32.xlu1 %v4722_v54, %s4902_s16  ;;  %v6738_v5 = vpop.permute.xlu0 %3570  ;;  %v4732_v60 = vpack.i.bf16 %v3082_v43, %v2692_v15  ;;  %v2556_v41 = vcombine.high %v2504_v58, %v2536_v3  ;;  %v6741_v35 = vrot.slane %v2927_v63, %v5023_v40 }
 0x2a5   : > { %7881 = vst [vmem:[#allocation65_spill] sm:$0xff] %v6730_v42  ;;  %v6743_v19 = vpop.permute.xlu1 %3574  ;;  %v2946_v55 = vcombine.high %v2894_v36, %v2926_v7  ;;  %v2554_v38 = vcombine.high %v6614_v12, %v6588_v22  ;;  %v2944_v39 = vcombine.high %v6726_v46, %v6730_v42  ;;  %v7883_v4 = vcombine.high %v7864_v1, %v7882_v13  ;;  %v7891_v42 = vld [vmem:[#allocation8_spill] sm:$0xff] }
 0x2a6   : > { %v2673_v15 = vcombine.low %v6607_v23, %v6617_v9  ;;  %v3031_v43 = vcombine.low %v6620_v50, %v6640_v16  ;;  %v6760_v14 = vrot.slane %v2537_v2, %v5023_v40  ;;  %4708 = vrot.lane.b32.xlu0 %v6627_v25, %s4897_s11  ;;  %v6765_v24 = vrot.slane %v2895_v29, %v5023_v40  ;;  %v7894_v22 = vld [vmem:[#allocation24_spill] sm:$0xff] }
 0x2a7   : > { %v6753_v47 = vrot.slane %v7883_v4, %v5009_v27  ;;  %v3756_v1 = vcombine.low %v6709_v49, %v6738_v5  ;;  %v4737_v44 = vpack.i.bf16 %v2946_v55, %v2556_v41  ;;  %v4717_v52 = vpack.i.bf16 %v2944_v39, %v2554_v38  ;;  %v7886_v38 = vld [vmem:[#allocation23_spill] sm:$0xff]  ;;  %v7887_v39 = vld [vmem:[#allocation4_spill] sm:$0xff] }
 0x2a8   : > { %4733 = vrot.lane.b32.xlu1 %v4732_v60, %s4898_s12  ;;  %v3071_v61 = vrot.slane %v3063_v8, %v5023_v40  ;;  %v6773_v11 = vpop.permute.xlu0 %3578  ;;  %v2945_v57 = vcombine.low %v2894_v36, %v2926_v7  ;;  %v6776_v25 = vrot.slane %v2505_v34, %v5023_v40  ;;  %v3740_v32 = vcombine.low %v6681_v48, %v6713_v10  ;;  %v7884_v7 = vld [vmem:[#allocation18_spill] sm:$0xff]  ;;  %v7885_v8 = vld [vmem:[#allocation3_spill] sm:$0xff] }
 0x2a9   : > { %v2641_v62 = vcombine.low %v6753_v47, %v6575_v26  ;;  %v6780_v45 = vpop.permute.xlu1 %3582  ;;  %v2947_v63 = vcombine.low %v6765_v24, %v6741_v35  ;;  %v2681_v54 = vrot.slane %v2673_v15, %v5023_v40  ;;  %v3039_v2 = vrot.slane %v3031_v43, %v5023_v40  ;;  %v7888_v43 = vld [vmem:[#allocation5_spill] sm:$0xff] }
 0x2aa   : > { %4718 = vrot.lane.b32.xlu0 %v4717_v52, %s4900_s14  ;;  %v2555_v29 = vcombine.low %v2504_v58, %v2536_v3  ;;  %v3215_v34 = vcombine.high %v7885_v8, %v7884_v7  ;;  %v6792_v60 = vrot.slane %v3756_v1, %v5009_v27  ;;  %v3772_v41 = vcombine.low %v6743_v19, %v6780_v45  ;;  %v7889_v1 = vld [vmem:[#allocation2_spill] sm:$0xff] }
 0x2ab   : > { %v2557_v55 = vcombine.low %v6776_v25, %v6760_v14  ;;  %v3231_v3 = vcombine.high %v7887_v39, %v7886_v38  ;;  %v2649_v58 = vrot.slane %v2641_v62, %v5023_v40  ;;  %v3083_v15 = vcombine.low %v3039_v2, %v3071_v61  ;;  %v7892_v39 = vld [vmem:[#allocation42_spill] sm:$0xff]  ;;  %v7893_v62 = vld [vmem:[#allocation12_spill] sm:$0xff] }
 0x2ac   : > { %4738 = vrot.lane.b32.xlu1 %v4737_v44, %s4898_s12  ;;  %v6802_v13 = vpop.permute.xlu0 %3586  ;;  %v4727_v4 = vpack.i.bf16 %v2945_v57, %v2555_v29  ;;  %v3748_v7 = vrot.slane %v3740_v32, %v5009_v27  ;;  %v3415_v38 = vcombine.high %v7891_v42, %v7890_v17  ;;  %v3447_v46 = vcombine.high %v7893_v62, %v7892_v39  ;;  %v7895_v57 = vld [vmem:[#allocation22_spill] sm:$0xff]  ;;  %v7896_v39 = vld [vmem:[#allocation48_spill] sm:$0xff] }
 0x2ad   : > { %v3788_v44 = vcombine.low %v6773_v11, %v6802_v13  ;;  %v6809_v8 = vpop.permute.xlu1 %3556  ;;  %v4747_v36 = vpack.i.bf16 %v2947_v63, %v2557_v55  ;;  %v3247_v29 = vcombine.high %v7895_v57, %v7894_v22  ;;  %v2693_v52 = vcombine.low %v2649_v58, %v2681_v54  ;;  %v7899_v57 = vld [vmem:[#allocation25_spill] sm:$0xff] }
 0x2ae   : > { %4728 = vrot.lane.b32.xlu0 %v4727_v4, %s4902_s16  ;;  %v3064_v32 = vcombine.high %v6650_v28, %v6653_v33  ;;  %v3804_v12 = vcombine.low %v3748_v7, %v6792_v60  ;;  %v3780_v37 = vrot.slane %v3772_v41, %v5009_v27  ;;  %v6825_v17 = vrot.slane %v3215_v34, %v5009_v27  ;;  %v7897_v28 = vld [vmem:[#allocation47_spill] sm:$0xff] }
 0x2af   : > { %v3796_v63 = vrot.slane %v3788_v44, %v5009_v27  ;;  %v6828_v42 = vrot.slane %v3231_v3, %v5009_v27  ;;  %v4742_v55 = vpack.i.bf16 %v3083_v15, %v2693_v52  ;;  %v3084_v4 = vcombine.high %v3039_v2, %v3071_v61  ;;  %v7898_v3 = vld [vmem:[#allocation27_spill] sm:$0xff] }
 0x2b0   : > { %4748 = vrot.lane.b32.xlu1 %v4747_v36, %s4901_s15  ;;  %v6830_v22 = vpop.permute.xlu0 %3560  ;;  %v3279_v33 = vcombine.high %v7897_v28, %v7896_v39  ;;  %v2674_v41 = vcombine.high %v6607_v23, %v6617_v9  ;;  %v3032_v44 = vcombine.high %v6620_v50, %v6640_v16  ;;  %v6841_v34 = vrot.slane %v3247_v29, %v5009_v27 }
 0x2b1   : > { %v3836_v36 = vcombine.low %v3780_v37, %v3796_v63  ;;  %v6838_v62 = vpop.permute.xlu1 %3564  ;;  %v3263_v59 = vcombine.high %v7899_v57, %v7898_v3  ;;  %v3837_v15 = vcombine.high %v3780_v37, %v3796_v63  ;;  %v2694_v61 = vcombine.high %v2649_v58, %v2681_v54  ;;  %v7902_v37 = vld [vmem:[#allocation50_spill] sm:$0xff]  ;;  %v7903_v63 = vld [vmem:[#allocation53_spill] sm:$0xff] }
 0x2b2   : > { %4743 = vrot.lane.b32.xlu0 %v4742_v55, %s4901_s15  ;;  %v2642_v2 = vcombine.high %v6753_v47, %v6575_v26  ;;  %v6849_v23 = vrot.slane %v3064_v32, %v5023_v40  ;;  %v6852_v9 = vrot.slane %v3804_v12, %v5023_v40  ;;  %v3805_v16 = vcombine.high %v3748_v7, %v6792_v60  ;;  %v7904_v32 = vld [vmem:[#allocation44_spill] sm:$0xff]  ;;  %v7907_v3 = vld [vmem:[#allocation9_spill] sm:$0xff] }
 0x2b3   : > { %v6855_v50 = vrot.slane %v3836_v36, %v5023_v40  ;;  %v4752_v29 = vpack.i.bf16 %v3084_v4, %v2694_v61  ;;  %v3479_v55 = vcombine.high %v7903_v63, %v7902_v37  ;;  %v2948_v54 = vcombine.high %v6765_v24, %v6741_v35  ;;  %v7905_v4 = vld [vmem:[#allocation43_spill] sm:$0xff]  ;;  %v7906_v36 = vld [vmem:[#allocation13_spill] sm:$0xff] }
 0x2b4   : > { %7900 = vst [vmem:[#allocation63_spill] sm:$0xff] %v6852_v9  ;;  %v3569_v52 = vpop.permute.xlu0 %3568  ;;  %v6863_v26 = vrot.slane %v2674_v41, %v5023_v40  ;;  %v6866_v47 = vrot.slane %v3032_v44, %v5023_v40  ;;  %v6873_v7 = vrot.slane %v3263_v59, %v5009_v27  ;;  %v3311_v39 = vcombine.high %v7905_v4, %v7904_v32 }
 0x2b5   : > { %7901 = vst [vmem:[#allocation37_spill] sm:$0xff] %v6855_v50  ;;  %v3573_v58 = vpop.permute.xlu1 %3572  ;;  %v3869_v60 = vcombine.high %v6852_v9, %v6855_v50  ;;  %v6878_v35 = vrot.slane %v3837_v15, %v5023_v40  ;;  %v2558_v24 = vcombine.high %v6776_v25, %v6760_v14  ;;  %v2656_v28 = vrot.slane %v2642_v2, %v5023_v40  ;;  %v7908_v14 = vld [vmem:[#allocation16_spill] sm:$0xff]  ;;  %v7909_v25 = vld [vmem:[#allocation15_spill] sm:$0xff] }
 0x2b6   : > { %4753 = vrot.lane.b32.xlu0 %v4752_v29, %s4896_s10  ;;  %v3620_v41 = vcombine.low %v6830_v22, %v3569_v52  ;;  %v3085_v59 = vcombine.low %v6866_v47, %v6849_v23  ;;  %v6890_v61 = vrot.slane %v3805_v16, %v5023_v40  ;;  %v6893_v29 = vrot.slane %v3447_v46, %v5023_v40 }
 0x2b7   : > { %v4757_v44 = vpack.i.bf16 %v3869_v60, %v3479_v55  ;;  %v4762_v32 = vpack.i.bf16 %v2948_v54, %v2558_v24  ;;  %v3604_v60 = vcombine.low %v6809_v8, %v6838_v62  ;;  %v2695_v16 = vcombine.low %v2656_v28, %v6863_v26 }
 0x2b8   : > { %v3577_v15 = vpop.permute.xlu0 %3576  ;;  %v3429_v46 = vrot.slane %v3415_v38, %v5023_v40  ;;  %v3870_v24 = vcombine.low %v6890_v61, %v6878_v35  ;;  %v6910_v12 = vrot.slane %v3279_v33, %v5023_v40  ;;  %v3628_v55 = vrot.slane %v3620_v41, %v5009_v27 }
 0x2b9   : > { %v3581_v4 = vpop.permute.xlu1 %3580  ;;  %4758 = vrot.lane.b32.xlu1 %v4757_v44, %s4900_s14  ;;  %v4767_v57 = vpack.i.bf16 %v3085_v59, %v2695_v16  ;;  %v6914_v44 = vrot.slane %v3311_v39, %v5023_v40  ;;  %v3621_v37 = vcombine.high %v6830_v22, %v3569_v52  ;;  %v2696_v38 = vcombine.high %v2656_v28, %v6863_v26 }
 0x2ba   : > { %4763 = vrot.lane.b32.xlu0 %v4762_v32, %s4896_s10  ;;  %v3636_v2 = vcombine.low %v3573_v58, %v3581_v4  ;;  %v3480_v32 = vcombine.low %v3429_v46, %v6893_v29  ;;  %v3481_v63 = vcombine.high %v3429_v46, %v6893_v29  ;;  %v3612_v50 = vrot.slane %v3604_v60, %v5009_v27  ;;  %v7910_v60 = vld [vmem:[#allocation51_spill] sm:$0xff] }
 0x2bb   : > { %v3637_v33 = vcombine.high %v3573_v58, %v3581_v4  ;;  %v2928_v39 = vcombine.high %v6692_v31, %v6696_v0  ;;  %v3605_v22 = vcombine.high %v6809_v8, %v6838_v62  ;;  %v3086_v26 = vcombine.high %v6866_v47, %v6849_v23  ;;  %v7911_v4 = vld [vmem:[#allocation54_spill] sm:$0xff] }
 0x2bc   : > { %v3585_v54 = vpop.permute.xlu0 %3584  ;;  %v4777_v52 = vpack.i.bf16 %v3870_v24, %v3480_v32  ;;  %v3668_v28 = vcombine.low %v3612_v50, %v3628_v55  ;;  %v3644_v59 = vrot.slane %v3636_v2, %v5009_v27  ;;  %v2538_v31 = vcombine.high %v6703_v20, %v6684_v56 }
 0x2bd   : > { %v3652_v9 = vcombine.low %v3577_v15, %v3585_v54  ;;  %v3653_v6 = vcombine.high %v3577_v15, %v3585_v54  ;;  %v6921_v41 = vpop.permute.xlu1 %3946  ;;  %4768 = vrot.lane.b32.xlu1 %v4767_v57, %s4899_s13  ;;  %v2506_v57 = vcombine.high %v6716_v18, %v6700_v53  ;;  %v2896_v0 = vcombine.high %v6707_v51, %v6687_v21 }
 0x2be   : > { %v6942_v8 = vrot.slane %v3621_v37, %v5009_v27  ;;  %v3669_v23 = vcombine.high %v3612_v50, %v3628_v55  ;;  %v6953_v56 = vrot.slane %v2928_v39, %v5023_v40  ;;  %v6956_v21 = vrot.slane %v3605_v22, %v5009_v27 }
 0x2bf   : > { %v3660_v58 = vrot.slane %v3652_v9, %v5009_v27  ;;  %v6933_v15 = vrot.slane %v3653_v6, %v5009_v27  ;;  %v6947_v9 = vrot.slane %v3637_v33, %v5009_v27  ;;  %v4787_v53 = vpack.i.bf16 %v3086_v26, %v2696_v38 }
 0x2c0   : > { %v6944_v62 = vpop.permute.xlu0 %3948  ;;  %v3871_v20 = vcombine.high %v6890_v61, %v6878_v35  ;;  %v6961_v51 = vrot.slane %v3668_v28, %v5023_v40  ;;  %v6970_v2 = vrot.slane %v2538_v31, %v5023_v40  ;;  %v6973_v55 = vrot.slane %v2896_v0, %v5023_v40 }
 0x2c1   : > { %v3700_v6 = vcombine.low %v3644_v59, %v3660_v58  ;;  %v3701_v47 = vcombine.high %v3644_v59, %v3660_v58  ;;  %v6949_v29 = vpop.permute.xlu1 %3950  ;;  %4778 = vrot.lane.b32.xlu1 %v4777_v52, %s4902_s16  ;;  %v3716_v37 = vcombine.low %v6947_v9, %v6933_v15  ;;  %v3789_v35 = vcombine.high %v6773_v11, %v6802_v13  ;;  %v7912_v59 = vld [vmem:[#allocation14_spill] sm:$0xff] }
 0x2c2   : > { %v3343_v16 = vcombine.high %v7911_v4, %v7910_v60  ;;  %v3683_v54 = vrot.slane %v3669_v23, %v5023_v40  ;;  %v3684_v46 = vcombine.low %v6956_v21, %v6942_v8  ;;  %v2520_v13 = vrot.slane %v2506_v57, %v5023_v40  ;;  %v7913_v58 = vld [vmem:[#allocation10_spill] sm:$0xff] }
 0x2c3   : > { %v6964_v18 = vrot.slane %v3700_v6, %v5023_v40  ;;  %v3715_v50 = vrot.slane %v3701_v47, %v5023_v40  ;;  %v3757_v38 = vcombine.high %v6709_v49, %v6738_v5  ;;  %v3773_v33 = vcombine.high %v6743_v19, %v6780_v45 }
 0x2c4   : > { %v6977_v61 = vpop.permute.xlu0 %3952  ;;  %v2949_v39 = vcombine.low %v6973_v55, %v6953_v56  ;;  %v6999_v22 = vrot.slane %v3716_v37, %v5023_v40  ;;  %v4797_v52 = vpack.i.bf16 %v3871_v20, %v3481_v63  ;;  %v3383_v31 = vcombine.high %v7913_v58, %v7912_v59 }
 0x2c5   : > { %v3732_v24 = vcombine.low %v6961_v51, %v6964_v18  ;;  %v6986_v32 = vpop.permute.xlu1 %3954  ;;  %4788 = vrot.lane.b32.xlu1 %v4787_v53, %s4897_s11  ;;  %v3733_v11 = vcombine.high %v6961_v51, %v6964_v18  ;;  %v3735_v28 = vcombine.high %v3683_v54, %v3715_v50  ;;  %v3741_v57 = vcombine.high %v6681_v48, %v6713_v10 }
 0x2c6   : > { %v7006_v49 = vrot.slane %v3789_v35, %v5009_v27  ;;  %v7914_v19 = vcombine.low %v6841_v34, %v6873_v7  ;;  %v7017_v63 = vrot.slane %v3684_v46, %v5023_v40  ;;  %v3345_v48 = vcombine.high %v6910_v12, %v6914_v44 }
 0x2c7   : > { %v4772_v26 = vpack.i.bf16 %v3733_v11, %v3343_v16  ;;  %v2559_v10 = vcombine.low %v2520_v13, %v6970_v2  ;;  %v7915_v23 = vcombine.high %v7907_v3, %v7906_v36  ;;  %v7916_v47 = vcombine.high %v7909_v25, %v7908_v14 }
 0x2c8   : > { %v7008_v5 = vpop.permute.xlu0 %3956  ;;  %v7014_v45 = vrot.slane %v7914_v19, %v5023_v40  ;;  %v7035_v20 = vrot.slane %v3757_v38, %v5009_v27  ;;  %v3787_v37 = vrot.slane %v3773_v33, %v5009_v27  ;;  %v4807_v35 = vpack.i.bf16 %v3735_v28, %v3345_v48 }
 0x2c9   : > { %v7019_v0 = vpop.permute.xlu1 %3958  ;;  %4798 = vrot.lane.b32.xlu1 %v4797_v52, %s4898_s12  ;;  %4773 = vrot.lane.b32.xlu0 %v4772_v26, %s4900_s14  ;;  %v3381_v6 = vrot.slane %v7915_v23, %v5009_v27  ;;  %v3413_v53 = vrot.slane %v7916_v47, %v5009_v27  ;;  %v4782_v16 = vpack.i.bf16 %v2949_v39, %v2559_v10 }
 0x2ca   : > { %v7917_v46 = vcombine.low %v6825_v17, %v6828_v42  ;;  %v3736_v36 = vcombine.low %v7017_v63, %v6999_v22  ;;  %v3397_v3 = vrot.slane %v3383_v31, %v5009_v27  ;;  %v3755_v14 = vrot.slane %v3741_v57, %v5009_v27 }
 0x2cb   : > { %v3852_v25 = vcombine.low %v3787_v37, %v7006_v49  ;;  %v3734_v33 = vcombine.low %v3683_v54, %v3715_v50  ;;  %v7918_v26 = vcombine.high %v7889_v1, %v7888_v43  ;;  %v3344_v50 = vcombine.low %v6910_v12, %v6914_v44 }
 0x2cc   : > { %v7042_v11 = vrot.slane %v7917_v46, %v5023_v40  ;;  %v7049_v38 = vpop.permute.xlu0 %3960  ;;  %v3462_v59 = vcombine.low %v3397_v3, %v3413_v53  ;;  %v3820_v58 = vcombine.low %v3755_v14, %v7035_v20  ;;  %v2950_v10 = vcombine.high %v6973_v55, %v6953_v56 }
 0x2cd   : > { %v7051_v52 = vpop.permute.xlu1 %3962  ;;  %4808 = vrot.lane.b32.xlu1 %v4807_v35, %s4898_s12  ;;  %4783 = vrot.lane.b32.xlu0 %v4782_v16, %s4899_s13  ;;  %v3365_v28 = vrot.slane %v7918_v26, %v5009_v27  ;;  %v3860_v57 = vrot.slane %v3852_v25, %v5023_v40  ;;  %v4792_v48 = vpack.i.bf16 %v3734_v33, %v3344_v50 }
 0x2ce   : > { %v3346_v39 = vcombine.low %v7042_v11, %v7014_v45  ;;  %v3828_v43 = vrot.slane %v3820_v58, %v5023_v40  ;;  %v2560_v1 = vcombine.high %v2520_v13, %v6970_v2  ;;  %v3470_v12 = vrot.slane %v3462_v59, %v5023_v40 }
 0x2cf   : > { %v3430_v31 = vcombine.low %v3365_v28, %v3381_v6  ;;  %v4010_v44 = vcombine.low %v6949_v29, %v7019_v0  ;;  %v3431_v16 = vcombine.high %v3365_v28, %v3381_v6  ;;  %v3463_v46 = vcombine.high %v3397_v3, %v3413_v53 }
 0x2d0   : > { %v4817_v54 = vpack.i.bf16 %v3736_v36, %v3346_v39  ;;  %v7065_v19 = vpop.permute.xlu0 %3964  ;;  %v4802_v35 = vpack.i.bf16 %v2950_v10, %v2560_v1  ;;  %v3872_v55 = vcombine.low %v3828_v43, %v3860_v57  ;;  %v3853_v36 = vcombine.high %v3787_v37, %v7006_v49 }
 0x2d1   : > { %v7069_v23 = vpop.permute.xlu1 %3966  ;;  %4793 = vrot.lane.b32.xlu0 %v4792_v48, %s4902_s16  ;;  %v3438_v56 = vrot.slane %v3430_v31, %v5023_v40  ;;  %v3295_v2 = vcombine.high %v6825_v17, %v6828_v42  ;;  %v3994_v13 = vcombine.low %v6921_v41, %v6986_v32  ;;  %v3327_v39 = vcombine.high %v6841_v34, %v6873_v7 }
 0x2d2   : > { %4818 = vrot.lane.b32.xlu1 %v4817_v54, %s4901_s15  ;;  %v3821_v26 = vcombine.high %v3755_v14, %v7035_v20  ;;  %v4146_v6 = vcombine.low %v6977_v61, %v7049_v38  ;;  %v3347_v49 = vcombine.high %v7042_v11, %v7014_v45  ;;  %v4018_v53 = vrot.slane %v4010_v44, %v5009_v27 }
 0x2d3   : > { %v3482_v33 = vcombine.low %v3438_v56, %v3470_v12  ;;  %v3873_v3 = vcombine.high %v3828_v43, %v3860_v57  ;;  %v7102_v28 = vrot.slane %v3853_v36, %v5023_v40  ;;  %v4130_v34 = vcombine.low %v6944_v62, %v7008_v5 }
 0x2d4   : > { %v7078_v47 = vpop.permute.xlu0 %3968  ;;  %v7107_v20 = vrot.slane %v3431_v16, %v5023_v40  ;;  %v7110_v45 = vrot.slane %v3463_v46, %v5023_v40  ;;  %v4002_v11 = vrot.slane %v3994_v13, %v5009_v27  ;;  %v3483_v59 = vcombine.high %v3438_v56, %v3470_v12 }
 0x2d5   : > { %v7082_v25 = vpop.permute.xlu1 %3970  ;;  %4803 = vrot.lane.b32.xlu0 %v4802_v35, %s4897_s11  ;;  %v4812_v37 = vpack.i.bf16 %v3872_v55, %v3482_v33  ;;  %v3737_v58 = vcombine.high %v7017_v63, %v6999_v22  ;;  %v7118_v50 = vrot.slane %v3821_v26, %v5023_v40  ;;  %v4154_v54 = vrot.slane %v4146_v6, %v5009_v27 }
 0x2d6   : > { %v4026_v17 = vcombine.low %v7051_v52, %v7082_v25  ;;  %v7124_v57 = vrot.slane %v3295_v2, %v5023_v40  ;;  %v4058_v48 = vcombine.low %v4002_v11, %v4018_v53  ;;  %v4822_v12 = vpack.i.bf16 %v3873_v3, %v3483_v59 }
 0x2d7   : > { %v4138_v22 = vrot.slane %v4130_v34, %v5009_v27  ;;  %v3875_v35 = vcombine.high %v7118_v50, %v7102_v28  ;;  %v7135_v56 = vrot.slane %v3327_v39, %v5023_v40  ;;  %v3717_v55 = vcombine.high %v6947_v9, %v6933_v15 }
 0x2d8   : > { %v7099_v42 = vpop.permute.xlu0 %3972  ;;  %v4034_v10 = vrot.slane %v4026_v17, %v5009_v27  ;;  %v4832_v36 = vpack.i.bf16 %v3737_v58, %v3347_v49  ;;  %v4059_v2 = vcombine.high %v4002_v11, %v4018_v53  ;;  %v7143_v6 = vrot.slane %v4058_v48, %v5023_v40 }
 0x2d9   : > { %v3975_v7 = vpop.permute.xlu1 %3974  ;;  %4813 = vrot.lane.b32.xlu0 %v4812_v37, %s4901_s15  ;;  %v4162_v31 = vcombine.low %v7065_v19, %v7099_v42  ;;  %v4194_v13 = vcombine.low %v4138_v22, %v4154_v54  ;;  %v4195_v17 = vcombine.high %v4138_v22, %v4154_v54  ;;  %v4131_v49 = vcombine.high %v6944_v62, %v7008_v5 }
 0x2da   : > { %v4042_v14 = vcombine.low %v7069_v23, %v3975_v7  ;;  %v4147_v53 = vcombine.high %v6977_v61, %v7049_v38  ;;  %v4163_v11 = vcombine.high %v7065_v19, %v7099_v42  ;;  %v4011_v62 = vcombine.high %v6949_v29, %v7019_v0 }
 0x2db   : > { %v4170_v33 = vrot.slane %v4162_v31, %v5009_v27  ;;  %v7169_v61 = vrot.slane %v4194_v13, %v5023_v40  ;;  %v7178_v19 = vrot.slane %v4059_v2, %v5023_v40  ;;  %v4027_v42 = vcombine.high %v7051_v52, %v7082_v25 }
 0x2dc   : > { %v4050_v43 = vrot.slane %v4042_v14, %v5009_v27  ;;  %v3977_v1 = vpop.permute.xlu0 %3976  ;;  %v4043_v14 = vcombine.high %v7069_v23, %v3975_v7  ;;  %v7181_v23 = vrot.slane %v4195_v17, %v5023_v40  ;;  %v3685_v7 = vcombine.high %v6956_v21, %v6942_v8 }
 0x2dd   : > { %v4178_v63 = vcombine.low %v7078_v47, %v3977_v1  ;;  %v7130_v44 = vpop.permute.xlu1 %4578  ;;  %4823 = vrot.lane.b32.xlu0 %v4822_v12, %s4896_s10  ;;  %v4179_v15 = vcombine.high %v7078_v47, %v3977_v1  ;;  %v3995_v58 = vcombine.high %v6921_v41, %v6986_v32  ;;  %v4161_v54 = vrot.slane %v4147_v53, %v5009_v27 }
 0x2de   : > { %v4090_v16 = vcombine.low %v4034_v10, %v4050_v43  ;;  %v4091_v46 = vcombine.high %v4034_v10, %v4050_v43  ;;  %v4177_v10 = vrot.slane %v4163_v11, %v5009_v27  ;;  %v4057_v52 = vrot.slane %v4043_v14, %v5009_v27 }
 0x2df   : > { %v4186_v26 = vrot.slane %v4178_v63, %v5009_v27  ;;  %v4193_v29 = vrot.slane %v4179_v15, %v5009_v27  ;;  %v3731_v21 = vrot.slane %v3717_v55, %v5023_v40  ;;  %v4145_v41 = vrot.slane %v4131_v49, %v5009_v27 }
 0x2e0   : > { %v7146_v39 = vrot.slane %v4090_v16, %v5023_v40  ;;  %v7149_v9 = vpop.permute.xlu0 %4573  ;;  %v7161_v59 = vrot.slane %v4091_v46, %v5023_v40  ;;  %v4025_v1 = vrot.slane %v4011_v62, %v5009_v27  ;;  %v4041_v12 = vrot.slane %v4027_v42, %v5009_v27 }
 0x2e1   : > { %v4226_v37 = vcombine.low %v4170_v33, %v4186_v26  ;;  %v4227_v3 = vcombine.high %v4170_v33, %v4186_v26  ;;  %v7155_v34 = vpop.permute.xlu1 %4588  ;;  %4833 = vrot.lane.b32.xlu0 %v4832_v36, %s4896_s10  ;;  %v4242_v22 = vcombine.low %v4177_v10, %v4193_v29  ;;  %v3485_v55 = vcombine.high %v7107_v20, %v7110_v45 }
 0x2e2   : > { %v4122_v47 = vcombine.low %v7143_v6, %v7146_v39  ;;  %v4124_v25 = vcombine.low %v7178_v19, %v7161_v59  ;;  %v4123_v32 = vcombine.high %v7143_v6, %v7146_v39  ;;  %v3484_v2 = vcombine.low %v7107_v20, %v7110_v45 }
 0x2e3   : > { %v7172_v5 = vrot.slane %v4226_v37, %v5023_v40  ;;  %v7175_v38 = vrot.slane %v4227_v3, %v5023_v40  ;;  %v3874_v13 = vcombine.low %v7118_v50, %v7102_v28  ;;  %v3699_v33 = vrot.slane %v3685_v7, %v5023_v40 }
 0x2e4   : > { %v7186_v0 = vpop.permute.xlu0 %4583  ;;  %v4009_v26 = vrot.slane %v3995_v58, %v5009_v27  ;;  %v4210_v17 = vcombine.low %v4145_v41, %v4161_v54  ;;  %v4106_v15 = vcombine.low %v4041_v12, %v4057_v52  ;;  %v4243_v49 = vcombine.high %v4177_v10, %v4193_v29 }
 0x2e5   : > { %v4258_v31 = vcombine.low %v7169_v61, %v7172_v5  ;;  %v7195_v48 = vpop.permute.xlu1 %4598  ;;  %v4260_v8 = vcombine.low %v7181_v23, %v7175_v38  ;;  %v4259_v43 = vcombine.high %v7169_v61, %v7172_v5  ;;  %v4852_v53 = vpack.i.bf16 %v3875_v35, %v3485_v55  ;;  %v7922_v55 = vld [vmem:[#allocation28_spill] sm:$0xff] }
 0x2e6   : > { %v3349_v20 = vcombine.high %v7124_v57, %v7135_v56  ;;  %v3348_v45 = vcombine.low %v7124_v57, %v7135_v56  ;;  %v4074_v37 = vcombine.low %v4009_v26, %v4025_v1  ;;  %v7233_v27 = vrot.slane %v4242_v22, %v5023_v40  ;;  %v7920_v22 = vld [vmem:[#allocation31_spill] sm:$0xff] }
 0x2e7   : > { %v4842_v16 = vpack.i.bf16 %v4260_v8, %v4124_v25  ;;  %v4827_v36 = vpack.i.bf16 %v4259_v43, %v4123_v32  ;;  %v3739_v11 = vcombine.high %v3699_v33, %v3731_v21  ;;  %v3738_v14 = vcombine.low %v3699_v33, %v3731_v21 }
 0x2e8   : > { %v7211_v63 = vpop.permute.xlu0 %4593  ;;  %v4075_v62 = vcombine.high %v4009_v26, %v4025_v1  ;;  %v4211_v42 = vcombine.high %v4145_v41, %v4161_v54  ;;  %v4107_v29 = vcombine.high %v4041_v12, %v4057_v52  ;;  %v4837_v28 = vpack.i.bf16 %v3874_v13, %v3484_v2  ;;  %v7919_v12 = vld [vmem:[#allocation26_spill] sm:$0xff]  ;;  %v7923_v2 = vld [vmem:[#allocation29_spill] sm:$0xff] }
 0x2e9   : > { %v7213_v46 = vpop.permute.xlu1 %4608  ;;  %4843 = vrot.lane.b32.xlu0 %v4842_v16, %s4902_s16  ;;  %4828 = vrot.lane.b32.xlu1 %v4827_v36, %s4900_s14  ;;  %v4218_v50 = vrot.slane %v4210_v17, %v5023_v40  ;;  %v4114_v35 = vrot.slane %v4106_v15, %v5023_v40  ;;  %v4576_v57 = vunpack.i.h.bf16 %v7149_v9  ;;  %v4575_v56 = vunpack.i.l.bf16 %v7149_v9 }
 0x2ea   : > { %v7245_v58 = vrot.slane %v4243_v49, %v5023_v40  ;;  %v4082_v54 = vrot.slane %v4074_v37, %v5023_v40  ;;  %v4862_v52 = vpack.i.bf16 %v3739_v11, %v3349_v20  ;;  %v4847_v25 = vpack.i.bf16 %v3738_v14, %v3348_v45 }
 0x2eb   : > { %v4263_v8 = vcombine.high %v4218_v50, %v7233_v27  ;;  %v7251_v21 = vrot.slane %v4075_v62, %v5023_v40  ;;  %v7254_v9 = vrot.slane %v4211_v42, %v5023_v40  ;;  %v7257_v41 = vrot.slane %v4107_v29, %v5023_v40  ;;  %v7925_v42 = vld [vmem:[#allocation62_spill] sm:$0xff]  ;;  %v7926_v29 = vld [vmem:[#allocation61_spill] sm:$0xff] }
 0x2ec   : > { %v7235_v3 = vpop.permute.xlu0 %4603  ;;  %v4261_v43 = vcombine.high %v7181_v23, %v7175_v38  ;;  %v4581_v1 = vunpack.i.h.bf16 %v7130_v44  ;;  %v7921_v16 = vcombine.low %v7919_v12, %v7920_v22  ;;  %v7924_v13 = vcombine.low %v7922_v55, %v7923_v2 }
 0x2ed   : > { %v7237_v7 = vpop.permute.xlu1 %4618  ;;  %4853 = vrot.lane.b32.xlu0 %v4852_v53, %s4897_s11  ;;  %4838 = vrot.lane.b32.xlu1 %v4837_v28, %s4899_s13  ;;  %v4127_v40 = vcombine.high %v4082_v54, %v4114_v35  ;;  %v4611_v26 = vunpack.i.h.bf16 %v7213_v46  ;;  %v4610_v38 = vunpack.i.l.bf16 %v7213_v46  ;;  %v4125_v23 = vcombine.high %v7178_v19, %v7161_v59 }
 0x2ee   : > { %v1167_v36 = vsel %vm1153_vm5, %v7921_v16, %v4576_v57  ;;  %v1154_v33 = vsel %vm1153_vm5, %v7924_v13, %v4575_v56  ;;  %v4265_v17 = vcombine.high %v7254_v9, %v7245_v58  ;;  %v4580_v15 = vunpack.i.l.bf16 %v7130_v44  ;;  %v7928_v56 = vld [vmem:[#allocation55_spill] sm:$0xff] }
 0x2ef   : > { %v4872_v45 = vpack.i.bf16 %v4263_v8, %v4127_v40  ;;  %v4857_v11 = vpack.i.bf16 %v4261_v43, %v4125_v23  ;;  %v4129_v46 = vcombine.high %v7251_v21, %v7257_v41  ;;  %v4262_v14 = vcombine.low %v4218_v50, %v7233_v27 }
 0x2f0   : > { %v4614_v10 = vpop.permute.xlu0 %4613  ;;  %v4586_v59 = vunpack.i.h.bf16 %v7186_v0  ;;  %v4585_v19 = vunpack.i.l.bf16 %v7186_v0  ;;  %v1156_v62 = vsel %vm1155_vm6, %v1154_v33, %v4580_v15  ;;  %v1168_v44 = vsel %vm1155_vm6, %v1167_v36, %v4581_v1 }
 0x2f1   : > { %v7259_v32 = vpop.permute.xlu1 %4628  ;;  %4863 = vrot.lane.b32.xlu0 %v4862_v52, %s4897_s11  ;;  %4848 = vrot.lane.b32.xlu1 %v4847_v25, %s4899_s13  ;;  %v4616_v49 = vunpack.i.h.bf16 %v4614_v10  ;;  %v4615_v53 = vunpack.i.l.bf16 %v4614_v10  ;;  %v7927_v28 = vcombine.low %v7925_v42, %v7926_v29  ;;  %v7929_v10 = vld [vmem:[#allocation21_spill] sm:$0xff]  ;;  %v4882_v50 = vpack.i.bf16 %v4265_v17, %v4129_v46 }
 0x2f2   : > { %v7930_v52 = vcombine.low %v7928_v56, %v7929_v10  ;;  %v4126_v0 = vcombine.low %v4082_v54, %v4114_v35  ;;  %v4621_v22 = vunpack.i.h.bf16 %v7237_v7  ;;  %v4620_v16 = vunpack.i.l.bf16 %v7237_v7 }
 0x2f3   : > { %v1566_v57 = vsel %vm1153_vm5, %v7927_v28, %v4611_v26  ;;  %v4264_v2 = vcombine.low %v7254_v9, %v7245_v58  ;;  %v4590_v35 = vunpack.i.l.bf16 %v7155_v34  ;;  %v1158_v54 = vsel %vm1157_vm7, %v1156_v62, %v4585_v19 }
 0x2f4   : > { %v4624_v20 = vpop.permute.xlu0 %4623  ;;  %v1573_v27 = vsel %vm1153_vm5, %v7930_v52, %v4610_v38  ;;  %v1567_v25 = vsel %vm1155_vm6, %v1566_v57, %v4616_v49  ;;  %v4867_v55 = vpack.i.bf16 %v4262_v14, %v4126_v0  ;;  %v1169_v13 = vsel %vm1157_vm7, %v1168_v44, %v4586_v59 }
 0x2f5   : > { %v7281_v37 = vpop.permute.xlu1 %4638  ;;  %4873 = vrot.lane.b32.xlu0 %v4872_v45, %s4896_s10  ;;  %4858 = vrot.lane.b32.xlu1 %v4857_v11, %s4898_s12  ;;  %v1574_v8 = vsel %vm1155_vm6, %v1573_v27, %v4615_v53  ;;  %v4626_v43 = vunpack.i.h.bf16 %v4624_v20  ;;  %v4625_v1 = vunpack.i.l.bf16 %v4624_v20  ;;  %v4595_v33 = vunpack.i.l.bf16 %v7211_v63 }
 0x2f6   : > { %v4596_v40 = vunpack.i.h.bf16 %v7211_v63  ;;  %v1568_v7 = vsel %vm1157_vm7, %v1567_v25, %v4621_v22  ;;  %v1575_v26 = vsel %vm1157_vm7, %v1574_v8, %v4620_v16  ;;  %v4128_v58 = vcombine.low %v7251_v21, %v7257_v41 }
 0x2f7   : > { %v4591_v9 = vunpack.i.h.bf16 %v7155_v34  ;;  %v1569_v38 = vsel %vm1159_vm8, %v1568_v7, %v4626_v43  ;;  %v1576_v23 = vsel %vm1159_vm8, %v1575_v26, %v4625_v1  ;;  %v1160_v63 = vsel %vm1159_vm8, %v1158_v54, %v4590_v35  ;;  %v7932_v35 = vld [vmem:[#allocation39_spill] sm:$0xff] }
 0x2f8   : > { %v7302_v12 = vpop.permute.xlu0 %4633  ;;  %v4631_v15 = vunpack.i.h.bf16 %v7259_v32  ;;  %v4630_v49 = vunpack.i.l.bf16 %v7259_v32  ;;  %v4877_v20 = vpack.i.bf16 %v4264_v2, %v4128_v58  ;;  %v1162_v21 = vsel %vm1161_vm9, %v1160_v63, %v4595_v33  ;;  %v7931_v2 = vld [vmem:[#allocation38_spill] sm:$0xff]  ;;  %v7934_v33 = vld [vmem:[#allocation68_spill] sm:$0xff] }
 0x2f9   : > { %4883 = vrot.lane.b32.xlu0 %v4882_v50, %s4897_s11  ;;  %4868 = vrot.lane.b32.xlu1 %v4867_v55, %s4901_s15  ;;  %v4606_v34 = vunpack.i.h.bf16 %v7235_v3  ;;  %v1170_v41 = vsel %vm1159_vm8, %v1169_v13, %v4591_v9  ;;  %v4605_v45 = vunpack.i.l.bf16 %v7235_v3  ;;  %v4601_v14 = vunpack.i.h.bf16 %v7195_v48 }
 0x2fa   : > { %v7306_v36 = vpop.permute.xlu1 %4648  ;;  %v1171_v11 = vsel %vm1161_vm9, %v1170_v41, %v4596_v40  ;;  %v1577_v46 = vsel %vm1161_vm9, %v1576_v23, %v4630_v49  ;;  %v1570_v32 = vsel %vm1161_vm9, %v1569_v38, %v4631_v15  ;;  %v4600_v59 = vunpack.i.l.bf16 %v7195_v48  ;;  %v7935_v40 = vld [vmem:[#allocation67_spill] sm:$0xff] }
 0x2fb   : > { %v4641_v19 = vunpack.i.h.bf16 %v7281_v37  ;;  %v4640_v62 = vunpack.i.l.bf16 %v7281_v37  ;;  %v1172_v28 = vsel %vm1163_vm10, %v1171_v11, %v4601_v14  ;;  %v4636_v8 = vunpack.i.h.bf16 %v7302_v12 }
 0x2fc   : > { %v7324_v17 = vpop.permute.xlu0 %4643  ;;  %v1164_v56 = vsel %vm1163_vm10, %v1162_v21, %v4600_v59  ;;  %v1173_v52 = vsel %vm1165_vm11, %v1172_v28, %v4606_v34  ;;  %v4635_v43 = vunpack.i.l.bf16 %v7302_v12  ;;  %v4651_v22 = vunpack.i.h.bf16 %v7306_v36 }
 0x2fd   : > { %4878 = vrot.lane.b32.xlu1 %v4877_v20, %s4899_s13  ;;  %v1578_v57 = vsel %vm1163_vm10, %v1577_v46, %v4640_v62  ;;  %v1571_v10 = vsel %vm1163_vm10, %v1570_v32, %v4641_v19  ;;  %v1166_v27 = vsel %vm1165_vm11, %v1164_v56, %v4605_v45  ;;  %v4650_v16 = vunpack.i.l.bf16 %v7306_v36 }
 0x2fe   : > { %v7329_v53 = vpop.permute.xlu1 %4658  ;;  %v7933_v54 = vcombine.low %v7931_v2, %v7932_v35  ;;  %v7936_v7 = vcombine.low %v7934_v33, %v7935_v40  ;;  %v4646_v15 = vunpack.i.h.bf16 %v7324_v17  ;;  %v4645_v49 = vunpack.i.l.bf16 %v7324_v17 }
 0x300   : > { %v4654_v44 = vpop.permute.xlu0 %4653  ;;  %v2370_v13 = vsel %vm1153_vm5, %v7933_v54, %v4636_v8  ;;  %v1963_v26 = vsel %vm1153_vm5, %v7936_v7, %v4635_v43  ;;  %v7940_v8 = vld [vmem:[#allocation30_spill] sm:$0xff]  ;;  %v7941_v43 = vld [vmem:[#allocation17_spill] sm:$0xff] }
 0x301   : > { %v4656_v42 = vunpack.i.h.bf16 %v4654_v44  ;;  %v4655_v29 = vunpack.i.l.bf16 %v4654_v44  ;;  %v2371_v63 = vsel %vm1155_vm6, %v2370_v13, %v4651_v22  ;;  %v1964_v36 = vsel %vm1155_vm6, %v1963_v26, %v4650_v16 }
 0x302   : > { %v7343_v3 = vpop.permute.xlu1 %4668  ;;  %v7942_v22 = vcombine.low %v7940_v8, %v7941_v43  ;;  %v7945_v8 = vld [vmem:[#allocation59_spill] sm:$0xff]  ;;  %v7946_v43 = vld [vmem:[#allocation57_spill] sm:$0xff] }
 0x303   : > { %v1579_v48 = vsel %vm1165_vm11, %v1578_v57, %v4655_v29  ;;  %v1572_v37 = vsel %vm1165_vm11, %v1571_v10, %v4656_v42  ;;  %v4670_v2 = vunpack.i.l.bf16 %v7343_v3 }
 0x304   : > { %v4664_v50 = vpop.permute.xlu0 %4663  ;;  %v4338_v0 = vpack.c.bf16 %v1579_v48, %v1173_v52  ;;  %v4337_v25 = vpack.c.bf16 %v1572_v37, %v1166_v27  ;;  %v4661_v52 = vunpack.i.h.bf16 %v7329_v53  ;;  %v4660_v48 = vunpack.i.l.bf16 %v7329_v53  ;;  %v7937_v37 = vld [vmem:[#allocation52_spill] sm:$0xff] }
 0x305   : > { %v4666_v58 = vunpack.i.h.bf16 %v4664_v50  ;;  %v4665_v12 = vunpack.i.l.bf16 %v4664_v50  ;;  %v7938_v50 = vld [vmem:[#allocation49_spill] sm:$0xff]  ;;  %v1956_v16 = vsel %vm1153_vm5, %v7942_v22, %v4645_v49  ;;  %v7947_v22 = vcombine.low %v7945_v8, %v7946_v43 }
 0x306   : > { %v4679_v1 = vpop.permute.xlu1 %4678  ;;  %4358 = vmatprep.subr.bf16.mxu0 %v4338_v0  ;;  %v7939_v0 = vcombine.low %v7937_v37, %v7938_v50  ;;  %v1957_v26 = vsel %vm1155_vm6, %v1956_v16, %v4660_v48  ;;  %v7943_v50 = vld [vmem:[#allocation32_spill] sm:$0xff] }
 0x307   : > { %4359 = vmatpush1.bf16.msra.mxu0 %v4337_v25  ;;  %v1965_v21 = vsel %vm1157_vm7, %v1964_v36, %v4665_v12  ;;  %v2372_v34 = vsel %vm1157_vm7, %v2371_v63, %v4666_v58  ;;  %v4681_v35 = vunpack.i.h.bf16 %v4679_v1  ;;  %v4680_v54 = vunpack.i.l.bf16 %v4679_v1 }
 0x308   : > { %v4674_v55 = vpop.permute.xlu0 %4673  ;;  %v2363_v25 = vsel %vm1153_vm5, %v7939_v0, %v4646_v15  ;;  %v7944_v0 = vcombine.low %v6504_v30, %v7943_v50 }
 0x309   : > { %v4676_v38 = vunpack.i.h.bf16 %v4674_v55  ;;  %v4675_v23 = vunpack.i.l.bf16 %v4674_v55  ;;  %v4671_v55 = vunpack.i.h.bf16 %v7343_v3  ;;  %v2364_v7 = vsel %vm1155_vm6, %v2363_v25, %v4661_v52 }
 0x30a   : > { %v4694_v9 = vpop.permute.xlu1 %4693 }
 0x30b   : > { %v1966_v46 = vsel %vm1159_vm8, %v1965_v21, %v4675_v23  ;;  %v2373_v32 = vsel %vm1159_vm8, %v2372_v34, %v4676_v38  ;;  %v4696_v14 = vunpack.i.h.bf16 %v4694_v9  ;;  %v4695_v59 = vunpack.i.l.bf16 %v4694_v9 }
 0x30c   : > { %v4684_v20 = vpop.permute.xlu0 %4683  ;;  %v1958_v9 = vsel %vm1157_vm7, %v1957_v26, %v4670_v2  ;;  %v2365_v38 = vsel %vm1157_vm7, %v2364_v7, %v4671_v55 }
 0x30d   : > { %v4686_v41 = vunpack.i.h.bf16 %v4684_v20  ;;  %v4685_v45 = vunpack.i.l.bf16 %v4684_v20  ;;  %v1959_v23 = vsel %vm1159_vm8, %v1958_v9, %v4680_v54  ;;  %v2366_v3 = vsel %vm1159_vm8, %v2365_v38, %v4681_v35 }
 0x30e   : > { %v4704_v11 = vpop.permute.xlu1 %4703 }
 0x30f   : > { %v1967_v19 = vsel %vm1161_vm9, %v1966_v46, %v4685_v45  ;;  %v2374_v62 = vsel %vm1161_vm9, %v2373_v32, %v4686_v41  ;;  %v4706_v44 = vunpack.i.h.bf16 %v4704_v11  ;;  %v4705_v17 = vunpack.i.l.bf16 %v4704_v11 }
 0x310   : > { %v4689_v42 = vpop.permute.xlu0 %4688  ;;  %v1968_v29 = vsel %vm1163_vm10, %v1967_v19, %v4695_v59  ;;  %v2375_v28 = vsel %vm1163_vm10, %v2374_v62, %v4696_v14 }
 0x311   : > { %v1969_v56 = vsel %vm1165_vm11, %v1968_v29, %v4705_v17  ;;  %v2376_v10 = vsel %vm1165_vm11, %v2375_v28, %v4706_v44  ;;  %v4691_v53 = vunpack.i.h.bf16 %v4689_v42  ;;  %v4690_v33 = vunpack.i.l.bf16 %v4689_v42 }
 0x312   : > { %v4714_v57 = vpop.permute.xlu1 %4713  ;;  %v4340_v27 = vpack.c.bf16 %v2376_v10, %v1969_v56 }
 0x313   : > { %v1960_v63 = vsel %vm1161_vm9, %v1959_v23, %v4690_v33  ;;  %v2367_v36 = vsel %vm1161_vm9, %v2366_v3, %v4691_v53  ;;  %v4716_v17 = vunpack.i.h.bf16 %v4714_v57  ;;  %v4715_v42 = vunpack.i.l.bf16 %v4714_v57 }
 0x314   : > { %v4699_v13 = vpop.permute.xlu0 %4698  ;;  %4360 = vmatprep.subr.bf16.mxu0 %v4340_v27 }
 0x315   : > { %v4701_v58 = vunpack.i.h.bf16 %v4699_v13  ;;  %v4700_v12 = vunpack.i.l.bf16 %v4699_v13  ;;  %v3150_v25 = vsel %vm1153_vm5, %v7944_v0, %v4716_v17  ;;  %v2760_v16 = vsel %vm1153_vm5, %v7947_v22, %v4715_v42  ;;  %v7951_v17 = vld [vmem:[#allocation40_spill] sm:$0xff]  ;;  %v7952_v42 = vld [vmem:[#allocation65_spill] sm:$0xff] }
 0x316   : > { %v4724_v40 = vpop.permute.xlu1 %4723 }
 0x317   : > { %v1961_v20 = vsel %vm1163_vm10, %v1960_v63, %v4700_v12  ;;  %v2368_v21 = vsel %vm1163_vm10, %v2367_v36, %v4701_v58  ;;  %v4726_v29 = vunpack.i.h.bf16 %v4724_v40  ;;  %v4725_v28 = vunpack.i.l.bf16 %v4724_v40 }
 0x318   : > { %v4709_v1 = vpop.permute.xlu0 %4708 }
 0x319   : > { %v4711_v15 = vunpack.i.h.bf16 %v4709_v1  ;;  %v4710_v49 = vunpack.i.l.bf16 %v4709_v1  ;;  %v2761_v2 = vsel %vm1155_vm6, %v2760_v16, %v4725_v28  ;;  %v3151_v35 = vsel %vm1155_vm6, %v3150_v25, %v4726_v29 }
 0x31a   : > { %v4734_v34 = vpop.permute.xlu1 %4733  ;;  %v7953_v29 = vcombine.low %v7951_v17, %v7952_v42 }
 0x31b   : > { %v1962_v41 = vsel %vm1165_vm11, %v1961_v20, %v4710_v49  ;;  %v2369_v45 = vsel %vm1165_vm11, %v2368_v21, %v4711_v15  ;;  %v4736_v10 = vunpack.i.h.bf16 %v4734_v34  ;;  %v4735_v52 = vunpack.i.l.bf16 %v4734_v34 }
 0x31c   : > { %v4339_v11 = vpack.c.bf16 %v2369_v45, %v1962_v41  ;;  %v4719_v46 = vpop.permute.xlu0 %4718  ;;  %v7948_v45 = vld [vmem:[#allocation33_spill] sm:$0xff] }
 0x31d   : > { %v2762_v53 = vsel %vm1157_vm7, %v2761_v2, %v4735_v52  ;;  %v3152_v33 = vsel %vm1157_vm7, %v3151_v35, %v4736_v10  ;;  %v4721_v49 = vunpack.i.h.bf16 %v4719_v46  ;;  %v4720_v20 = vunpack.i.l.bf16 %v4719_v46 }
 0x31e   : > { %4361 = vmatpush1.bf16.msra.mxu0 %v4339_v11  ;;  %v4739_v32 = vpop.permute.xlu1 %4738  ;;  %v7949_v11 = vld [vmem:[#allocation35_spill] sm:$0xff] }
 0x31f   : > { %v3143_v28 = vsel %vm1153_vm5, %v7953_v29, %v4721_v49  ;;  %v4741_v52 = vunpack.i.h.bf16 %v4739_v32  ;;  %v4740_v46 = vunpack.i.l.bf16 %v4739_v32 }
 0x320   : > { %v4729_v14 = vpop.permute.xlu0 %4728 }
 0x321   : > { %v4731_v21 = vunpack.i.h.bf16 %v4729_v14  ;;  %v4730_v34 = vunpack.i.l.bf16 %v4729_v14 }
 0x322   : > { %v4749_v59 = vpop.permute.xlu1 %4748 }
 0x323   : > { %v3144_v10 = vsel %vm1155_vm6, %v3143_v28, %v4731_v21  ;;  %v4751_v25 = vunpack.i.h.bf16 %v4749_v59  ;;  %v4750_v8 = vunpack.i.l.bf16 %v4749_v59  ;;  %v7954_v21 = vld [vmem:[#allocation63_spill] sm:$0xff]  ;;  %v7960_v28 = vcombine.low %v7911_v4, %v7910_v60 }
 0x324   : > { %v4744_v19 = vpop.permute.xlu0 %4743 }
 0x325   : > { %v4746_v48 = vunpack.i.h.bf16 %v4744_v19  ;;  %v4745_v27 = vunpack.i.l.bf16 %v4744_v19  ;;  %v7950_v19 = vcombine.low %v7948_v45, %v7949_v11  ;;  %v7957_v11 = vld [vmem:[#allocation53_spill] sm:$0xff] }
 0x327   : > { %v2763_v30 = vsel %vm1159_vm8, %v2762_v53, %v4745_v27  ;;  %v3153_v40 = vsel %vm1159_vm8, %v3152_v33, %v4746_v48  ;;  %v3145_v27 = vsel %vm1157_vm7, %v3144_v10, %v4741_v52 }
 0x328   : > { %v4754_v56 = vpop.permute.xlu0 %4753 }
 0x329   : > { %v4756_v57 = vunpack.i.h.bf16 %v4754_v56  ;;  %v4755_v55 = vunpack.i.l.bf16 %v4754_v56 }
 0x32b   : > { %v7403_v62 = vpop.permute.xlu1 %4758  ;;  %v2764_v58 = vsel %vm1161_vm9, %v2763_v30, %v4755_v55  ;;  %v3154_v12 = vsel %vm1161_vm9, %v3153_v40, %v4756_v57  ;;  %v3146_v57 = vsel %vm1159_vm8, %v3145_v27, %v4751_v25 }
 0x32c   : > { %v4764_v7 = vpop.permute.xlu0 %4763 }
 0x32d   : > { %v4766_v50 = vunpack.i.h.bf16 %v4764_v7  ;;  %v4765_v0 = vunpack.i.l.bf16 %v4764_v7 }
 0x32f   : > { %v4769_v44 = vpop.permute.xlu1 %4768  ;;  %v3147_v32 = vsel %vm1161_vm9, %v3146_v57, %v4766_v50 }
 0x330   : > { %v4771_v54 = vunpack.i.h.bf16 %v4769_v44  ;;  %v4770_v13 = vunpack.i.l.bf16 %v4769_v44  ;;  %v2753_v44 = vsel %vm1153_vm5, %v7950_v19, %v4720_v20  ;;  %v7958_v19 = vld [vmem:[#allocation50_spill] sm:$0xff] }
 0x331   : > { %v2754_v56 = vsel %vm1155_vm6, %v2753_v44, %v4730_v34  ;;  %v7955_v34 = vld [vmem:[#allocation37_spill] sm:$0xff]  ;;  %v7959_v44 = vcombine.low %v7957_v11, %v7958_v19 }
 0x332   : > { %v2765_v23 = vsel %vm1163_vm10, %v2764_v58, %v4770_v13  ;;  %v3155_v3 = vsel %vm1163_vm10, %v3154_v12, %v4771_v54  ;;  %v2755_v14 = vsel %vm1157_vm7, %v2754_v56, %v4740_v46  ;;  %v4761_v12 = vunpack.i.h.bf16 %v7403_v62 }
 0x333   : > { %v7405_v37 = vpop.permute.xlu1 %4778  ;;  %v2756_v16 = vsel %vm1159_vm8, %v2755_v14, %v4750_v8 }
 0x334   : > { %v2757_v2 = vsel %vm1161_vm9, %v2756_v16, %v4765_v0 }
 0x337   : > { %v4789_v26 = vpop.permute.xlu1 %4788 }
 0x338   : > { %v4791_v9 = vunpack.i.h.bf16 %v4789_v26  ;;  %v4790_v38 = vunpack.i.l.bf16 %v4789_v26 }
 0x33a   : > { %v2766_v1 = vsel %vm1165_vm11, %v2765_v23, %v4790_v38  ;;  %v3156_v63 = vsel %vm1165_vm11, %v3155_v3, %v4791_v9  ;;  %v4760_v9 = vunpack.i.l.bf16 %v7403_v62  ;;  %v4781_v23 = vunpack.i.h.bf16 %v7405_v37 }
 0x33b   : > { %v4774_v36 = vpop.permute.xlu0 %4773  ;;  %v4342_v15 = vpack.c.bf16 %v3156_v63, %v2766_v1  ;;  %v4799_v7 = vpop.permute.xlu1 %4798  ;;  %v4780_v3 = vunpack.i.l.bf16 %v7405_v37 }
 0x33c   : > { %v4776_v1 = vunpack.i.h.bf16 %v4774_v36  ;;  %v4775_v63 = vunpack.i.l.bf16 %v4774_v36  ;;  %v3549_v62 = vsel %vm1153_vm5, %v7959_v44, %v4760_v9  ;;  %v4801_v17 = vunpack.i.h.bf16 %v4799_v7 }
 0x33d   : > { %4362 = vmatprep.subr.bf16.mxu0 %v4342_v15  ;;  %v4800_v42 = vunpack.i.l.bf16 %v4799_v7  ;;  %v3550_v37 = vsel %vm1155_vm6, %v3549_v62, %v4780_v3 }
 0x33e   : > { %v3542_v56 = vsel %vm1153_vm5, %v7960_v28, %v4775_v63  ;;  %v3932_v10 = vsel %vm1153_vm5, %v3732_v24, %v4776_v1 }
 0x33f   : > { %v4784_v41 = vpop.permute.xlu0 %4783  ;;  %v4809_v58 = vpop.permute.xlu1 %4808  ;;  %v3551_v60 = vsel %vm1157_vm7, %v3550_v37, %v4800_v42 }
 0x340   : > { %v4786_v43 = vunpack.i.h.bf16 %v4784_v41  ;;  %v4785_v22 = vunpack.i.l.bf16 %v4784_v41  ;;  %v7956_v41 = vcombine.low %v7954_v21, %v7955_v34  ;;  %v4811_v50 = vunpack.i.h.bf16 %v4809_v58 }
 0x341   : > { %v4810_v0 = vunpack.i.l.bf16 %v4809_v58 }
 0x342   : > { %v2758_v13 = vsel %vm1163_vm10, %v2757_v2, %v4785_v22  ;;  %v3148_v53 = vsel %vm1163_vm10, %v3147_v32, %v4786_v43  ;;  %v3939_v45 = vsel %vm1153_vm5, %v7956_v41, %v4761_v12 }
 0x343   : > { %v4794_v48 = vpop.permute.xlu0 %4793  ;;  %v3940_v36 = vsel %vm1155_vm6, %v3939_v45, %v4781_v23 }
 0x344   : > { %v4819_v15 = vpop.permute.xlu1 %4818  ;;  %v4796_v49 = vunpack.i.h.bf16 %v4794_v48  ;;  %v4795_v20 = vunpack.i.l.bf16 %v4794_v48  ;;  %v3941_v4 = vsel %vm1157_vm7, %v3940_v36, %v4801_v17 }
 0x345   : > { %v4820_v43 = vunpack.i.l.bf16 %v4819_v15 }
 0x346   : > { %v3543_v46 = vsel %vm1155_vm6, %v3542_v56, %v4795_v20  ;;  %v3933_v48 = vsel %vm1155_vm6, %v3932_v10, %v4796_v49 }
 0x347   : > { %v4804_v55 = vpop.permute.xlu0 %4803  ;;  %v3544_v51 = vsel %vm1157_vm7, %v3543_v46, %v4810_v0  ;;  %v3934_v18 = vsel %vm1157_vm7, %v3933_v48, %v4811_v50 }
 0x348   : > { %v4806_v35 = vunpack.i.h.bf16 %v4804_v55  ;;  %v4805_v54 = vunpack.i.l.bf16 %v4804_v55 }
 0x34a   : > { %v2759_v33 = vsel %vm1165_vm11, %v2758_v13, %v4805_v54  ;;  %v3149_v59 = vsel %vm1165_vm11, %v3148_v53, %v4806_v35 }
 0x34b   : > { %v4814_v30 = vpop.permute.xlu0 %4813  ;;  %v4341_v40 = vpack.c.bf16 %v3149_v59, %v2759_v33  ;;  %v4821_v59 = vunpack.i.h.bf16 %v4819_v15 }
 0x34c   : > { %v4816_v14 = vunpack.i.h.bf16 %v4814_v30  ;;  %v4815_v27 = vunpack.i.l.bf16 %v4814_v30  ;;  %v3545_v30 = vsel %vm1159_vm8, %v3544_v51, %v4820_v43 }
 0x34d   : > { %4363 = vmatpush1.bf16.msra.mxu0 %v4341_v40  ;;  %v3935_v1 = vsel %vm1159_vm8, %v3934_v18, %v4821_v59 }
 0x34e   : > { %v3552_v55 = vsel %vm1159_vm8, %v3551_v60, %v4815_v27  ;;  %v3942_v2 = vsel %vm1159_vm8, %v3941_v4, %v4816_v14 }
 0x34f   : > { %v4824_v26 = vpop.permute.xlu0 %4823 }
 0x350   : > { %v4826_v25 = vunpack.i.h.bf16 %v4824_v26  ;;  %v4825_v8 = vunpack.i.l.bf16 %v4824_v26 }
 0x352   : > { %v3553_v54 = vsel %vm1161_vm9, %v3552_v55, %v4825_v8  ;;  %v3943_v13 = vsel %vm1161_vm9, %v3942_v2, %v4826_v25  ;;  %v4336_v2 = vld [vmem:[%s7533_s3] sm:$0xf] }
 0x353   : > { %v4834_v38 = vpop.permute.xlu0 %4833 }
 0x354   : > { %v4836_v53 = vunpack.i.h.bf16 %v4834_v38  ;;  %v4835_v33 = vunpack.i.l.bf16 %v4834_v38 }
 0x356   : > { %v3546_v15 = vsel %vm1161_vm9, %v3545_v30, %v4835_v33  ;;  %v3936_v20 = vsel %vm1161_vm9, %v3935_v1, %v4836_v53 }
 0x35b   : > { %v7459_v29 = vpop.permute.xlu0 %4843  ;;  %v4829_v52 = vpop.permute.xlu1 %4828 }
 0x35c   : > { %v4831_v21 = vunpack.i.h.bf16 %v4829_v52  ;;  %v4830_v34 = vunpack.i.l.bf16 %v4829_v52  ;;  %v4846_v62 = vunpack.i.h.bf16 %v7459_v29  ;;  %v4845_v17 = vunpack.i.l.bf16 %v7459_v29 }
 0x35e   : > { %v4329_v36 = vsel %vm1153_vm5, %v4258_v31, %v4831_v21  ;;  %v4322_v28 = vsel %vm1153_vm5, %v4122_v47, %v4830_v34 }
 0x35f   : > { %v4854_v22 = vpop.permute.xlu0 %4853  ;;  %v4839_v57 = vpop.permute.xlu1 %4838  ;;  %v4323_v46 = vsel %vm1155_vm6, %v4322_v28, %v4845_v17  ;;  %v4330_v29 = vsel %vm1155_vm6, %v4329_v36, %v4846_v62 }
 0x360   : > { %v4856_v24 = vunpack.i.h.bf16 %v4854_v22  ;;  %v4855_v16 = vunpack.i.l.bf16 %v4854_v22  ;;  %v4841_v32 = vunpack.i.h.bf16 %v4839_v57  ;;  %v4840_v35 = vunpack.i.l.bf16 %v4839_v57 }
 0x362   : > { %v3554_v40 = vsel %vm1163_vm10, %v3553_v54, %v4840_v35  ;;  %v3944_v7 = vsel %vm1163_vm10, %v3943_v13, %v4841_v32 }
 0x363   : > { %v4864_v26 = vpop.permute.xlu0 %4863  ;;  %v4849_v9 = vpop.permute.xlu1 %4848  ;;  %v3555_v23 = vsel %vm1165_vm11, %v3554_v40, %v4855_v16  ;;  %v3945_v3 = vsel %vm1165_vm11, %v3944_v7, %v4856_v24 }
 0x364   : > { %v4866_v58 = vunpack.i.h.bf16 %v4864_v26  ;;  %v4865_v12 = vunpack.i.l.bf16 %v4864_v26  ;;  %v4851_v63 = vunpack.i.h.bf16 %v4849_v9  ;;  %v4850_v49 = vunpack.i.l.bf16 %v4849_v9 }
 0x365   : > { %v4344_v38 = vpack.c.bf16 %v3945_v3, %v3555_v23 }
 0x366   : > { %v3547_v41 = vsel %vm1163_vm10, %v3546_v15, %v4850_v49  ;;  %v3937_v45 = vsel %vm1163_vm10, %v3936_v20, %v4851_v63 }
 0x367   : > { %4364 = vmatprep.subr.bf16.mxu0 %v4344_v38  ;;  %v4859_v11 = vpop.permute.xlu1 %4858  ;;  %v3548_v19 = vsel %vm1165_vm11, %v3547_v41, %v4865_v12  ;;  %v3938_v44 = vsel %vm1165_vm11, %v3937_v45, %v4866_v58  ;;  %v4874_v42 = vpop.permute.xlu0 %4873 }
 0x368   : > { %v4343_v37 = vpack.c.bf16 %v3938_v44, %v3548_v19  ;;  %v4861_v56 = vunpack.i.h.bf16 %v4859_v11  ;;  %v4860_v10 = vunpack.i.l.bf16 %v4859_v11  ;;  %v4876_v39 = vunpack.i.h.bf16 %v4874_v42 }
 0x369   : > { %v4875_v47 = vunpack.i.l.bf16 %v4874_v42 }
 0x36a   : > { %4365 = vmatpush1.bf16.msra.mxu0 %v4343_v37  ;;  %v4324_v27 = vsel %vm1157_vm7, %v4323_v46, %v4860_v10  ;;  %v4331_v61 = vsel %vm1157_vm7, %v4330_v29, %v4861_v56 }
 0x36b   : > { %v4869_v52 = vpop.permute.xlu1 %4868  ;;  %v4884_v5 = vpop.permute.xlu0 %4883 }
 0x36c   : > { %v4871_v48 = vunpack.i.h.bf16 %v4869_v52  ;;  %v4870_v14 = vunpack.i.l.bf16 %v4869_v52  ;;  %v4886_v8 = vunpack.i.h.bf16 %v4884_v5  ;;  %v4885_v60 = vunpack.i.l.bf16 %v4884_v5 }
 0x36e   : > { %v4325_v31 = vsel %vm1159_vm8, %v4324_v27, %v4870_v14  ;;  %v4332_v6 = vsel %vm1159_vm8, %v4331_v61, %v4871_v48 }
 0x36f   : > { %v4879_v50 = vpop.permute.xlu1 %4878  ;;  %v4333_v4 = vsel %vm1161_vm9, %v4332_v6, %v4876_v39  ;;  %v4326_v43 = vsel %vm1161_vm9, %v4325_v31, %v4875_v47 }
 0x370   : > { %v4881_v0 = vunpack.i.h.bf16 %v4879_v50  ;;  %v4880_v25 = vunpack.i.l.bf16 %v4879_v50 }
 0x372   : > { %v4334_v22 = vsel %vm1163_vm10, %v4333_v4, %v4881_v0  ;;  %v4327_v51 = vsel %vm1163_vm10, %v4326_v43, %v4880_v25 }
 0x373   : > { %v4335_v18 = vsel %vm1165_vm11, %v4334_v22, %v4886_v8  ;;  %v4328_v24 = vsel %vm1165_vm11, %v4327_v51, %v4885_v60 }
 0x374   : > { %v4346_v16 = vpack.c.bf16 %v4335_v18, %v4335_v18  ;;  %v4345_v57 = vpack.c.bf16 %v4328_v24, %v4328_v24 }
 0x376   : > { %4543 = vmatprep.subr.msk.bf16.mxu0 %vm4351_vm12, %v4346_v16  ;;  %v4353_v55 = vsel %vm4351_vm12, %v4345_v57, 0 }
 0x377   : > { %4367 = vmatpush1.bf16.msra.mxu0 %v4353_v55 }
 0x37a   : > { %4544 = vmatmul.mubr.msk.bf16.vlgmr.msra.gmra.mrb[0].mxu0 %vm4347_vm13, %v4336_v2 }
 0x44d   : > { %v4392_v32 = vpop.f32.mrb[0].mxu0 }
 0x44e   : > { %4399 = vst [vmem:[%s270_s26] sm:$0xff] %v4392_v32  ;;  %v4404_v35 = vmul.f32 %v4392_v32, %v4392_v32  ;;  %v4394_v54 = vpop.f32.mrb[1].mxu0 }
 0x44f   : > { %4400 = vst [vmem:[%s270_s26 + $0x8] sm:$0xff] %v4394_v54  ;;  %v4401_v13 = vadd.f32 %v4394_v54, %v4392_v32  ;;  %v4405_v53 = vmul.f32 %v4394_v54, %v4394_v54  ;;  %v4396_v33 = vpop.f32.mrb[2].mxu0 }
 0x450   : > { %v4397_v59 = vpop.f32.mrb[3].mxu0 }
 0x451   : > { %4402 = vadd.xlane.f32.xlu1 %v4401_v13  ;;  %v4406_v30 = vadd.f32 %v4405_v53, %v4404_v35 }
 0x453   : > { %4407 = vadd.xlane.f32.xlu0 %v4406_v30 }
 0x4de   : > { %v4403_v40 = vpop.xlane.xlu1 %4402 }
 0x4e0   : > { %v4408_v7 = vpop.xlane.xlu0 %4407 }
 0x4e1   : > { %v4409_v26 = vsel %vm775_vm1, %v4403_v40, %v4408_v7 }
 0x4e2   : > { %4411 = vst.msk [vmem:[%s274_s7] sm:$0xff] %vm4410_vm14, %v4409_v26 }
 0x4e3 PF: > { %s17_s21 = sadd.s32 1, %s4893_s21  }
 0x4e4   : > { %p14_p4 = scmp.ge.s32.totalorder %s17_s21, 4  }
 0x4e6   :  { %16 = sbr.rel (!%p14_p4) target bundleno = 1 (0x1), region = 90 }

// kernel: fcc_forward.3
= control target key start
LH: loop header
LB: loop body
LE: loop exit
PB: predicated region body
PF: predicated region fallthrough
CT: control target
= control target key end

     0   :  { %s4476_s12 = smov 0   ;;  %s7079_s0 = inlined_call_operand.vmem [shape: f32[2,8,16,16], index: 0, kind: input, shape index: {}]   ;;  %s7080_s1 = inlined_call_operand.vmem [shape: bf16[8,72], index: 1, kind: input, shape index: {}]   ;;  %s7081_s2 = inlined_call_operand.vmem [shape: f32[2,8,256], index: 2, kind: output, shape index: {0}]   ;;  %s7082_s3 = inlined_call_operand.vmem [shape: f32[2,8,2], index: 3, kind: output, shape index: {1}]  }
   0x1 LB: > { %s4083_s13 = sadd.s32 4294967295, %s4441_s12   ;;  %p4087_p0 = scmp.ge.s32.totalorder %s4441_s12, 1  ;;  %s4441_s12 = sphi %s4476_s12, %s14_s12  }
   0x2   : > { %p140_p1 = scmp.lt.s32.totalorder %s4441_s12, 3 }
   0x4   : > { %p141_p2 = pnand %p4087_p0, %p140_p1 }
   0x6   : > { %144 = sbr.rel (%p141_p2) target bundleno = 986 (0x3da), region = 28 }
   0xd   : > { %p168_p3 = scmp.lt.s32.totalorder %s4083_s13, 1  ;;  %vm215_vm0 = vcmask 1040384   ;;  %s4443_s18 = smov 1   ;;  %vm360_vm1 = vcmask 7168   ;;  %v4444_v58 = vmov 1983009808   ;;  %v415_v60 = vlaneseq }
   0xe   : > { %v413_v59 = vunpack.c.l.s4 %v4444_v58  ;;  %vm385_vm2 = vcmask 138240   ;;  %s4445_s19 = smov 127   ;;  %vm2742_vm3 = vcmask 1045504   ;;  %vm1563_vm4 = vcmask 1046528   ;;  %s4447_s20 = smov 126  }
   0xf   : > { %s7551_s13 = smov (!%p168_p3, %s4083_s13), 1  ;;  %s4448_s21 = smov 16   ;;  %vm738_vm5 = vcmask 130048   ;;  %vm740_vm6 = vcmask 261120   ;;  %vm742_vm7 = vcmask 392192   ;;  %vm744_vm8 = vcmask 523264  }
  0x10   : > { %s4097_s14 = sshll.u32 %s7551_s13, 7  ;;  %s4449_s22 = smov 48   ;;  %vm746_vm9 = vcmask 654336   ;;  %vm748_vm10 = vcmask 785408   ;;  %vm750_vm11 = vcmask 916480   ;;  %vm3936_vm12 = vcmask 1043456  }
  0x11   : > { %s4490_s17 = scalar_lea.vmem %s7079_s0, %s4097_s14  ;;  %s4450_s23 = smov 32   ;;  %vm3932_vm13 = vcmask 588800   ;;  %vm3995_vm14 = vcmask 15360  }
  0x12   : > { %v184_v0 = vld [vmem:[%s4490_s17 + $0x8] sm:$0xff]  ;;  %v183_v1 = vld [vmem:[%s4490_s17] sm:$0xff]  ;;  %v185_v2 = vld [vmem:[%s4490_s17 + $0x10] sm:$0xff]  ;;  %s4451_s24 = smov 80   ;;  %s4452_s25 = smov 64  }
  0x13   : > { %v217_v3 = vrot.slane %v184_v0, 7  ;;  %v216_v4 = vrot.slane %v183_v1, 7  ;;  %v186_v5 = vld [vmem:[%s4490_s17 + $0x18] sm:$0xff]  ;;  %v219_v6 = vrot.slane %v185_v2, 7  ;;  %v189_v7 = vld [vmem:[%s4490_s17 + $0x30] sm:$0xff]  ;;  %v187_v10 = vld [vmem:[%s4490_s17 + $0x20] sm:$0xff]  ;;  %v414_v1 = vunpack.c.0.s8 %v413_v59 }
  0x14   : > { %v190_v8 = vld [vmem:[%s4490_s17 + $0x38] sm:$0xff]  ;;  %v220_v9 = vrot.slane %v186_v5, 7  ;;  %v188_v11 = vld [vmem:[%s4490_s17 + $0x28] sm:$0xff]  ;;  %v225_v14 = vrot.slane %v189_v7, 7  ;;  %v222_v18 = vrot.slane %v187_v10, 7  ;;  %v193_v20 = vld [vmem:[%s4490_s17 + $0x50] sm:$0xff] }
  0x15   : > { %v264_v12 = vsel %vm215_vm0, %v217_v3, 0.0  ;;  %v256_v13 = vsel %vm215_vm0, 0.0, %v216_v4  ;;  %v226_v15 = vrot.slane %v190_v8, 7  ;;  %v218_v17 = vsel %vm215_vm0, %v216_v4, %v217_v3  ;;  %v194_v21 = vld [vmem:[%s4490_s17 + $0x58] sm:$0xff]  ;;  %v191_v22 = vld [vmem:[%s4490_s17 + $0x40] sm:$0xff]  ;;  %v192_v23 = vld [vmem:[%s4490_s17 + $0x48] sm:$0xff] }
  0x16   : > { %292 = vrot.lane.b32.xlu1 %v264_v12, %s4443_s18  ;;  %288 = vrot.lane.b32.xlu0 %v256_v13, %s4443_s18  ;;  %v221_v16 = vsel %vm215_vm0, %v219_v6, %v220_v9  ;;  %v223_v19 = vrot.slane %v188_v11, 7  ;;  %v231_v25 = vrot.slane %v193_v20, 7  ;;  %v232_v27 = vrot.slane %v194_v21, 7  ;;  %v197_v30 = vld [vmem:[%s4490_s17 + $0x70] sm:$0xff]  ;;  %v198_v31 = vld [vmem:[%s4490_s17 + $0x78] sm:$0xff]  ;;  %s4453_s26 = smov 112  }
  0x17   : > { %v227_v24 = vsel %vm215_vm0, %v225_v14, %v226_v15  ;;  %v228_v28 = vrot.slane %v191_v22, 7  ;;  %v229_v29 = vrot.slane %v192_v23, 7  ;;  %v195_v32 = vld [vmem:[%s4490_s17 + $0x60] sm:$0xff]  ;;  %v196_v33 = vld [vmem:[%s4490_s17 + $0x68] sm:$0xff]  ;;  %v237_v34 = vrot.slane %v197_v30, 7  ;;  %s4454_s27 = smov 96  }
  0x18   : > { %v224_v26 = vsel %vm215_vm0, %v222_v18, %v223_v19  ;;  %v238_v35 = vrot.slane %v198_v31, 7  ;;  %v233_v36 = vsel %vm215_vm0, %v231_v25, %v232_v27  ;;  %v234_v38 = vrot.slane %v195_v32, 7  ;;  %s4098_s30 = sshll.u32 %s7551_s13, 4  ;;  %s4092_s7 = sshll.u32 %s7551_s13, 3 }
  0x19   : > { %v230_v37 = vsel %vm215_vm0, %v228_v28, %v229_v29  ;;  %v235_v39 = vrot.slane %v196_v33, 7  ;;  %v258_v42 = vsel %vm215_vm0, 0.0, %v222_v18  ;;  %v257_v43 = vsel %vm215_vm0, 0.0, %v219_v6  ;;  %s177_s6 = scalar_lea.vmem %s7081_s2, %s4098_s30  ;;  %s181_s10 = scalar_lea.vmem %s7082_s3, %s4092_s7 }
  0x1a   : > { %296 = vrot.lane.b32.xlu1 %v221_v16, %s4443_s18  ;;  %290 = vrot.lane.b32.xlu0 %v218_v17, %s4443_s18  ;;  %v239_v40 = vsel %vm215_vm0, %v237_v34, %v238_v35  ;;  %v260_v44 = vsel %vm215_vm0, 0.0, %v228_v28  ;;  %v259_v45 = vsel %vm215_vm0, 0.0, %v225_v14  ;;  %v262_v46 = vsel %vm215_vm0, 0.0, %v234_v38 }
  0x1b   : > { %v236_v41 = vsel %vm215_vm0, %v234_v38, %v235_v39  ;;  %v261_v47 = vsel %vm215_vm0, 0.0, %v231_v25  ;;  %v265_v48 = vsel %vm215_vm0, %v220_v9, 0.0  ;;  %v263_v49 = vsel %vm215_vm0, 0.0, %v237_v34 }
  0x1c   : > { %v267_v50 = vsel %vm215_vm0, %v226_v15, 0.0  ;;  %v266_v51 = vsel %vm215_vm0, %v223_v19, 0.0  ;;  %v269_v52 = vsel %vm215_vm0, %v232_v27, 0.0  ;;  %v268_v53 = vsel %vm215_vm0, %v229_v29, 0.0 }
  0x1d   : > { %v271_v54 = vsel %vm215_vm0, %v238_v35, 0.0  ;;  %v270_v55 = vsel %vm215_vm0, %v235_v39, 0.0  ;;  %v4558_v2 = vshrl.u32 %v415_v60, 7  ;;  %v4446_v27 = vmov 1934713408  }
  0x1e   : > { %308 = vrot.lane.b32.xlu1 %v227_v24, %s4443_s18  ;;  %302 = vrot.lane.b32.xlu0 %v224_v26, %s4443_s18  ;;  %v477_v28 = vunpack.c.l.s4 %v4446_v27 }
  0x1f   : > { %v4584_v16 = vsub.s32 %v414_v1, %v4558_v2 }
  0x22   : > { %320 = vrot.lane.b32.xlu1 %v233_v36, %s4443_s18  ;;  %314 = vrot.lane.b32.xlu0 %v230_v37, %s4443_s18 }
  0x26   : > { %332 = vrot.lane.b32.xlu1 %v239_v40, %s4443_s18  ;;  %326 = vrot.lane.b32.xlu0 %v236_v41, %s4443_s18 }
  0x2a   : > { %300 = vrot.lane.b32.xlu1 %v258_v42, %s4443_s18  ;;  %294 = vrot.lane.b32.xlu0 %v257_v43, %s4443_s18 }
  0x2e   : > { %312 = vrot.lane.b32.xlu1 %v260_v44, %s4443_s18  ;;  %306 = vrot.lane.b32.xlu0 %v259_v45, %s4443_s18  ;;  %v478_v45 = vunpack.c.0.s8 %v477_v28 }
  0x32   : > { %324 = vrot.lane.b32.xlu1 %v262_v46, %s4443_s18  ;;  %318 = vrot.lane.b32.xlu0 %v261_v47, %s4443_s18 }
  0x36   : > { %298 = vrot.lane.b32.xlu1 %v265_v48, %s4443_s18  ;;  %330 = vrot.lane.b32.xlu0 %v263_v49, %s4443_s18 }
  0x3a   : > { %310 = vrot.lane.b32.xlu1 %v267_v50, %s4443_s18  ;;  %304 = vrot.lane.b32.xlu0 %v266_v51, %s4443_s18 }
  0x3e   : > { %322 = vrot.lane.b32.xlu1 %v269_v52, %s4443_s18  ;;  %316 = vrot.lane.b32.xlu0 %v268_v53, %s4443_s18 }
  0x42   : > { %334 = vrot.lane.b32.xlu1 %v271_v54, %s4443_s18  ;;  %328 = vrot.lane.b32.xlu0 %v270_v55, %s4443_s18  ;;  %v4656_v55 = vsub.s32 %v478_v45, %v4558_v2 }
  0x88   : > { %v293_v56 = vpop.permute.xlu1 %292  ;;  %v289_v57 = vpop.permute.xlu0 %288 }
  0x89   : > { %v363_v61 = vsel %vm360_vm1, 0.0, %v293_v56  ;;  %v361_v62 = vsel %vm360_vm1, 0.0, %v289_v57 }
  0x8a   : > { %v4561_v3 = vsel %vm385_vm2, %v363_v61, 0.0  ;;  %v4564_v4 = vsel %vm385_vm2, %v361_v62, 0.0 }
  0x8b   : > { %v2746_v10 = vrot.slane %v4561_v3, 2  ;;  %v2743_v13 = vrot.slane %v4564_v4, 2 }
  0x8c   : > { %v297_v63 = vpop.permute.xlu1 %296  ;;  %v291_v0 = vpop.permute.xlu0 %290 }
  0x8d   : > { %v365_v5 = vsel %vm360_vm1, 0.0, %v297_v63  ;;  %v362_v6 = vsel %vm360_vm1, 0.0, %v291_v0 }
  0x8e   : > { %v4569_v7 = vsel %vm385_vm2, %v365_v5, 0.0  ;;  %v4572_v8 = vsel %vm385_vm2, %v362_v6, 0.0 }
  0x8f   : > { %781 = vrot.lane.b32.xlu0 %v4569_v7, %s4445_s19  ;;  %777 = vrot.lane.b32.xlu1 %v4572_v8, %s4445_s19  ;;  %v2744_v9 = vrot.slane %v4572_v8, 2 }
  0x90   : > { %v309_v11 = vpop.permute.xlu1 %308  ;;  %v303_v12 = vpop.permute.xlu0 %302 }
  0x91   : > { %v371_v14 = vsel %vm360_vm1, 0.0, %v309_v11  ;;  %v368_v15 = vsel %vm360_vm1, 0.0, %v303_v12  ;;  %v4593_v19 = vsel %vm2742_vm3, %v2744_v9, %v2746_v10  ;;  %v4596_v20 = vsel %vm2742_vm3, %v2743_v13, %v2744_v9 }
  0x92   : > { %v4587_v17 = vsel %vm385_vm2, %v371_v14, 0.0  ;;  %v4590_v18 = vsel %vm385_vm2, %v368_v15, 0.0  ;;  %7239 = vst [vmem:[#allocation2_spill] sm:$0xff] %v4596_v20 }
  0x93   : > { %v562_v21 = vcombine.low %v4569_v7, %v4587_v17  ;;  %v563_v22 = vcombine.high %v4569_v7, %v4587_v17  ;;  %v546_v23 = vcombine.low %v4572_v8, %v4590_v18  ;;  %v547_v24 = vcombine.high %v4572_v8, %v4590_v18  ;;  %789 = vrot.lane.b32.xlu0 %v4587_v17, %s4445_s19 }
  0x94   : > { %785 = vrot.lane.b32.xlu1 %v4590_v18, %s4445_s19  ;;  %v321_v25 = vpop.permute.xlu1 %320  ;;  %v315_v26 = vpop.permute.xlu0 %314 }
  0x95   : > { %v377_v29 = vsel %vm360_vm1, 0.0, %v321_v25  ;;  %v374_v30 = vsel %vm360_vm1, 0.0, %v315_v26  ;;  %v4613_v31 = vrot.slane %v546_v23, %v4584_v16  ;;  %v4616_v32 = vrot.slane %v562_v21, %v4584_v16 }
  0x96   : > { %v4619_v33 = vsel %vm385_vm2, %v377_v29, 0.0  ;;  %v4622_v34 = vsel %vm385_vm2, %v374_v30, 0.0  ;;  %v561_v35 = vrot.slane %v547_v24, %v4584_v16  ;;  %v577_v36 = vrot.slane %v563_v22, %v4584_v16 }
  0x97   : > { %797 = vrot.lane.b32.xlu0 %v4619_v33, %s4445_s19  ;;  %v610_v37 = vcombine.low %v4613_v31, %v4616_v32 }
  0x98   : > { %793 = vrot.lane.b32.xlu1 %v4622_v34, %s4445_s19  ;;  %v333_v39 = vpop.permute.xlu1 %332  ;;  %v327_v40 = vpop.permute.xlu0 %326  ;;  %v626_v41 = vcombine.low %v561_v35, %v577_v36  ;;  %v627_v42 = vcombine.high %v561_v35, %v577_v36 }
  0x99   : > { %v383_v43 = vsel %vm360_vm1, 0.0, %v333_v39  ;;  %v380_v44 = vsel %vm360_vm1, 0.0, %v327_v40  ;;  %v4678_v6 = vrot.slane %v610_v37, %v4656_v55 }
  0x9a   : > { %v4637_v46 = vsel %vm385_vm2, %v383_v43, 0.0  ;;  %v4640_v47 = vsel %vm385_vm2, %v380_v44, 0.0  ;;  %v4697_v21 = vrot.slane %v626_v41, %v4656_v55  ;;  %v4714_v28 = vrot.slane %v627_v42, %v4656_v55 }
  0x9b   : > { %v594_v48 = vcombine.low %v4619_v33, %v4637_v46  ;;  %v595_v49 = vcombine.high %v4619_v33, %v4637_v46  ;;  %v578_v50 = vcombine.low %v4622_v34, %v4640_v47  ;;  %v579_v51 = vcombine.high %v4622_v34, %v4640_v47  ;;  %805 = vrot.lane.b32.xlu0 %v4637_v46, %s4445_s19 }
  0x9c   : > { %801 = vrot.lane.b32.xlu1 %v4640_v47, %s4445_s19  ;;  %v301_v52 = vpop.permute.xlu1 %300  ;;  %v295_v53 = vpop.permute.xlu0 %294  ;;  %7240 = vst [vmem:[#allocation3_spill] sm:$0xff] %v4678_v6  ;;  %7243 = vst [vmem:[#allocation6_spill] sm:$0xff] %v4714_v28 }
  0x9d   : > { %v364_v54 = vsel %vm360_vm1, 0.0, %v295_v53  ;;  %v4659_v56 = vrot.slane %v578_v50, %v4584_v16  ;;  %v4662_v57 = vrot.slane %v594_v48, %v4584_v16  ;;  %v593_v59 = vrot.slane %v579_v51, %v4584_v16 }
  0x9e   : > { %v4665_v58 = vsel %vm385_vm2, %v364_v54, 0.0  ;;  %v609_v60 = vrot.slane %v595_v49, %v4584_v16  ;;  %v367_v62 = vsel %vm360_vm1, 0.0, %v301_v52  ;;  %v1567_v50 = vrot.slane %v4561_v3, 1 }
  0x9f   : > { %779 = vrot.lane.b32.xlu0 %v4665_v58, %s4445_s19  ;;  %v642_v61 = vcombine.low %v4659_v56, %v4662_v57  ;;  %v4687_v11 = vsel %vm385_vm2, %v367_v62, 0.0  ;;  %v7086_v54 = vrot.slane %v4572_v8, 1  ;;  %v7083_v3 = vrot.slane %v4587_v17, 1 }
  0xa0   : > { %775 = vrot.lane.b32.xlu1 %v4564_v4, %s4445_s19  ;;  %v313_v63 = vpop.permute.xlu1 %312  ;;  %v307_v0 = vpop.permute.xlu0 %306  ;;  %v658_v1 = vcombine.low %v593_v59, %v609_v60  ;;  %v659_v2 = vcombine.high %v593_v59, %v609_v60  ;;  %v410_v51 = vcombine.low %v4564_v4, %v4687_v11  ;;  %v7084_v59 = vrot.slane %v4569_v7, 1 }
  0xa1   : > { %v370_v5 = vsel %vm360_vm1, 0.0, %v307_v0  ;;  %v4681_v9 = vrot.slane %v642_v61, %v4656_v55  ;;  %v373_v13 = vsel %vm360_vm1, 0.0, %v313_v63 }
  0xa2   : > { %v4684_v10 = vsel %vm385_vm2, %v370_v5, 0.0  ;;  %v4700_v22 = vrot.slane %v658_v1, %v4656_v55  ;;  %v4703_v23 = vrot.slane %v659_v2, %v4656_v55  ;;  %v4717_v29 = vsel %vm385_vm2, %v373_v13, 0.0 }
  0xa3   : > { %7241 = vst [vmem:[#allocation4_spill] sm:$0xff] %v4681_v9  ;;  %787 = vrot.lane.b32.xlu0 %v4684_v10, %s4445_s19  ;;  %v426_v42 = vcombine.low %v4665_v58, %v4684_v10  ;;  %v7085_v1 = vrot.slane %v4590_v18, 1  ;;  %v427_v28 = vcombine.high %v4665_v58, %v4684_v10 }
  0xa4   : > { %783 = vrot.lane.b32.xlu1 %v4687_v11, %s4445_s19  ;;  %v325_v14 = vpop.permute.xlu1 %324  ;;  %v319_v15 = vpop.permute.xlu0 %318  ;;  %7242 = vst [vmem:[#allocation5_spill] sm:$0xff] %v4703_v23 }
  0xa5   : > { %v376_v24 = vsel %vm360_vm1, 0.0, %v319_v15  ;;  %v379_v30 = vsel %vm360_vm1, 0.0, %v325_v14  ;;  %v4766_v2 = vrot.slane %v426_v42, %v4584_v16 }
  0xa6   : > { %v4707_v25 = vsel %vm385_vm2, %v376_v24, 0.0  ;;  %v4733_v43 = vsel %vm385_vm2, %v379_v30, 0.0 }
  0xa7   : > { %795 = vrot.lane.b32.xlu0 %v4707_v25, %s4445_s19  ;;  %v442_v48 = vcombine.low %v4717_v29, %v4733_v43 }
  0xa8   : > { %791 = vrot.lane.b32.xlu1 %v4717_v29, %s4445_s19  ;;  %v299_v35 = vpop.permute.xlu1 %298  ;;  %v331_v36 = vpop.permute.xlu0 %330 }
  0xa9   : > { %v366_v40 = vsel %vm360_vm1, 0.0, %v299_v35  ;;  %v382_v41 = vsel %vm360_vm1, 0.0, %v331_v36  ;;  %v4773_v14 = vrot.slane %v442_v48, %v4584_v16  ;;  %v4783_v35 = vsel %vm1563_vm4, %v7086_v54, %v1567_v50 }
  0xaa   : > { %v4736_v44 = vsel %vm385_vm2, %v366_v40, 0.0  ;;  %v4739_v45 = vsel %vm385_vm2, %v382_v41, 0.0  ;;  %v4786_v36 = vrot.slane %v410_v51, %v4584_v16 }
  0xab   : > { %v458_v49 = vcombine.low %v4707_v25, %v4739_v45  ;;  %803 = vrot.lane.b32.xlu0 %v4739_v45, %s4445_s19  ;;  %v1572_v60 = vrot.slane %v4736_v44, 1  ;;  %v2751_v23 = vrot.slane %v4736_v44, 2  ;;  %v7253_v44 = vrot.slane %v4569_v7, 2 }
  0xac   : > { %799 = vrot.lane.b32.xlu1 %v4733_v43, %s4445_s19  ;;  %v311_v52 = vpop.permute.xlu1 %310  ;;  %v305_v53 = vpop.permute.xlu0 %304 }
  0xad   : > { %v372_v61 = vsel %vm360_vm1, 0.0, %v311_v52  ;;  %v369_v62 = vsel %vm360_vm1, 0.0, %v305_v53  ;;  %v4776_v15 = vrot.slane %v458_v49, %v4584_v16  ;;  %v4792_v41 = vsel %vm1563_vm4, %v7084_v59, %v1572_v60 }
  0xae   : > { %v4759_v63 = vsel %vm385_vm2, %v372_v61, 0.0  ;;  %v4762_v0 = vsel %vm385_vm2, %v369_v62, 0.0  ;;  %v7087_v53 = vrot.slane %v4622_v34, 1  ;;  %v474_v60 = vcombine.low %v4786_v36, %v4766_v2 }
  0xaf   : > { %v1582_v5 = vrot.slane %v4759_v63, 1  ;;  %v1577_v13 = vrot.slane %v4762_v0, 1  ;;  %1171 = vrot.lane.b32.xlu0 %v4569_v7, %s4447_s20  ;;  %v506_v61 = vcombine.low %v4773_v14, %v4776_v15  ;;  %v7088_v62 = vrot.slane %v4640_v47, 1 }
  0xb0   : > { %1167 = vrot.lane.b32.xlu1 %v4572_v8, %s4447_s20  ;;  %v323_v24 = vpop.permute.xlu1 %322  ;;  %v317_v30 = vpop.permute.xlu0 %316 }
  0xb1   : > { %v375_v40 = vsel %vm360_vm1, 0.0, %v317_v30  ;;  %v4797_v42 = vsel %vm1563_vm4, %v7083_v3, %v1582_v5  ;;  %v4802_v48 = vsel %vm1563_vm4, %v7085_v1, %v1577_v13  ;;  %v378_v49 = vsel %vm360_vm1, 0.0, %v323_v24 }
  0xb2   : > { %v4806_v50 = vsel %vm385_vm2, %v375_v40, 0.0  ;;  %v1772_v51 = vcombine.low %v4792_v41, %v4797_v42  ;;  %v1773_v52 = vcombine.high %v4792_v41, %v4797_v42  ;;  %v1756_v40 = vcombine.low %v4783_v35, %v4802_v48 }
  0xb3   : > { %1179 = vrot.lane.b32.xlu0 %v4587_v17, %s4447_s20  ;;  %v1757_v12 = vcombine.high %v4783_v35, %v4802_v48  ;;  %v4833_v39 = vsel %vm385_vm2, %v378_v49, 0.0  ;;  %v1587_v37 = vrot.slane %v4806_v50, 1  ;;  %v4875_v38 = vrot.slane %v506_v61, %v4656_v55 }
  0xb4   : > { %1175 = vrot.lane.b32.xlu1 %v4590_v18, %s4447_s20  ;;  %v335_v5 = vpop.permute.xlu1 %334  ;;  %v329_v13 = vpop.permute.xlu0 %328  ;;  %v4823_v24 = vrot.slane %v1772_v51, %v4584_v16  ;;  %v4826_v30 = vrot.slane %v1773_v52, %v4584_v16  ;;  %v4845_v3 = vrot.slane %v1756_v40, %v4584_v16 }
  0xb5   : > { %v384_v27 = vsel %vm360_vm1, 0.0, %v335_v5  ;;  %v381_v26 = vsel %vm360_vm1, 0.0, %v329_v13  ;;  %v4848_v59 = vrot.slane %v1757_v12, %v4584_v16  ;;  %v4855_v5 = vrot.slane %v474_v60, %v4656_v55  ;;  %7247 = vst [vmem:[#allocation10_spill] sm:$0xff] %v4875_v38 }
  0xb6   : > { %7244 = vst [vmem:[#allocation7_spill] sm:$0xff] %v4826_v30  ;;  %v4839_v51 = vsel %vm385_vm2, %v384_v27, 0.0  ;;  %v4842_v52 = vsel %vm385_vm2, %v381_v26, 0.0  ;;  %v1600_v27 = vrot.slane %v4637_v46, 1  ;;  %v1592_v60 = vrot.slane %v4833_v39, 1 }
  0xb7   : > { %7245 = vst [vmem:[#allocation8_spill] sm:$0xff] %v4848_v59  ;;  %v1602_v49 = vrot.slane %v4839_v51, 1  ;;  %v1597_v1 = vrot.slane %v4842_v52, 1  ;;  %1187 = vrot.lane.b32.xlu0 %v4619_v33, %s4447_s20  ;;  %7246 = vst [vmem:[#allocation9_spill] sm:$0xff] %v4855_v5  ;;  %v4872_v54 = vsel %vm1563_vm4, %v7087_v53, %v1587_v37  ;;  %v7091_v37 = vrot.slane %v4619_v33, 1 }
  0xb8   : > { %1183 = vrot.lane.b32.xlu1 %v4622_v34, %s4447_s20  ;;  %v2766_v59 = vrot.slane %v4806_v50, 2  ;;  %v2776_v50 = vrot.slane %v4842_v52, 2 }
  0xb9   : > { %v4880_v12 = vsel %vm1563_vm4, %v7088_v62, %v1597_v1  ;;  %v4887_v26 = vsel %vm1563_vm4, %v1600_v27, %v1602_v49  ;;  %v4899_v1 = vsel %vm1563_vm4, %v7091_v37, %v1592_v60  ;;  %v411_v60 = vcombine.high %v4564_v4, %v4687_v11 }
  0xba   : > { %7248 = vst [vmem:[#allocation11_spill] sm:$0xff] %v4880_v12  ;;  %v1788_v13 = vcombine.low %v4872_v54, %v4880_v12  ;;  %v1789_v40 = vcombine.high %v4872_v54, %v4880_v12  ;;  %7249 = vst [vmem:[#allocation12_spill] sm:$0xff] %v4887_v26  ;;  %v1804_v49 = vcombine.low %v4899_v1, %v4887_v26  ;;  %v7255_v12 = vrot.slane %v4590_v18, 2 }
  0xbb   : > { %1195 = vrot.lane.b32.xlu0 %v4637_v46, %s4447_s20  ;;  %v1805_v61 = vcombine.high %v4899_v1, %v4887_v26  ;;  %v2756_v26 = vrot.slane %v4762_v0, 2  ;;  %v459_v37 = vcombine.high %v4707_v25, %v4739_v45  ;;  %v2771_v0 = vrot.slane %v4833_v39, 2 }
  0xbc   : > { %1191 = vrot.lane.b32.xlu1 %v4640_v47, %s4447_s20  ;;  %v4902_v53 = vrot.slane %v1788_v13, %v4584_v16  ;;  %v4909_v62 = vrot.slane %v1789_v40, %v4584_v16  ;;  %v4917_v13 = vrot.slane %v1804_v49, %v4584_v16  ;;  %v2761_v40 = vrot.slane %v4759_v63, 2 }
  0xbd   : > { %v4925_v30 = vrot.slane %v1805_v61, %v4584_v16  ;;  %v443_v61 = vcombine.high %v4717_v29, %v4733_v43  ;;  %v1599_v49 = vrot.slane %v4739_v45, 1  ;;  %v4953_v63 = vsel %vm2742_vm3, %v7253_v44, %v2751_v23 }
  0xbe   : > { %7250 = vst [vmem:[#allocation13_spill] sm:$0xff] %v4909_v62  ;;  %7251 = vst [vmem:[#allocation14_spill] sm:$0xff] %v4917_v13  ;;  %v441_v62 = vrot.slane %v427_v28, %v4584_v16  ;;  %v4966_v13 = vsel %vm2742_vm3, %v7255_v12, %v2756_v26  ;;  %v7256_v23 = vrot.slane %v4587_v17, 2  ;;  %v7257_v39 = vrot.slane %v4622_v34, 2 }
  0xbf   : > { %1169 = vrot.lane.b32.xlu0 %v4665_v58, %s4447_s20  ;;  %7252 = vst [vmem:[#allocation15_spill] sm:$0xff] %v4925_v30  ;;  %7254 = vst [vmem:[#allocation16_spill] sm:$0xff] %v4953_v63  ;;  %v643_v30 = vcombine.high %v4659_v56, %v4662_v57  ;;  %v4961_v20 = vsel %vm1563_vm4, %v1599_v49, %v1600_v27  ;;  %v425_v56 = vrot.slane %v411_v60, %v4584_v16 }
  0xc0   : > { %1165 = vrot.lane.b32.xlu1 %v4564_v4, %s4447_s20  ;;  %v4971_v44 = vsel %vm2742_vm3, %v7256_v23, %v2761_v40  ;;  %v4976_v52 = vsel %vm2742_vm3, %v7257_v39, %v2766_v59  ;;  %v457_v57 = vrot.slane %v443_v61, %v4584_v16  ;;  %v473_v28 = vrot.slane %v459_v37, %v4584_v16 }
  0xc1   : > { %v7110_v27 = vrot.slane %v4619_v33, 2  ;;  %v7109_v26 = vrot.slane %v4640_v47, 2  ;;  %v475_v59 = vcombine.high %v4786_v36, %v4766_v2  ;;  %v657_v12 = vrot.slane %v643_v30, %v4656_v55 }
  0xc2   : > { %v490_v40 = vcombine.low %v425_v56, %v441_v62  ;;  %v1564_v49 = vrot.slane %v4564_v4, 1  ;;  %v2781_v60 = vrot.slane %v4839_v51, 2  ;;  %v507_v23 = vcombine.high %v4773_v14, %v4776_v15 }
  0xc3   : > { %1177 = vrot.lane.b32.xlu0 %v4684_v10, %s4447_s20  ;;  %v4997_v37 = vsel %vm2742_vm3, %v7110_v27, %v2771_v0  ;;  %v5002_v61 = vsel %vm2742_vm3, %v7109_v26, %v2776_v50  ;;  %v7260_v4 = vcombine.high %v4613_v31, %v4616_v32  ;;  %v7261_v14 = vrot.slane %v4572_v8, 1 }
  0xc4   : > { %1173 = vrot.lane.b32.xlu1 %v4687_v11, %s4447_s20  ;;  %7258 = vst [vmem:[#allocation17_spill] sm:$0xff] %v4997_v37  ;;  %7259 = vst [vmem:[#allocation18_spill] sm:$0xff] %v5002_v61  ;;  %v2779_v36 = vrot.slane %v4637_v46, 2  ;;  %v675_v30 = vcombine.high %v4678_v6, %v4681_v9  ;;  %v522_v51 = vcombine.low %v457_v57, %v473_v28  ;;  %v1569_v0 = vrot.slane %v4665_v58, 1 }
  0xc5   : > { %v625_v2 = vrot.slane %v7260_v4, %v4656_v55  ;;  %v5013_v15 = vsel %vm1563_vm4, %v1564_v49, %v7261_v14  ;;  %v1574_v50 = vrot.slane %v4687_v11, 1  ;;  %v489_v31 = vrot.slane %v475_v59, %v4656_v55 }
  0xc6   : > { %v491_v39 = vcombine.high %v425_v56, %v441_v62  ;;  %v521_v49 = vrot.slane %v507_v23, %v4656_v55  ;;  %v498_v46 = vrot.slane %v490_v40, %v4656_v55  ;;  %v5026_v4 = vsel %vm2742_vm3, %v2779_v36, %v2781_v60  ;;  %v7301_v6 = vld [vmem:[#allocation15_spill] sm:$0xff] }
  0xc7   : > { %1185 = vrot.lane.b32.xlu0 %v4707_v25, %s4447_s20  ;;  %v677_v32 = vcombine.high %v625_v2, %v657_v12  ;;  %v676_v8 = vcombine.low %v625_v2, %v657_v12  ;;  %7262 = vst [vmem:[#allocation19_spill] sm:$0xff] %v5026_v4  ;;  %v2748_v14 = vrot.slane %v4665_v58, 2  ;;  %v523_v26 = vcombine.high %v457_v57, %v473_v28 }
  0xc8   : > { %1181 = vrot.lane.b32.xlu1 %v4717_v29, %s4447_s20  ;;  %v1579_v27 = vrot.slane %v4684_v10, 1  ;;  %v2753_v59 = vrot.slane %v4687_v11, 2  ;;  %v2758_v12 = vrot.slane %v4684_v10, 2  ;;  %v539_v62 = vcombine.high %v4855_v5, %v4875_v38 }
  0xc9   : > { %v530_v56 = vrot.slane %v522_v51, %v4656_v55  ;;  %v7263_v58 = vrot.slane %v4590_v18, 1  ;;  %v7264_v57 = vrot.slane %v4569_v7, 2  ;;  %v5050_v10 = vrot.slane %v491_v39, %v4656_v55 }
  0xca   : > { %v7266_v11 = vrot.slane %v4590_v18, 2  ;;  %v7268_v23 = vrot.slane %v4587_v17, 2  ;;  %v2763_v51 = vrot.slane %v4717_v29, 2  ;;  %v1594_v39 = vrot.slane %v4733_v43, 1 }
  0xcb   : > { %1193 = vrot.lane.b32.xlu0 %v4739_v45, %s4447_s20  ;;  %v5042_v40 = vsel %vm1563_vm4, %v1574_v50, %v7263_v58  ;;  %v5047_v28 = vsel %vm2742_vm3, %v2748_v14, %v7264_v57  ;;  %v541_v50 = vcombine.high %v489_v31, %v521_v49  ;;  %v540_v58 = vcombine.low %v489_v31, %v521_v49 }
  0xcc   : > { %1189 = vrot.lane.b32.xlu1 %v4733_v43, %s4447_s20  ;;  %7265 = vst [vmem:[#allocation20_spill] sm:$0xff] %v5047_v28  ;;  %v5055_v60 = vsel %vm2742_vm3, %v2753_v59, %v7266_v11  ;;  %v5060_v2 = vsel %vm2742_vm3, %v2758_v12, %v7268_v23  ;;  %v7270_v14 = vrot.slane %v4569_v7, 1  ;;  %v5072_v18 = vrot.slane %v523_v26, %v4656_v55 }
  0xcd   : > { %7267 = vst [vmem:[#allocation21_spill] sm:$0xff] %v5055_v60  ;;  %7269 = vst [vmem:[#allocation22_spill] sm:$0xff] %v5060_v2  ;;  %v1620_v59 = vcombine.low %v5013_v15, %v5042_v40  ;;  %v7271_v12 = vrot.slane %v4587_v17, 1  ;;  %v1589_v7 = vrot.slane %v4707_v25, 1  ;;  %v543_v49 = vcombine.high %v498_v46, %v530_v56 }
  0xce   : > { %v5066_v57 = vsel %vm1563_vm4, %v1569_v0, %v7270_v14  ;;  %v4120_v0 = vpack.i.bf16 %v675_v30, %v539_v62  ;;  %v542_v11 = vcombine.low %v498_v46, %v530_v56  ;;  %v1584_v23 = vrot.slane %v4717_v29, 1 }
  0xcf   : > { %1968 = vrot.lane.b32.xlu0 %v4792_v41, %s4445_s19  ;;  %v5079_v31 = vsel %vm1563_vm4, %v1579_v27, %v7271_v12  ;;  %v7272_v26 = vrot.slane %v4622_v34, 2  ;;  %v2768_v17 = vrot.slane %v4707_v25, 2  ;;  %v2773_v27 = vrot.slane %v4733_v43, 2 }
  0xd0   : > { %1964 = vrot.lane.b32.xlu1 %v4783_v35, %s4445_s19  ;;  %v2778_v12 = vrot.slane %v4739_v45, 2  ;;  %v4130_v38 = vpack.i.bf16 %v677_v32, %v541_v50  ;;  %v4125_v5 = vpack.i.bf16 %v676_v8, %v540_v58  ;;  %v1636_v30 = vcombine.low %v5066_v57, %v5079_v31 }
  0xd1   : > { %v5088_v14 = vsel %vm2742_vm3, %v2763_v51, %v7272_v26  ;;  %v7273_v46 = vrot.slane %v4640_v47, 1  ;;  %v7274_v62 = vrot.slane %v4619_v33, 1  ;;  %v7275_v43 = vrot.slane %v4619_v33, 2 }
  0xd2   : > { %v7276_v32 = vrot.slane %v4640_v47, 2  ;;  %v5118_v56 = vsel %vm2742_vm3, %v2778_v12, %v2779_v36  ;;  %v7278_v51 = vcombine.high %v4697_v21, %v4700_v22  ;;  %v545_v33 = vcombine.high %v5050_v10, %v5072_v18 }
  0xd3   : > { %1976 = vrot.lane.b32.xlu0 %v4797_v42, %s4445_s19  ;;  %v5098_v29 = vsel %vm1563_vm4, %v1594_v39, %v7273_v46  ;;  %v5105_v25 = vsel %vm1563_vm4, %v1589_v7, %v7274_v62  ;;  %v5110_v45 = vsel %vm2742_vm3, %v2768_v17, %v7275_v43  ;;  %7277 = vst [vmem:[#allocation23_spill] sm:$0xff] %v5118_v56  ;;  %v7279_v58 = vrot.slane %v4622_v34, 1  ;;  %v7290_v43 = vld [vmem:[#allocation11_spill] sm:$0xff] }
  0xd4   : > { %1972 = vrot.lane.b32.xlu1 %v4802_v48, %s4445_s19  ;;  %v5115_v8 = vsel %vm2742_vm3, %v2773_v27, %v7276_v32  ;;  %v4140_v50 = vpack.i.bf16 %v7278_v51, %v543_v49  ;;  %v1668_v39 = vcombine.low %v5105_v25, %v4961_v20  ;;  %v7280_v36 = vcombine.low %v4697_v21, %v4700_v22 }
  0xd5   : > { %v5130_v47 = vsel %vm1563_vm4, %v1584_v23, %v7279_v58  ;;  %v544_v26 = vcombine.low %v5050_v10, %v5072_v18  ;;  %v2967_v17 = vcombine.low %v4976_v52, %v5002_v61  ;;  %v5144_v34 = vrot.slane %v1636_v30, %v4584_v16  ;;  %v7283_v18 = vld [vmem:[#allocation14_spill] sm:$0xff] }
  0xd6   : > { %v4135_v7 = vpack.i.bf16 %v7280_v36, %v542_v11  ;;  %v1652_v49 = vcombine.low %v5130_v47, %v5098_v29  ;;  %v2935_v23 = vcombine.low %v4593_v19, %v4966_v13  ;;  %v2983_v27 = vcombine.low %v4997_v37, %v5026_v4 }
  0xd7   : > { %1984 = vrot.lane.b32.xlu0 %v4899_v1, %s4445_s19  ;;  %v2847_v21 = vcombine.low %v5110_v45, %v5118_v56  ;;  %v7281_v22 = vcombine.low %v4845_v3, %v4823_v24  ;;  %v7284_v11 = vcombine.low %v4902_v53, %v7283_v18  ;;  %v7286_v30 = vcombine.high %v4845_v3, %v4823_v24 }
  0xd8   : > { %1980 = vrot.lane.b32.xlu1 %v4872_v54, %s4445_s19  ;;  %v5180_v32 = vrot.slane %v1668_v39, %v4584_v16  ;;  %v2951_v51 = vcombine.low %v4953_v63, %v4971_v44  ;;  %v2815_v3 = vcombine.low %v5047_v28, %v5060_v2  ;;  %v2831_v24 = vcombine.low %v5088_v14, %v5115_v8  ;;  %v7297_v39 = vld [vmem:[#allocation7_spill] sm:$0xff] }
  0xd9   : > { %v5157_v10 = vrot.slane %v7281_v22, %v4656_v55  ;;  %v5163_v12 = vrot.slane %v7284_v11, %v4656_v55  ;;  %v5169_v46 = vrot.slane %v7286_v30, %v4656_v55  ;;  %v5189_v58 = vrot.slane %v1652_v49, %v4584_v16 }
  0xda   : > { %v5199_v22 = vrot.slane %v2983_v27, %v4584_v16  ;;  %v5204_v30 = vrot.slane %v2847_v21, %v4584_v16  ;;  %v7296_v27 = vld [vmem:[#allocation8_spill] sm:$0xff]  ;;  %v7300_v21 = vld [vmem:[#allocation13_spill] sm:$0xff] }
  0xdb   : > { %4121 = vrot.lane.b32.xlu0 %v4120_v0, %s4448_s21  ;;  %7282 = vst [vmem:[#allocation24_spill] sm:$0xff] %v5157_v10  ;;  %7285 = vst [vmem:[#allocation14_spill] sm:$0xff] %v5163_v12  ;;  %v7288_v0 = vcombine.high %v4902_v53, %v7283_v18  ;;  %v5192_v53 = vrot.slane %v2967_v17, %v4584_v16  ;;  %v7293_v18 = vld [vmem:[#allocation2_spill] sm:$0xff]  ;;  %v5210_v17 = vrot.slane %v1620_v59, %v4584_v16 }
  0xdc   : > { %7287 = vst [vmem:[#allocation25_spill] sm:$0xff] %v5169_v46  ;;  %1988 = vrot.lane.b32.xlu1 %v7290_v43, %s4445_s19  ;;  %7292 = vst [vmem:[#allocation27_spill] sm:$0xff] %v5199_v22  ;;  %v2799_v11 = vcombine.low %v7293_v18, %v5055_v60  ;;  %v7298_v36 = vcombine.low %v7296_v27, %v7297_v39  ;;  %v7302_v56 = vcombine.low %v7300_v21, %v7301_v6 }
  0xdd   : > { %v5175_v62 = vrot.slane %v7288_v0, %v4656_v55  ;;  %7291 = vst [vmem:[#allocation11_spill] sm:$0xff] %v5192_v53  ;;  %7294 = vst [vmem:[#allocation28_spill] sm:$0xff] %v5204_v30  ;;  %v5213_v0 = vrot.slane %v2935_v23, %v4584_v16  ;;  %v5231_v59 = vrot.slane %v2951_v51, %v4584_v16 }
  0xde   : > { %v5219_v9 = vrot.slane %v7298_v36, %v4656_v55  ;;  %v5225_v49 = vrot.slane %v7302_v56, %v4656_v55  ;;  %v5234_v23 = vrot.slane %v2815_v3, %v4584_v16  ;;  %v5237_v36 = vrot.slane %v2831_v24, %v4584_v16 }
  0xdf   : > { %7289 = vst [vmem:[#allocation26_spill] sm:$0xff] %v5175_v62  ;;  %4131 = vrot.lane.b32.xlu0 %v4130_v38, %s4449_s22  ;;  %7295 = vst [vmem:[#allocation29_spill] sm:$0xff] %v5213_v0  ;;  %v1716_v38 = vcombine.low %v5189_v58, %v5180_v32  ;;  %v7309_v51 = vcombine.high %v7300_v21, %v7301_v6  ;;  %v1684_v24 = vcombine.low %v5210_v17, %v5144_v34 }
  0xe0   : > { %7299 = vst [vmem:[#allocation8_spill] sm:$0xff] %v5219_v9  ;;  %7303 = vst [vmem:[#allocation7_spill] sm:$0xff] %v5225_v49  ;;  %4126 = vrot.lane.b32.xlu1 %v4125_v5, %s4450_s23  ;;  %v7307_v5 = vcombine.high %v7296_v27, %v7297_v39  ;;  %v3031_v62 = vcombine.low %v5192_v53, %v5199_v22  ;;  %v5260_v56 = vrot.slane %v2799_v11, %v4584_v16 }
  0xe1   : > { %7304 = vst [vmem:[#allocation13_spill] sm:$0xff] %v5231_v59  ;;  %7305 = vst [vmem:[#allocation15_spill] sm:$0xff] %v5234_v23  ;;  %v5253_v3 = vrot.slane %v7309_v51, %v4656_v55  ;;  %v2895_v39 = vcombine.low %v5237_v36, %v5204_v30  ;;  %v2999_v21 = vcombine.low %v5213_v0, %v5231_v59  ;;  %v7313_v51 = vld [vmem:[#allocation6_spill] sm:$0xff] }
  0xe2   : > { %7306 = vst [vmem:[#allocation30_spill] sm:$0xff] %v5237_v36  ;;  %v5247_v46 = vrot.slane %v7307_v5, %v4656_v55  ;;  %7311 = vst [vmem:[#allocation33_spill] sm:$0xff] %v5260_v56  ;;  %v2863_v11 = vcombine.low %v5260_v56, %v5234_v23  ;;  %v5275_v5 = vrot.slane %v1716_v38, %v4656_v55 }
  0xe3   : > { %7310 = vst [vmem:[#allocation32_spill] sm:$0xff] %v5253_v3  ;;  %4141 = vrot.lane.b32.xlu0 %v4140_v50, %s4451_s24  ;;  %v7314_v50 = vld [vmem:[#allocation5_spill] sm:$0xff]  ;;  %v5284_v3 = vrot.slane %v1684_v24, %v4656_v55  ;;  %v7322_v24 = vld [vmem:[#allocation12_spill] sm:$0xff] }
  0xe4   : > { %7308 = vst [vmem:[#allocation31_spill] sm:$0xff] %v5247_v46  ;;  %4136 = vrot.lane.b32.xlu1 %v4135_v7, %s4452_s25  ;;  %7312 = vst [vmem:[#allocation34_spill] sm:$0xff] %v5275_v5  ;;  %v7315_v36 = vcombine.high %v7313_v51, %v7314_v50  ;;  %v7316_v6 = vcombine.low %v7313_v51, %v7314_v50  ;;  %v5287_v7 = vrot.slane %v3031_v62, %v4656_v55 }
  0xe5   : > { %7317 = vst [vmem:[#allocation6_spill] sm:$0xff] %v5284_v3  ;;  %v5290_v46 = vrot.slane %v2895_v39, %v4656_v55 }
  0xe6   : > { %v4150_v30 = vpack.i.bf16 %v7315_v36, %v545_v33  ;;  %v4145_v27 = vpack.i.bf16 %v7316_v6, %v544_v26  ;;  %7318 = vst [vmem:[#allocation5_spill] sm:$0xff] %v5287_v7  ;;  %v5297_v33 = vrot.slane %v2999_v21, %v4656_v55  ;;  %v5300_v26 = vrot.slane %v2863_v11, %v4656_v55 }
  0xe7   : > { %7319 = vst [vmem:[#allocation35_spill] sm:$0xff] %v5290_v46 }
  0xe8   : > { %4151 = vrot.lane.b32.xlu0 %v4150_v30, %s4453_s26  ;;  %4146 = vrot.lane.b32.xlu1 %v4145_v27, %s4454_s27  ;;  %7320 = vst [vmem:[#allocation36_spill] sm:$0xff] %v5297_v33  ;;  %7321 = vst [vmem:[#allocation37_spill] sm:$0xff] %v5300_v26 }
  0xec   : > { %1992 = vrot.lane.b32.xlu0 %v7322_v24, %s4445_s19  ;;  %2354 = vrot.lane.b32.xlu1 %v4783_v35, %s4447_s20 }
  0xf0   : > { %2358 = vrot.lane.b32.xlu0 %v4792_v41, %s4447_s20  ;;  %2362 = vrot.lane.b32.xlu1 %v4802_v48, %s4447_s20 }
  0xf4   : > { %2366 = vrot.lane.b32.xlu0 %v4797_v42, %s4447_s20  ;;  %2370 = vrot.lane.b32.xlu1 %v4872_v54, %s4447_s20 }
  0xf8   : > { %2374 = vrot.lane.b32.xlu0 %v4899_v1, %s4447_s20  ;;  %2378 = vrot.lane.b32.xlu1 %v7290_v43, %s4447_s20 }
  0xfc   : > { %2382 = vrot.lane.b32.xlu0 %v7322_v24, %s4447_s20  ;;  %1962 = vrot.lane.b32.xlu1 %v5013_v15, %s4445_s19 }
 0x100   : > { %1966 = vrot.lane.b32.xlu0 %v5066_v57, %s4445_s19  ;;  %1970 = vrot.lane.b32.xlu1 %v5042_v40, %s4445_s19 }
 0x101   : > { %v5332_v35 = vpop.permute.xlu1 %777  ;;  %v5334_v54 = vpop.permute.xlu0 %781 }
 0x104   : > { %1974 = vrot.lane.b32.xlu0 %v5079_v31, %s4445_s19  ;;  %1978 = vrot.lane.b32.xlu1 %v5130_v47, %s4445_s19 }
 0x105   : > { %v5340_v41 = vpop.permute.xlu0 %789 }
 0x106   : > { %v5342_v42 = vpop.permute.xlu1 %785  ;;  %v975_v39 = vcombine.low %v5334_v54, %v5340_v41 }
 0x107   : > { %v959_v43 = vcombine.low %v5332_v35, %v5342_v42 }
 0x108   : > { %1982 = vrot.lane.b32.xlu0 %v5105_v25, %s4445_s19  ;;  %1986 = vrot.lane.b32.xlu1 %v5098_v29, %s4445_s19  ;;  %v5374_v50 = vrot.slane %v975_v39, %v4584_v16 }
 0x109   : > { %v5348_v48 = vpop.permute.xlu0 %797  ;;  %v5371_v51 = vrot.slane %v959_v43, %v4584_v16 }
 0x10a   : > { %v5350_v1 = vpop.permute.xlu1 %793 }
 0x10b   : > { %v1023_v39 = vcombine.low %v5371_v51, %v5374_v50 }
 0x10c   : > { %1990 = vrot.lane.b32.xlu0 %v4961_v20, %s4445_s19  ;;  %2352 = vrot.lane.b32.xlu1 %v5013_v15, %s4447_s20 }
 0x10d   : > { %v5360_v6 = vpop.permute.xlu0 %805  ;;  %v5406_v26 = vrot.slane %v1023_v39, %v4656_v55 }
 0x10e   : > { %v5362_v27 = vpop.permute.xlu1 %801  ;;  %v1007_v21 = vcombine.low %v5348_v48, %v5360_v6 }
 0x10f   : > { %v991_v11 = vcombine.low %v5350_v1, %v5362_v27  ;;  %7324 = vst [vmem:[#allocation38_spill] sm:$0xff] %v5406_v26 }
 0x110   : > { %2356 = vrot.lane.b32.xlu0 %v5066_v57, %s4447_s20  ;;  %v5377_v24 = vrot.slane %v1007_v21, %v4584_v16  ;;  %2360 = vrot.lane.b32.xlu1 %v5042_v40, %s4447_s20 }
 0x111   : > { %v5382_v30 = vrot.slane %v991_v11, %v4584_v16  ;;  %v5384_v36 = vpop.permute.xlu0 %779 }
 0x112   : > { %v5386_v62 = vpop.permute.xlu1 %775 }
 0x113   : > { %v1055_v43 = vcombine.low %v5382_v30, %v5377_v24 }
 0x114   : > { %2364 = vrot.lane.b32.xlu0 %v5079_v31, %s4447_s20  ;;  %2368 = vrot.lane.b32.xlu1 %v5130_v47, %s4447_s20 }
 0x115   : > { %v5396_v21 = vpop.permute.xlu0 %787  ;;  %v5399_v11 = vrot.slane %v1055_v43, %v4656_v55 }
 0x116   : > { %v5401_v38 = vpop.permute.xlu1 %783  ;;  %v839_v56 = vcombine.low %v5384_v36, %v5396_v21 }
 0x117   : > { %7323 = vst [vmem:[#allocation12_spill] sm:$0xff] %v5399_v11  ;;  %v823_v39 = vcombine.low %v5386_v62, %v5401_v38 }
 0x118   : > { %2372 = vrot.lane.b32.xlu0 %v5105_v25, %s4447_s20  ;;  %2376 = vrot.lane.b32.xlu1 %v5098_v29, %s4447_s20  ;;  %v5448_v59 = vrot.slane %v839_v56, %v4584_v16 }
 0x119   : > { %v5410_v46 = vpop.permute.xlu0 %795  ;;  %v5445_v0 = vrot.slane %v823_v39, %v4584_v16 }
 0x11a   : > { %v5412_v33 = vpop.permute.xlu1 %791 }
 0x11b   : > { %7326 = vst [vmem:[#allocation40_spill] sm:$0xff] %v5445_v0  ;;  %v887_v39 = vcombine.low %v5445_v0, %v5448_v59 }
 0x11c   : > { %2380 = vrot.lane.b32.xlu0 %v4961_v20, %s4447_s20  ;;  %3143 = vrot.lane.b32.xlu1 %v4593_v19, %s4445_s19 }
 0x11d   : > { %v5420_v43 = vpop.permute.xlu0 %803  ;;  %v5474_v10 = vrot.slane %v887_v39, %v4656_v55 }
 0x11e   : > { %v5426_v23 = vpop.permute.xlu1 %799  ;;  %v871_v53 = vcombine.low %v5410_v46, %v5420_v43 }
 0x11f   : > { %v855_v7 = vcombine.low %v5412_v33, %v5426_v23  ;;  %7332 = vst [vmem:[#allocation46_spill] sm:$0xff] %v5474_v10 }
 0x120   : > { %3147 = vrot.lane.b32.xlu0 %v4953_v63, %s4445_s19  ;;  %v5435_v22 = vrot.slane %v871_v53, %v4584_v16  ;;  %3151 = vrot.lane.b32.xlu1 %v4966_v13, %s4445_s19 }
 0x121   : > { %v5440_v49 = vrot.slane %v855_v7, %v4584_v16  ;;  %v5442_v9 = vpop.permute.xlu0 %1171 }
 0x122   : > { %7325 = vst [vmem:[#allocation39_spill] sm:$0xff] %v5442_v9  ;;  %v5450_v3 = vpop.permute.xlu1 %1167 }
 0x123   : > { %7327 = vst [vmem:[#allocation41_spill] sm:$0xff] %v5450_v3  ;;  %v919_v53 = vcombine.low %v5440_v49, %v5435_v22 }
 0x124   : > { %3155 = vrot.lane.b32.xlu0 %v4971_v44, %s4445_s19  ;;  %3159 = vrot.lane.b32.xlu1 %v4976_v52, %s4445_s19 }
 0x125   : > { %v5458_v7 = vpop.permute.xlu0 %1179  ;;  %v5467_v56 = vrot.slane %v919_v53, %v4656_v55 }
 0x126   : > { %7328 = vst [vmem:[#allocation42_spill] sm:$0xff] %v5458_v7  ;;  %v5462_v5 = vpop.permute.xlu1 %1175  ;;  %v1365_v39 = vcombine.low %v5442_v9, %v5458_v7 }
 0x127   : > { %7329 = vst [vmem:[#allocation43_spill] sm:$0xff] %v5462_v5  ;;  %7330 = vst [vmem:[#allocation44_spill] sm:$0xff] %v5467_v56 }
 0x128   : > { %3163 = vrot.lane.b32.xlu0 %v4997_v37, %s4445_s19  ;;  %3167 = vrot.lane.b32.xlu1 %v5002_v61, %s4445_s19  ;;  %v1349_v61 = vcombine.low %v5450_v3, %v5462_v5 }
 0x129   : > { %v5471_v12 = vpop.permute.xlu0 %1187 }
 0x12a   : > { %7331 = vst [vmem:[#allocation45_spill] sm:$0xff] %v5471_v12  ;;  %v5476_v26 = vpop.permute.xlu1 %1183  ;;  %v5509_v9 = vrot.slane %v1349_v61, %v4584_v16 }
 0x12b   : > { %7333 = vst [vmem:[#allocation47_spill] sm:$0xff] %v5476_v26 }
 0x12c   : > { %3171 = vrot.lane.b32.xlu0 %v5026_v4, %s4445_s19  ;;  %3141 = vrot.lane.b32.xlu1 %v7293_v18, %s4445_s19  ;;  %7339 = vst [vmem:[#allocation53_spill] sm:$0xff] %v5509_v9 }
 0x12d   : > { %v5484_v11 = vpop.permute.xlu0 %1195 }
 0x12e   : > { %7334 = vst [vmem:[#allocation48_spill] sm:$0xff] %v5484_v11  ;;  %v5490_v37 = vpop.permute.xlu1 %1191  ;;  %v1397_v0 = vcombine.low %v5471_v12, %v5484_v11  ;;  %v5512_v12 = vrot.slane %v1365_v39, %v4584_v16 }
 0x12f   : > { %7335 = vst [vmem:[#allocation49_spill] sm:$0xff] %v5490_v37  ;;  %v1381_v4 = vcombine.low %v5476_v26, %v5490_v37 }
 0x130   : > { %3145 = vrot.lane.b32.xlu0 %v5047_v28, %s4445_s19  ;;  %v5499_v53 = vrot.slane %v1397_v0, %v4584_v16  ;;  %3149 = vrot.lane.b32.xlu1 %v5055_v60, %s4445_s19  ;;  %7340 = vst [vmem:[#allocation54_spill] sm:$0xff] %v5512_v12  ;;  %v1413_v61 = vcombine.low %v5509_v9, %v5512_v12  ;;  %v7346_v9 = vld [vmem:[#allocation23_spill] sm:$0xff] }
 0x131   : > { %v5504_v3 = vrot.slane %v1381_v4, %v4584_v16  ;;  %v5506_v5 = vpop.permute.xlu0 %1169 }
 0x132   : > { %7336 = vst [vmem:[#allocation50_spill] sm:$0xff] %v5499_v53  ;;  %7338 = vst [vmem:[#allocation52_spill] sm:$0xff] %v5506_v5  ;;  %v5514_v26 = vpop.permute.xlu1 %1165  ;;  %v5538_v7 = vrot.slane %v1413_v61, %v4656_v55 }
 0x133   : > { %7337 = vst [vmem:[#allocation51_spill] sm:$0xff] %v5504_v3  ;;  %7341 = vst [vmem:[#allocation55_spill] sm:$0xff] %v5514_v26  ;;  %v1445_v0 = vcombine.low %v5504_v3, %v5499_v53 }
 0x134   : > { %3153 = vrot.lane.b32.xlu0 %v5060_v2, %s4445_s19  ;;  %3157 = vrot.lane.b32.xlu1 %v5088_v14, %s4445_s19  ;;  %7345 = vst [vmem:[#allocation59_spill] sm:$0xff] %v5538_v7 }
 0x135   : > { %v5522_v4 = vpop.permute.xlu0 %1177  ;;  %v5531_v39 = vrot.slane %v1445_v0, %v4656_v55 }
 0x136   : > { %7342 = vst [vmem:[#allocation56_spill] sm:$0xff] %v5522_v4  ;;  %v5526_v37 = vpop.permute.xlu1 %1173  ;;  %v1229_v61 = vcombine.low %v5506_v5, %v5522_v4 }
 0x137   : > { %7343 = vst [vmem:[#allocation57_spill] sm:$0xff] %v5526_v37  ;;  %7344 = vst [vmem:[#allocation58_spill] sm:$0xff] %v5531_v39  ;;  %v1213_v53 = vcombine.low %v5514_v26, %v5526_v37 }
 0x138   : > { %3161 = vrot.lane.b32.xlu0 %v5110_v45, %s4445_s19  ;;  %3165 = vrot.lane.b32.xlu1 %v5115_v8, %s4445_s19  ;;  %v5576_v5 = vrot.slane %v1229_v61, %v4584_v16 }
 0x139   : > { %v5535_v11 = vpop.permute.xlu0 %1185  ;;  %v5573_v37 = vrot.slane %v1213_v53, %v4584_v16 }
 0x13a   : > { %v5540_v3 = vpop.permute.xlu1 %1181  ;;  %7351 = vst [vmem:[#allocation64_spill] sm:$0xff] %v5576_v5 }
 0x13b   : > { %7350 = vst [vmem:[#allocation63_spill] sm:$0xff] %v5573_v37  ;;  %v1277_v53 = vcombine.low %v5573_v37, %v5576_v5  ;;  %v992_v5 = vcombine.high %v5350_v1, %v5362_v27  ;;  %v976_v1 = vcombine.high %v5334_v54, %v5340_v41  ;;  %v920_v27 = vcombine.high %v5440_v49, %v5435_v22  ;;  %v7362_v49 = vld [vmem:[#allocation40_spill] sm:$0xff] }
 0x13c   : > { %3169 = vrot.lane.b32.xlu0 %v7346_v9, %s4445_s19  ;;  %3531 = vrot.lane.b32.xlu1 %v7293_v18, %s4447_s20 }
 0x13d   : > { %v5548_v12 = vpop.permute.xlu0 %1193 }
 0x13e   : > { %v5554_v10 = vpop.permute.xlu1 %1189  ;;  %v1261_v56 = vcombine.low %v5535_v11, %v5548_v12 }
 0x13f   : > { %v1245_v9 = vcombine.low %v5540_v3, %v5554_v10 }
 0x140   : > { %3533 = vrot.lane.b32.xlu0 %v4593_v19, %s4447_s20  ;;  %v5563_v0 = vrot.slane %v1261_v56, %v4584_v16  ;;  %3535 = vrot.lane.b32.xlu1 %v5047_v28, %s4447_s20 }
 0x141   : > { %v5568_v18 = vrot.slane %v1245_v9, %v4584_v16  ;;  %v5570_v26 = vpop.permute.xlu0 %1968 }
 0x142   : > { %7347 = vst [vmem:[#allocation60_spill] sm:$0xff] %v5563_v0  ;;  %7349 = vst [vmem:[#allocation62_spill] sm:$0xff] %v5570_v26  ;;  %v5578_v4 = vpop.permute.xlu1 %1964 }
 0x143   : > { %7348 = vst [vmem:[#allocation61_spill] sm:$0xff] %v5568_v18  ;;  %7352 = vst [vmem:[#allocation65_spill] sm:$0xff] %v5578_v4  ;;  %v1309_v56 = vcombine.low %v5568_v18, %v5563_v0  ;;  %v5604_v18 = vrot.slane %v1277_v53, %v4656_v55  ;;  %v856_v0 = vcombine.high %v5412_v33, %v5426_v23 }
 0x144   : > { %3537 = vrot.lane.b32.xlu0 %v4953_v63, %s4447_s20  ;;  %3539 = vrot.lane.b32.xlu1 %v5055_v60, %s4447_s20  ;;  %v1637_v60 = vcombine.high %v5066_v57, %v5079_v31  ;;  %v1621_v57 = vcombine.high %v5013_v15, %v5042_v40  ;;  %v960_v31 = vcombine.high %v5332_v35, %v5342_v42 }
 0x145   : > { %v5586_v9 = vpop.permute.xlu0 %1976  ;;  %v5595_v61 = vrot.slane %v1309_v56, %v4656_v55  ;;  %7356 = vst [vmem:[#allocation69_spill] sm:$0xff] %v5604_v18  ;;  %v1008_v56 = vcombine.high %v5348_v48, %v5360_v6  ;;  %v840_v33 = vcombine.high %v5384_v36, %v5396_v21  ;;  %v1006_v35 = vrot.slane %v992_v5, %v4584_v16 }
 0x146   : > { %v5590_v28 = vpop.permute.xlu1 %1972  ;;  %v5635_v15 = vrot.slane %v1637_v60, %v4584_v16  ;;  %v5642_v41 = vrot.slane %v856_v0, %v4584_v16  ;;  %v974_v60 = vrot.slane %v960_v31, %v4584_v16  ;;  %v1653_v5 = vcombine.high %v5130_v47, %v5098_v29  ;;  %v7368_v31 = vld [vmem:[#allocation18_spill] sm:$0xff] }
 0x147   : > { %7353 = vst [vmem:[#allocation66_spill] sm:$0xff] %v5590_v28  ;;  %7354 = vst [vmem:[#allocation67_spill] sm:$0xff] %v5595_v61  ;;  %v1022_v54 = vrot.slane %v1008_v56, %v4584_v16  ;;  %v854_v6 = vrot.slane %v840_v33, %v4584_v16  ;;  %v1024_v47 = vcombine.high %v5371_v51, %v5374_v50 }
 0x148   : > { %3541 = vrot.lane.b32.xlu0 %v4966_v13, %s4447_s20  ;;  %3543 = vrot.lane.b32.xlu1 %v5060_v2, %s4447_s20  ;;  %v872_v2 = vcombine.high %v5410_v46, %v5420_v43  ;;  %v824_v46 = vcombine.high %v5386_v62, %v5401_v38  ;;  %v5650_v38 = vrot.slane %v1621_v57, %v4584_v16  ;;  %v7363_v57 = vld [vmem:[#allocation17_spill] sm:$0xff] }
 0x149   : > { %v5599_v63 = vpop.permute.xlu0 %1984  ;;  %v990_v62 = vrot.slane %v976_v1, %v4584_v16  ;;  %v1056_v0 = vcombine.high %v5382_v30, %v5377_v24  ;;  %v1071_v22 = vcombine.low %v1006_v35, %v1022_v54  ;;  %v888_v53 = vcombine.high %v7362_v49, %v5448_v59 }
 0x14a   : > { %7355 = vst [vmem:[#allocation68_spill] sm:$0xff] %v5599_v63  ;;  %v5606_v37 = vpop.permute.xlu1 %1980  ;;  %v5645_v42 = vrot.slane %v872_v2, %v4584_v16  ;;  %v1669_v2 = vcombine.high %v5105_v25, %v4961_v20  ;;  %v838_v36 = vrot.slane %v824_v46, %v4584_v16  ;;  %v1717_v20 = vcombine.high %v5189_v58, %v5180_v32 }
 0x14b   : > { %7357 = vst [vmem:[#allocation70_spill] sm:$0xff] %v5606_v37  ;;  %v1039_v50 = vcombine.low %v974_v60, %v990_v62  ;;  %v5687_v32 = vrot.slane %v1653_v5, %v4584_v16  ;;  %v1072_v58 = vcombine.high %v1006_v35, %v1022_v54  ;;  %v934_v24 = vrot.slane %v920_v27, %v4656_v55  ;;  %v7366_v35 = vld [vmem:[#allocation44_spill] sm:$0xff]  ;;  %v7367_v54 = vld [vmem:[#allocation46_spill] sm:$0xff] }
 0x14c   : > { %3545 = vrot.lane.b32.xlu0 %v4971_v44, %s4447_s20  ;;  %3547 = vrot.lane.b32.xlu1 %v5088_v14, %s4447_s20  ;;  %v935_v56 = vcombine.low %v5642_v41, %v5645_v42  ;;  %v5692_v30 = vrot.slane %v1669_v2, %v4584_v16  ;;  %v903_v59 = vcombine.low %v838_v36, %v854_v6 }
 0x14d   : > { %v5632_v48 = vpop.permute.xlu0 %4121  ;;  %v1038_v46 = vrot.slane %v1024_v47, %v4656_v55  ;;  %v1040_v33 = vcombine.high %v974_v60, %v990_v62  ;;  %v952_v49 = vcombine.high %v7367_v54, %v7366_v35  ;;  %v5705_v23 = vrot.slane %v1717_v20, %v4656_v55  ;;  %v7369_v20 = vld [vmem:[#allocation23_spill] sm:$0xff] }
 0x14e   : > { %7358 = vst [vmem:[#allocation71_spill] sm:$0xff] %v5632_v48  ;;  %v5637_v40 = vpop.permute.xlu1 %1988  ;;  %v1070_v2 = vrot.slane %v1056_v0, %v4656_v55  ;;  %v1079_v27 = vrot.slane %v1071_v22, %v4656_v55  ;;  %v902_v51 = vrot.slane %v888_v53, %v4656_v55  ;;  %v943_v29 = vrot.slane %v935_v56, %v4656_v55  ;;  %v7370_v0 = vld [vmem:[#allocation12_spill] sm:$0xff]  ;;  %v7371_v22 = vld [vmem:[#allocation38_spill] sm:$0xff] }
 0x14f   : > { %7359 = vst [vmem:[#allocation72_spill] sm:$0xff] %v5637_v40  ;;  %v1047_v60 = vrot.slane %v1039_v50, %v4656_v55  ;;  %v5715_v62 = vrot.slane %v1072_v58, %v4656_v55  ;;  %v936_v47 = vcombine.high %v5642_v41, %v5645_v42  ;;  %v1088_v43 = vcombine.high %v7371_v22, %v7370_v0 }
 0x150   : > { %3549 = vrot.lane.b32.xlu0 %v4976_v52, %s4447_s20  ;;  %3551 = vrot.lane.b32.xlu1 %v5110_v45, %s4447_s20  ;;  %v904_v53 = vcombine.high %v838_v36, %v854_v6  ;;  %v911_v56 = vrot.slane %v903_v59, %v4656_v55  ;;  %v953_v54 = vcombine.low %v902_v51, %v934_v24  ;;  %v7374_v36 = vld [vmem:[#allocation19_spill] sm:$0xff] }
 0x151   : > { %v5664_v21 = vpop.permute.xlu0 %4131  ;;  %v5727_v50 = vrot.slane %v1040_v33, %v4656_v55  ;;  %v2146_v58 = vcombine.low %v5578_v4, %v5590_v28  ;;  %v2162_v41 = vcombine.low %v5570_v26, %v5586_v9  ;;  %v1089_v6 = vcombine.low %v1038_v46, %v1070_v2  ;;  %v7398_v28 = vld [vmem:[#allocation63_spill] sm:$0xff] }
 0x152   : > { %7360 = vst [vmem:[#allocation73_spill] sm:$0xff] %v5664_v21  ;;  %v5674_v25 = vpop.permute.xlu1 %4126  ;;  %v1090_v59 = vcombine.high %v1038_v46, %v1070_v2  ;;  %v955_v0 = vcombine.low %v911_v56, %v943_v29  ;;  %v1091_v22 = vcombine.low %v1047_v60, %v1079_v27  ;;  %v1092_v33 = vcombine.high %v1047_v60, %v1079_v27  ;;  %v7376_v21 = vld [vmem:[#allocation50_spill] sm:$0xff] }
 0x153   : > { %7361 = vst [vmem:[#allocation74_spill] sm:$0xff] %v5674_v25  ;;  %v4160_v46 = vpack.i.bf16 %v953_v54, %v1089_v6  ;;  %v5753_v48 = vrot.slane %v2146_v58, %v4584_v16  ;;  %v7381_v54 = vld [vmem:[#allocation54_spill] sm:$0xff]  ;;  %v7384_v6 = vld [vmem:[#allocation45_spill] sm:$0xff] }
 0x154   : > { %3553 = vrot.lane.b32.xlu0 %v7363_v57, %s4447_s20  ;;  %3555 = vrot.lane.b32.xlu1 %v5115_v8, %s4447_s20  ;;  %v4170_v58 = vpack.i.bf16 %v955_v0, %v1091_v22  ;;  %v1262_v0 = vcombine.high %v5535_v11, %v5548_v12  ;;  %v7391_v12 = vld [vmem:[#allocation43_spill] sm:$0xff]  ;;  %v7392_v11 = vld [vmem:[#allocation41_spill] sm:$0xff] }
 0x155   : > { %v5697_v1 = vpop.permute.xlu0 %4141 }
 0x156   : > { %7364 = vst [vmem:[#allocation40_spill] sm:$0xff] %v5697_v1  ;;  %v5700_v5 = vpop.permute.xlu1 %4136  ;;  %v954_v1 = vcombine.high %v902_v51, %v934_v24  ;;  %v5738_v51 = vrot.slane %v936_v47, %v4656_v55  ;;  %v2178_v24 = vcombine.low %v5606_v37, %v5637_v40  ;;  %v7377_v47 = vld [vmem:[#allocation51_spill] sm:$0xff] }
 0x157   : > { %7365 = vst [vmem:[#allocation17_spill] sm:$0xff] %v5700_v5  ;;  %v4155_v5 = vpack.i.bf16 %v952_v49, %v1088_v43  ;;  %v5746_v43 = vrot.slane %v904_v53, %v4656_v55  ;;  %v1446_v25 = vcombine.high %v7377_v47, %v7376_v21  ;;  %v7379_v53 = vld [vmem:[#allocation42_spill] sm:$0xff]  ;;  %v7380_v37 = vld [vmem:[#allocation39_spill] sm:$0xff] }
 0x158   : > { %3557 = vrot.lane.b32.xlu0 %v7368_v31, %s4447_s20  ;;  %3559 = vrot.lane.b32.xlu1 %v7369_v20, %s4447_s20  ;;  %v4165_v2 = vpack.i.bf16 %v954_v1, %v1090_v59  ;;  %v1366_v40 = vcombine.high %v7380_v37, %v7379_v53  ;;  %v7382_v1 = vld [vmem:[#allocation53_spill] sm:$0xff]  ;;  %v5772_v4 = vrot.slane %v2178_v24, %v4584_v16 }
 0x159   : > { %v7385_v59 = vld [vmem:[#allocation49_spill] sm:$0xff]  ;;  %v957_v37 = vcombine.low %v5746_v43, %v5738_v51  ;;  %v1246_v53 = vcombine.high %v5540_v3, %v5554_v10  ;;  %v1478_v24 = vcombine.high %v5538_v7, %v5531_v39  ;;  %v7396_v39 = vld [vmem:[#allocation55_spill] sm:$0xff] }
 0x15a   : > { %v5724_v35 = vpop.permute.xlu0 %4151  ;;  %v5733_v42 = vpop.permute.xlu1 %4146 }
 0x15b   : > { %7372 = vst [vmem:[#allocation18_spill] sm:$0xff] %v5724_v35  ;;  %7373 = vst [vmem:[#allocation23_spill] sm:$0xff] %v5733_v42  ;;  %v1093_v35 = vcombine.low %v5727_v50, %v5715_v62  ;;  %v956_v42 = vcombine.high %v911_v56, %v943_v29  ;;  %v1414_v29 = vcombine.high %v7382_v1, %v7381_v54  ;;  %v7383_v56 = vld [vmem:[#allocation48_spill] sm:$0xff] }
 0x15c   : > { %3561 = vrot.lane.b32.xlu0 %v7374_v36, %s4447_s20  ;;  %4156 = vrot.lane.b32.xlu1 %v4155_v5, %s4448_s21  ;;  %v5756_v5 = vrot.slane %v2162_v41, %v4584_v16  ;;  %v1398_v21 = vcombine.high %v7384_v6, %v7383_v56  ;;  %v7386_v41 = vld [vmem:[#allocation47_spill] sm:$0xff]  ;;  %v7388_v54 = vld [vmem:[#allocation60_spill] sm:$0xff] }
 0x15d   : > { %v1382_v47 = vcombine.high %v7386_v41, %v7385_v59  ;;  %v7393_v6 = vld [vmem:[#allocation56_spill] sm:$0xff] }
 0x15e   : > { %v5748_v49 = vpop.permute.xlu0 %1992  ;;  %v5758_v27 = vpop.permute.xlu1 %2354  ;;  %v2210_v56 = vcombine.low %v5753_v48, %v5756_v5  ;;  %v7394_v59 = vld [vmem:[#allocation52_spill] sm:$0xff] }
 0x15f   : > { %7375 = vst [vmem:[#allocation19_spill] sm:$0xff] %v5748_v49  ;;  %7378 = vst [vmem:[#allocation50_spill] sm:$0xff] %v5758_v27  ;;  %v2194_v60 = vcombine.low %v5599_v63, %v5748_v49  ;;  %v1230_v41 = vcombine.high %v7394_v59, %v7393_v6  ;;  %v7397_v49 = vld [vmem:[#allocation64_spill] sm:$0xff]  ;;  %v7402_v6 = vld [vmem:[#allocation14_spill] sm:$0xff] }
 0x160   : > { %4161 = vrot.lane.b32.xlu0 %v4160_v46, %s4450_s23  ;;  %4166 = vrot.lane.b32.xlu1 %v4165_v2, %s4449_s22  ;;  %v4175_v46 = vpack.i.bf16 %v956_v42, %v1092_v33  ;;  %v7389_v2 = vld [vmem:[#allocation61_spill] sm:$0xff]  ;;  %v1350_v42 = vcombine.high %v7392_v11, %v7391_v12  ;;  %v5802_v33 = vrot.slane %v1414_v29, %v4656_v55 }
 0x161   : > { %v5775_v63 = vrot.slane %v2194_v60, %v4584_v16  ;;  %v5789_v60 = vrot.slane %v1446_v25, %v4656_v55  ;;  %v1310_v1 = vcombine.high %v7389_v2, %v7388_v54  ;;  %v5805_v25 = vrot.slane %v1398_v21, %v4584_v16  ;;  %v7395_v2 = vld [vmem:[#allocation57_spill] sm:$0xff] }
 0x162   : > { %v5784_v22 = vpop.permute.xlu0 %2358  ;;  %v5797_v3 = vpop.permute.xlu1 %2362  ;;  %v5811_v54 = vrot.slane %v1382_v47, %v4584_v16  ;;  %v1214_v7 = vcombine.high %v7396_v39, %v7395_v2  ;;  %v1278_v12 = vcombine.high %v7398_v28, %v7397_v49  ;;  %v5822_v21 = vrot.slane %v1246_v53, %v4584_v16  ;;  %v7401_v47 = vld [vmem:[#allocation24_spill] sm:$0xff] }
 0x163   : > { %7387 = vst [vmem:[#allocation51_spill] sm:$0xff] %v5784_v22  ;;  %v2242_v10 = vcombine.low %v5772_v4, %v5775_v63  ;;  %7390 = vst [vmem:[#allocation42_spill] sm:$0xff] %v5797_v3  ;;  %v5825_v11 = vrot.slane %v1262_v0, %v4584_v16  ;;  %v7403_v59 = vcombine.high %v7401_v47, %v7402_v6  ;;  %v7409_v6 = vld [vmem:[#allocation26_spill] sm:$0xff] }
 0x164   : > { %4171 = vrot.lane.b32.xlu0 %v4170_v58, %s4452_s25  ;;  %4176 = vrot.lane.b32.xlu1 %v4175_v46, %s4451_s24  ;;  %v1342_v28 = vcombine.high %v5604_v18, %v5595_v61  ;;  %v5835_v49 = vrot.slane %v1310_v1, %v4656_v55  ;;  %v5838_v46 = vrot.slane %v2210_v56, %v4656_v55  ;;  %v7406_v1 = vld [vmem:[#allocation34_spill] sm:$0xff] }
 0x165   : > { %v5818_v29 = vrot.slane %v2242_v10, %v4656_v55  ;;  %v4180_v39 = vpack.i.bf16 %v7403_v59, %v1478_v24  ;;  %v4185_v10 = vpack.i.bf16 %v957_v37, %v1093_v35  ;;  %v1479_v0 = vcombine.low %v5802_v33, %v5789_v60  ;;  %v7407_v56 = vld [vmem:[#allocation6_spill] sm:$0xff] }
 0x166   : > { %v5827_v58 = vpop.permute.xlu0 %2366  ;;  %7404 = vst [vmem:[#allocation53_spill] sm:$0xff] %v5838_v46  ;;  %v5840_v53 = vpop.permute.xlu1 %2370  ;;  %v5845_v2 = vrot.slane %v1350_v42, %v4584_v16  ;;  %v5848_v24 = vrot.slane %v1366_v40, %v4584_v16  ;;  %v5851_v59 = vrot.slane %v1230_v41, %v4584_v16  ;;  %v1749_v61 = vcombine.high %v7407_v56, %v7406_v1 }
 0x167   : > { %7399 = vst [vmem:[#allocation39_spill] sm:$0xff] %v5818_v29  ;;  %7400 = vst [vmem:[#allocation54_spill] sm:$0xff] %v5827_v58  ;;  %v5857_v18 = vrot.slane %v1214_v7, %v4584_v16  ;;  %v1292_v35 = vrot.slane %v1278_v12, %v4656_v55  ;;  %v2552_v37 = vcombine.low %v5784_v22, %v5827_v58 }
 0x168   : > { %7405 = vst [vmem:[#allocation48_spill] sm:$0xff] %v5840_v53  ;;  %4181 = vrot.lane.b32.xlu0 %v4180_v39, %s4448_s21  ;;  %4186 = vrot.lane.b32.xlu1 %v4185_v10, %s4454_s27  ;;  %v1461_v42 = vcombine.low %v5811_v54, %v5805_v25  ;;  %v1325_v41 = vcombine.low %v5822_v21, %v5825_v11  ;;  %v7408_v10 = vld [vmem:[#allocation25_spill] sm:$0xff] }
 0x169   : > { %v4190_v7 = vpack.i.bf16 %v1749_v61, %v1342_v28  ;;  %v958_v12 = vcombine.high %v5746_v43, %v5738_v51  ;;  %v2536_v1 = vcombine.low %v5758_v27, %v5797_v3  ;;  %v7410_v40 = vcombine.low %v7408_v10, %v7409_v6  ;;  %v7412_v51 = vld [vmem:[#allocation16_spill] sm:$0xff] }
 0x16a   : > { %v5869_v39 = vpop.permute.xlu0 %2374  ;;  %v5875_v56 = vpop.permute.xlu1 %2378  ;;  %v1343_v22 = vcombine.low %v1292_v35, %v5835_v49  ;;  %v7411_v58 = vcombine.high %v5210_v17, %v5144_v34  ;;  %v1732_v61 = vcombine.low %v5687_v32, %v5692_v30  ;;  %v2952_v43 = vcombine.high %v7412_v51, %v4971_v44 }
 0x16b   : > { %v4195_v47 = vpack.i.bf16 %v7410_v40, %v1479_v0  ;;  %v1429_v28 = vcombine.low %v5845_v2, %v5848_v24  ;;  %v1094_v0 = vcombine.high %v5727_v50, %v5715_v62  ;;  %v1293_v40 = vcombine.low %v5857_v18, %v5851_v59 }
 0x16c   : > { %v1699_v26 = vrot.slane %v7411_v58, %v4656_v55  ;;  %4191 = vrot.lane.b32.xlu0 %v4190_v7, %s4448_s21  ;;  %v5897_v34 = vrot.slane %v2552_v37, %v4584_v16  ;;  %v2568_v17 = vcombine.low %v5840_v53, %v5875_v56  ;;  %v5904_v58 = vrot.slane %v1461_v42, %v4656_v55 }
 0x16d   : > { %4196 = vrot.lane.b32.xlu1 %v4195_v47, %s4450_s23  ;;  %v5907_v7 = vrot.slane %v1325_v41, %v4656_v55  ;;  %v4200_v50 = vpack.i.bf16 %v958_v12, %v1094_v0  ;;  %v1480_v37 = vcombine.high %v5802_v33, %v5789_v60  ;;  %v5914_v51 = vrot.slane %v2536_v1, %v4584_v16 }
 0x16e   : > { %v1750_v44 = vcombine.low %v1699_v26, %v5705_v23  ;;  %v5909_v62 = vpop.permute.xlu0 %2382  ;;  %v5916_v27 = vpop.permute.xlu1 %1962  ;;  %v1344_v42 = vcombine.high %v1292_v35, %v5835_v49  ;;  %v7413_v41 = vcombine.high %v4593_v19, %v4966_v13  ;;  %v1437_v12 = vrot.slane %v1429_v28, %v4656_v55 }
 0x16f   : > { %v2584_v47 = vcombine.low %v5869_v39, %v5909_v62  ;;  %v1751_v60 = vcombine.high %v1699_v26, %v5705_v23  ;;  %v5931_v33 = vrot.slane %v1732_v61, %v4656_v55  ;;  %v5934_v1 = vrot.slane %v1293_v40, %v4656_v55 }
 0x170   : > { %v4205_v3 = vpack.i.bf16 %v1750_v44, %v1343_v22  ;;  %v5925_v53 = vrot.slane %v7413_v41, %v4584_v16  ;;  %4201 = vrot.lane.b32.xlu0 %v4200_v50, %s4453_s26  ;;  %v2600_v22 = vcombine.low %v5914_v51, %v5897_v34  ;;  %v2576_v49 = vrot.slane %v2568_v17, %v4584_v16  ;;  %v7416_v50 = vld [vmem:[#allocation13_spill] sm:$0xff] }
 0x171   : > { %v2592_v19 = vrot.slane %v2584_v47, %v4584_v16  ;;  %v5942_v13 = vrot.slane %v2952_v43, %v4584_v16  ;;  %v1462_v26 = vcombine.high %v5811_v54, %v5805_v25  ;;  %v7414_v35 = vcombine.high %v7408_v10, %v7409_v6 }
 0x172   : > { %4206 = vrot.lane.b32.xlu1 %v4205_v3, %s4450_s23  ;;  %v5946_v23 = vpop.permute.xlu0 %1966  ;;  %v1481_v28 = vcombine.low %v1437_v12, %v5904_v58  ;;  %v5952_v40 = vpop.permute.xlu1 %1970  ;;  %v4215_v17 = vpack.i.bf16 %v1751_v60, %v1344_v42  ;;  %v1345_v3 = vcombine.low %v5934_v1, %v5907_v7  ;;  %v7415_v43 = vcombine.low %v5650_v38, %v5635_v15 }
 0x173   : > { %v4210_v61 = vpack.i.bf16 %v7414_v35, %v1480_v37  ;;  %v2632_v0 = vcombine.low %v2576_v49, %v2592_v19  ;;  %v1430_v6 = vcombine.high %v5845_v2, %v5848_v24  ;;  %v2968_v10 = vcombine.high %v4976_v52, %v7368_v31  ;;  %v7417_v37 = vld [vmem:[#allocation29_spill] sm:$0xff]  ;;  %v7421_v24 = vld [vmem:[#allocation7_spill] sm:$0xff] }
 0x174   : > { %v1708_v25 = vrot.slane %v7415_v43, %v4656_v55  ;;  %v2984_v44 = vcombine.high %v7363_v57, %v7374_v36  ;;  %v5972_v42 = vrot.slane %v2600_v22, %v4656_v55  ;;  %v5982_v57 = vrot.slane %v1462_v26, %v4656_v55  ;;  %v7420_v36 = vld [vmem:[#allocation8_spill] sm:$0xff] }
 0x175   : > { %4211 = vrot.lane.b32.xlu0 %v4210_v61, %s4449_s22  ;;  %v5975_v41 = vrot.slane %v2632_v0, %v4656_v55  ;;  %v7422_v60 = vcombine.low %v7420_v36, %v7421_v24  ;;  %v1482_v35 = vcombine.high %v1437_v12, %v5904_v58  ;;  %v2633_v61 = vcombine.high %v2576_v49, %v2592_v19  ;;  %v7423_v12 = vld [vmem:[#allocation21_spill] sm:$0xff]  ;;  %v7424_v49 = vld [vmem:[#allocation2_spill] sm:$0xff] }
 0x176   : > { %7418 = vst [vmem:[#allocation45_spill] sm:$0xff] %v5972_v42  ;;  %4216 = vrot.lane.b32.xlu1 %v4215_v17, %s4449_s22  ;;  %v1752_v2 = vcombine.low %v1708_v25, %v5931_v33  ;;  %v5984_v31 = vpop.permute.xlu0 %1974  ;;  %v5990_v0 = vpop.permute.xlu1 %1978  ;;  %v2275_v43 = vcombine.high %v5838_v46, %v5818_v29  ;;  %v5999_v47 = vrot.slane %v1430_v6, %v4656_v55  ;;  %v7467_v46 = vld [vmem:[#allocation48_spill] sm:$0xff] }
 0x177   : > { %7419 = vst [vmem:[#allocation49_spill] sm:$0xff] %v5975_v41  ;;  %v4220_v22 = vpack.i.bf16 %v7422_v60, %v1481_v28  ;;  %v2665_v52 = vcombine.high %v5972_v42, %v5975_v41  ;;  %v6002_v28 = vrot.slane %v2968_v10, %v4584_v16  ;;  %v6005_v58 = vrot.slane %v2984_v44, %v4584_v16  ;;  %v7425_v60 = vld [vmem:[#allocation22_spill] sm:$0xff]  ;;  %v7426_v10 = vld [vmem:[#allocation20_spill] sm:$0xff] }
 0x178   : > { %v4225_v17 = vpack.i.bf16 %v1752_v2, %v1345_v3  ;;  %v2800_v19 = vcombine.high %v7424_v49, %v7423_v12  ;;  %v2243_v3 = vcombine.high %v5772_v4, %v5775_v63  ;;  %v2601_v2 = vcombine.high %v5914_v51, %v5897_v34  ;;  %v7428_v4 = vld [vmem:[#allocation27_spill] sm:$0xff] }
 0x179   : > { %4221 = vrot.lane.b32.xlu0 %v4220_v22, %s4452_s25  ;;  %v4235_v6 = vpack.i.bf16 %v2665_v52, %v2275_v43  ;;  %v2816_v26 = vcombine.high %v7426_v10, %v7425_v60  ;;  %v7427_v44 = vcombine.high %v7420_v36, %v7421_v24  ;;  %v1346_v12 = vcombine.high %v5934_v1, %v5907_v7  ;;  %v7429_v34 = vld [vmem:[#allocation11_spill] sm:$0xff] }
 0x17a   : > { %4226 = vrot.lane.b32.xlu1 %v4225_v17, %s4452_s25  ;;  %v6017_v54 = vpop.permute.xlu0 %1982  ;;  %v1483_v63 = vcombine.low %v5999_v47, %v5982_v57  ;;  %v3032_v51 = vcombine.high %v7429_v34, %v7428_v4  ;;  %v2211_v52 = vcombine.high %v5753_v48, %v5756_v5  ;;  %v6031_v17 = vrot.slane %v2633_v61, %v4656_v55  ;;  %v6035_v36 = vpop.permute.xlu1 %1986 }
 0x17b   : > { %v4230_v22 = vpack.i.bf16 %v7427_v44, %v1482_v35  ;;  %v2026_v43 = vcombine.low %v5946_v23, %v5984_v31  ;;  %v2848_v1 = vcombine.high %v5110_v45, %v7369_v20  ;;  %v1753_v24 = vcombine.high %v1708_v25, %v5931_v33  ;;  %v7442_v45 = vld [vmem:[#allocation33_spill] sm:$0xff] }
 0x17c   : > { %v6046_v5 = vrot.slane %v2243_v3, %v4656_v55  ;;  %v6049_v35 = vrot.slane %v2601_v2, %v4656_v55  ;;  %v2010_v61 = vcombine.low %v5916_v27, %v5952_v40  ;;  %v2042_v49 = vcombine.low %v5990_v0, %v6035_v36  ;;  %v7430_v3 = vld [vmem:[#allocation31_spill] sm:$0xff]  ;;  %v7431_v2 = vld [vmem:[#allocation32_spill] sm:$0xff] }
 0x17d   : > { %4231 = vrot.lane.b32.xlu0 %v4230_v22, %s4451_s24  ;;  %v2832_v20 = vcombine.high %v5088_v14, %v5115_v8  ;;  %v4240_v25 = vpack.i.bf16 %v1753_v24, %v1346_v12  ;;  %v7432_v60 = vcombine.low %v7430_v3, %v7431_v2  ;;  %v2225_v44 = vrot.slane %v2211_v52, %v4656_v55 }
 0x17e   : > { %4236 = vrot.lane.b32.xlu1 %v4235_v6, %s4448_s21  ;;  %v6060_v33 = vpop.permute.xlu0 %1990  ;;  %v6067_v22 = vrot.slane %v2026_v43, %v4584_v16  ;;  %v6069_v4 = vpop.permute.xlu1 %2352  ;;  %v2666_v14 = vcombine.low %v6049_v35, %v6031_v17  ;;  %v6076_v8 = vrot.slane %v2800_v19, %v4584_v16  ;;  %v6079_v12 = vrot.slane %v2816_v26, %v4584_v16 }
 0x17f   : > { %v4245_v10 = vpack.i.bf16 %v7432_v60, %v1483_v63  ;;  %v2058_v6 = vcombine.low %v6017_v54, %v6060_v33  ;;  %v6082_v63 = vrot.slane %v2848_v1, %v4584_v16  ;;  %v7436_v34 = vcombine.high %v5687_v32, %v5692_v30  ;;  %v7439_v32 = vld [vmem:[#allocation30_spill] sm:$0xff] }
 0x180   : > { %7433 = vst [vmem:[#allocation47_spill] sm:$0xff] %v6076_v8  ;;  %7434 = vst [vmem:[#allocation60_spill] sm:$0xff] %v6079_v12  ;;  %v6092_v43 = vrot.slane %v2010_v61, %v4584_v16  ;;  %v6095_v19 = vrot.slane %v2042_v49, %v4584_v16  ;;  %v2276_v1 = vcombine.low %v2225_v44, %v6046_v5 }
 0x181   : > { %7435 = vst [vmem:[#allocation61_spill] sm:$0xff] %v6082_v63  ;;  %4241 = vrot.lane.b32.xlu0 %v4240_v25, %s4451_s24  ;;  %v6089_v52 = vrot.slane %v7436_v34, %v4656_v55  ;;  %v6098_v26 = vrot.slane %v2058_v6, %v4584_v16  ;;  %v6103_v24 = vrot.slane %v2832_v20, %v4584_v16  ;;  %v7438_v25 = vld [vmem:[#allocation28_spill] sm:$0xff] }
 0x182   : > { %4246 = vrot.lane.b32.xlu1 %v4245_v10, %s4454_s27  ;;  %v2896_v30 = vcombine.high %v7439_v32, %v7438_v25  ;;  %v2357_v60 = vpop.permute.xlu0 %2356  ;;  %v7440_v61 = vcombine.high %v5650_v38, %v5635_v15  ;;  %v6114_v6 = vrot.slane %v3032_v51, %v4656_v55  ;;  %v2074_v10 = vcombine.low %v6092_v43, %v6067_v22  ;;  %v2361_v34 = vpop.permute.xlu1 %2360  ;;  %v7441_v32 = vld [vmem:[#allocation15_spill] sm:$0xff] }
 0x183   : > { %7437 = vst [vmem:[#allocation43_spill] sm:$0xff] %v6103_v24  ;;  %v2106_v20 = vcombine.low %v6095_v19, %v6098_v26  ;;  %v4255_v48 = vpack.i.bf16 %v2666_v14, %v2276_v1  ;;  %v1484_v25 = vcombine.high %v5999_v47, %v5982_v57  ;;  %v2864_v7 = vcombine.high %v7442_v45, %v7441_v32  ;;  %v7446_v32 = vld [vmem:[#allocation36_spill] sm:$0xff] }
 0x184   : > { %v6111_v49 = vrot.slane %v7440_v61, %v4656_v55  ;;  %v2879_v15 = vcombine.low %v6076_v8, %v6079_v12  ;;  %v7443_v51 = vcombine.high %v7417_v37, %v7416_v50  ;;  %v2911_v14 = vcombine.low %v6103_v24, %v6082_v63  ;;  %v7445_v37 = vld [vmem:[#allocation5_spill] sm:$0xff] }
 0x185   : > { %v6139_v57 = vrot.slane %v2106_v20, %v4656_v55  ;;  %v6153_v20 = vrot.slane %v2074_v10, %v4656_v55  ;;  %v7448_v45 = vcombine.high %v7430_v3, %v7431_v2  ;;  %v2667_v50 = vcombine.high %v6049_v35, %v6031_v17 }
 0x186   : > { %v6132_v61 = vrot.slane %v7443_v51, %v4656_v55  ;;  %4256 = vrot.lane.b32.xlu1 %v4255_v48, %s4450_s23  ;;  %v2365_v1 = vpop.permute.xlu0 %2364  ;;  %v2369_v48 = vpop.permute.xlu1 %2368  ;;  %v6161_v42 = vrot.slane %v2896_v30, %v4656_v55  ;;  %v1294_v38 = vcombine.high %v5857_v18, %v5851_v59  ;;  %v6168_v10 = vrot.slane %v2864_v7, %v4656_v55 }
 0x187   : > { %7444 = vst [vmem:[#allocation41_spill] sm:$0xff] %v6139_v57  ;;  %7447 = vst [vmem:[#allocation56_spill] sm:$0xff] %v6153_v20  ;;  %v4265_v41 = vpack.i.bf16 %v7448_v45, %v1484_v25  ;;  %v2416_v51 = vcombine.low %v2357_v60, %v2365_v1  ;;  %v1326_v3 = vcombine.high %v5822_v21, %v5825_v11 }
 0x188   : > { %7449 = vst [vmem:[#allocation52_spill] sm:$0xff] %v6161_v42  ;;  %7452 = vst [vmem:[#allocation57_spill] sm:$0xff] %v6168_v10  ;;  %v2277_v17 = vcombine.high %v2225_v44, %v6046_v5  ;;  %v6175_v35 = vrot.slane %v2879_v15, %v4656_v55  ;;  %v2027_v59 = vcombine.high %v5946_v23, %v5984_v31 }
 0x189   : > { %v2059_v7 = vcombine.high %v6017_v54, %v6060_v33  ;;  %v2400_v2 = vcombine.low %v6069_v4, %v2361_v34  ;;  %v6185_v21 = vrot.slane %v2911_v14, %v4656_v55  ;;  %v2417_v11 = vcombine.high %v2357_v60, %v2365_v1 }
 0x18a   : > { %4266 = vrot.lane.b32.xlu1 %v4265_v41, %s4453_s26  ;;  %v2373_v30 = vpop.permute.xlu0 %2372  ;;  %v2377_v41 = vpop.permute.xlu1 %2376  ;;  %v4275_v5 = vpack.i.bf16 %v2667_v50, %v2277_v17  ;;  %v7454_v25 = vcombine.low %v5925_v53, %v5942_v13  ;;  %v6196_v54 = vrot.slane %v1294_v38, %v4656_v55  ;;  %v2043_v31 = vcombine.high %v5990_v0, %v6035_v36 }
 0x18b   : > { %7453 = vst [vmem:[#allocation55_spill] sm:$0xff] %v6185_v21  ;;  %v2401_v33 = vcombine.high %v6069_v4, %v2361_v34  ;;  %v2424_v60 = vrot.slane %v2416_v51, %v4584_v16  ;;  %v6203_v15 = vrot.slane %v1326_v3, %v4656_v55  ;;  %v2011_v14 = vcombine.high %v5916_v27, %v5952_v40 }
 0x18c   : > { %v6193_v23 = vrot.slane %v7454_v25, %v4656_v55  ;;  %v2432_v45 = vcombine.low %v2369_v48, %v2377_v41  ;;  %v2433_v1 = vcombine.high %v2369_v48, %v2377_v41  ;;  %v6209_v38 = vrot.slane %v2027_v59, %v4584_v16 }
 0x18d   : > { %v6212_v50 = vrot.slane %v2059_v7, %v4584_v16  ;;  %v2107_v0 = vcombine.high %v6095_v19, %v6098_v26  ;;  %v2408_v36 = vrot.slane %v2400_v2, %v4584_v16  ;;  %v2075_v34 = vcombine.high %v6092_v43, %v6067_v22  ;;  %v7457_v2 = vld [vmem:[#allocation62_spill] sm:$0xff] }
 0x18e   : > { %4276 = vrot.lane.b32.xlu1 %v4275_v5, %s4449_s22  ;;  %v2381_v4 = vpop.permute.xlu0 %2380  ;;  %v6220_v27 = vrot.slane %v2417_v11, %v4584_v16  ;;  %v6222_v40 = vpop.permute.xlu1 %3143  ;;  %v6225_v3 = vrot.slane %v2043_v31, %v4584_v16  ;;  %v6228_v17 = vrot.slane %v2401_v33, %v4584_v16  ;;  %v2440_v59 = vrot.slane %v2432_v45, %v4584_v16 }
 0x18f   : > { %7455 = vst [vmem:[#allocation64_spill] sm:$0xff] %v6222_v40  ;;  %v2448_v51 = vcombine.low %v2373_v30, %v2381_v4  ;;  %v2449_v48 = vcombine.high %v2373_v30, %v2381_v4  ;;  %v2464_v19 = vcombine.low %v2408_v36, %v2424_v60  ;;  %v2465_v26 = vcombine.high %v2408_v36, %v2424_v60 }
 0x190   : > { %7456 = vst [vmem:[#allocation63_spill] sm:$0xff] %v6228_v17  ;;  %v6232_v7 = vrot.slane %v2433_v1, %v4584_v16  ;;  %v2163_v30 = vcombine.high %v7457_v2, %v5586_v9  ;;  %v6241_v11 = vrot.slane %v2011_v14, %v4584_v16  ;;  %v6244_v41 = vrot.slane %v2107_v0, %v4656_v55  ;;  %v7459_v14 = vld [vmem:[#allocation66_spill] sm:$0xff]  ;;  %v7460_v1 = vld [vmem:[#allocation65_spill] sm:$0xff] }
 0x191   : > { %v2456_v22 = vrot.slane %v2448_v51, %v4584_v16  ;;  %v6236_v43 = vrot.slane %v2449_v48, %v4584_v16  ;;  %v2122_v5 = vcombine.low %v6225_v3, %v6212_v50  ;;  %v2480_v31 = vcombine.low %v6228_v17, %v6220_v27 }
 0x192   : > { %v6248_v25 = vpop.permute.xlu0 %3147  ;;  %v6254_v9 = vpop.permute.xlu1 %3151  ;;  %v2147_v36 = vcombine.high %v7460_v1, %v7459_v14  ;;  %v6259_v0 = vrot.slane %v2075_v34, %v4656_v55  ;;  %v2090_v4 = vcombine.low %v6241_v11, %v6209_v38  ;;  %v6264_v51 = vrot.slane %v2464_v19, %v4656_v55  ;;  %v7463_v34 = vld [vmem:[#allocation19_spill] sm:$0xff]  ;;  %v7464_v14 = vld [vmem:[#allocation68_spill] sm:$0xff] }
 0x193   : > { %v2496_v33 = vcombine.low %v2440_v59, %v2456_v22  ;;  %v2497_v60 = vcombine.high %v2440_v59, %v2456_v22  ;;  %v2512_v45 = vcombine.low %v6232_v7, %v6236_v43  ;;  %7458 = vst [vmem:[#allocation25_spill] sm:$0xff] %v6254_v9  ;;  %v6267_v48 = vrot.slane %v2465_v26, %v4656_v55 }
 0x194   : > { %7461 = vst [vmem:[#allocation26_spill] sm:$0xff] %v6264_v51  ;;  %v2195_v1 = vcombine.high %v7464_v14, %v7463_v34  ;;  %v2585_v18 = vcombine.high %v5869_v39, %v5909_v62  ;;  %v6283_v19 = vrot.slane %v2122_v5, %v4656_v55  ;;  %v2141_v34 = vcombine.high %v6259_v0, %v6244_v41  ;;  %v7465_v62 = vld [vmem:[#allocation54_spill] sm:$0xff]  ;;  %v7466_v5 = vld [vmem:[#allocation51_spill] sm:$0xff] }
 0x195   : > { %v6270_v59 = vrot.slane %v2496_v33, %v4656_v55  ;;  %v6273_v22 = vrot.slane %v2497_v60, %v4656_v55  ;;  %v6276_v2 = vrot.slane %v2512_v45, %v4656_v55  ;;  %v1347_v33 = vcombine.low %v6196_v54, %v6203_v15 }
 0x196   : > { %v6285_v26 = vpop.permute.xlu0 %3155  ;;  %v6290_v60 = vrot.slane %v2480_v31, %v4656_v55  ;;  %v6294_v44 = vpop.permute.xlu1 %3159  ;;  %v2553_v14 = vcombine.high %v7466_v5, %v7465_v62  ;;  %v2569_v63 = vcombine.high %v7467_v46, %v5875_v56  ;;  %v2139_v31 = vcombine.high %v6153_v20, %v6139_v57  ;;  %v7468_v62 = vld [vmem:[#allocation72_spill] sm:$0xff]  ;;  %v7469_v5 = vld [vmem:[#allocation70_spill] sm:$0xff] }
 0x197   : > { %7462 = vst [vmem:[#allocation16_spill] sm:$0xff] %v6270_v59  ;;  %v2531_v39 = vcombine.high %v6267_v48, %v6273_v22  ;;  %v2529_v45 = vcombine.high %v6264_v51, %v6270_v59  ;;  %v6309_v24 = vrot.slane %v2090_v4, %v4656_v55  ;;  %v3341_v12 = vcombine.low %v6248_v25, %v6285_v26  ;;  %v7470_v46 = vld [vmem:[#allocation42_spill] sm:$0xff] }
 0x198   : > { %v2532_v29 = vcombine.low %v6290_v60, %v6276_v2  ;;  %v2179_v47 = vcombine.high %v7469_v5, %v7468_v62  ;;  %v7471_v56 = vld [vmem:[#allocation50_spill] sm:$0xff]  ;;  %v2599_v57 = vrot.slane %v2585_v18, %v4584_v16  ;;  %v6323_v4 = vrot.slane %v2163_v30, %v4584_v16 }
 0x199   : > { %v4285_v8 = vpack.i.bf16 %v2531_v39, %v2141_v34  ;;  %v2537_v17 = vcombine.high %v7471_v56, %v7470_v46  ;;  %v4250_v59 = vpack.i.bf16 %v2529_v45, %v2139_v31  ;;  %v3325_v34 = vcombine.low %v6222_v40, %v6254_v9 }
 0x19a   : > { %v6320_v20 = vpop.permute.xlu0 %3163  ;;  %v6327_v39 = vpop.permute.xlu1 %3167  ;;  %v2142_v62 = vcombine.low %v6309_v24, %v6283_v19  ;;  %v2161_v18 = vrot.slane %v2147_v36, %v4584_v16  ;;  %v2209_v45 = vrot.slane %v2195_v1, %v4584_v16  ;;  %v2567_v30 = vrot.slane %v2553_v14, %v4584_v16 }
 0x19b   : > { %4286 = vrot.lane.b32.xlu1 %v4285_v8, %s4449_s22  ;;  %v2583_v31 = vrot.slane %v2569_v63, %v4584_v16  ;;  %4251 = vrot.lane.b32.xlu0 %v4250_v59, %s4448_s21  ;;  %v6340_v46 = vrot.slane %v3341_v12, %v4584_v16  ;;  %v3357_v8 = vcombine.low %v6294_v44, %v6327_v39 }
 0x19c   : > { %v4295_v56 = vpack.i.bf16 %v2532_v29, %v2142_v62  ;;  %v7472_v5 = vcombine.low %v6111_v49, %v6089_v52  ;;  %v2193_v36 = vrot.slane %v2179_v47, %v4584_v16  ;;  %v2551_v1 = vrot.slane %v2537_v17, %v4584_v16 }
 0x19d   : > { %v2648_v14 = vcombine.low %v2583_v31, %v2599_v57  ;;  %v2530_v63 = vcombine.low %v6267_v48, %v6273_v22  ;;  %v3333_v12 = vrot.slane %v3325_v34, %v4584_v16  ;;  %v7473_v17 = vcombine.low %v6002_v28, %v6005_v58 }
 0x19e   : > { %v4260_v51 = vpack.i.bf16 %v7472_v5, %v1347_v33  ;;  %v6349_v42 = vpop.permute.xlu0 %3171  ;;  %v6354_v59 = vpop.permute.xlu1 %3141  ;;  %v2258_v62 = vcombine.low %v2193_v36, %v2209_v45  ;;  %v2616_v48 = vcombine.low %v2551_v1, %v2567_v30  ;;  %v2140_v22 = vcombine.low %v6259_v0, %v6244_v41 }
 0x19f   : > { %v3373_v29 = vcombine.low %v6320_v20, %v6349_v42  ;;  %4296 = vrot.lane.b32.xlu1 %v4295_v56, %s4452_s25  ;;  %v6365_v33 = vrot.slane %v7473_v17, %v4656_v55  ;;  %v2649_v5 = vcombine.high %v2583_v31, %v2599_v57  ;;  %v3389_v56 = vcombine.low %v3333_v12, %v6340_v46 }
 0x1a0   : > { %4261 = vrot.lane.b32.xlu0 %v4260_v51, %s4454_s27  ;;  %v3365_v47 = vrot.slane %v3357_v8, %v4584_v16  ;;  %v2226_v17 = vcombine.low %v2161_v18, %v6323_v4  ;;  %v2656_v40 = vrot.slane %v2648_v14, %v4656_v55  ;;  %v4270_v51 = vpack.i.bf16 %v2530_v63, %v2140_v22 }
 0x1a1   : > { %v3381_v10 = vrot.slane %v3373_v29, %v4584_v16  ;;  %v1348_v41 = vcombine.high %v6196_v54, %v6203_v15  ;;  %v2259_v0 = vcombine.high %v2193_v36, %v2209_v45  ;;  %v2617_v34 = vcombine.high %v2551_v1, %v2567_v30 }
 0x1a2   : > { %v6377_v9 = vpop.permute.xlu0 %3145  ;;  %v6381_v57 = vpop.permute.xlu1 %3149  ;;  %v7474_v31 = vcombine.high %v5925_v53, %v5942_v13  ;;  %v2227_v29 = vcombine.high %v2161_v18, %v6323_v4  ;;  %v2266_v14 = vrot.slane %v2258_v62, %v4656_v55  ;;  %v2624_v63 = vrot.slane %v2616_v48, %v4656_v55 }
 0x1a3   : > { %v3421_v21 = vcombine.low %v3365_v47, %v3381_v10  ;;  %v3422_v22 = vcombine.high %v3365_v47, %v3381_v10  ;;  %v6394_v54 = vrot.slane %v2649_v5, %v4656_v55  ;;  %v6397_v15 = vrot.slane %v3389_v56, %v4656_v55 }
 0x1a4   : > { %v6387_v8 = vrot.slane %v7474_v31, %v4656_v55  ;;  %4271 = vrot.lane.b32.xlu0 %v4270_v51, %s4450_s23  ;;  %v2234_v13 = vrot.slane %v2226_v17, %v4656_v55  ;;  %v3390_v4 = vcombine.high %v3333_v12, %v6340_v46  ;;  %v7475_v10 = vcombine.high %v6111_v49, %v6089_v52  ;;  %v7476_v12 = vld [vmem:[#allocation71_spill] sm:$0xff] }
 0x1a5   : > { %v6400_v45 = vrot.slane %v3421_v21, %v4656_v55  ;;  %v2668_v36 = vcombine.low %v2624_v63, %v2656_v40  ;;  %v6410_v1 = vrot.slane %v2259_v0, %v4656_v55  ;;  %v6413_v47 = vrot.slane %v2617_v34, %v4656_v55 }
 0x1a6   : > { %v3154_v18 = vpop.permute.xlu0 %3153  ;;  %v4280_v30 = vpack.i.bf16 %v7475_v10, %v1348_v41  ;;  %v3158_v62 = vpop.permute.xlu1 %3157  ;;  %v6420_v46 = vrot.slane %v2227_v29, %v4656_v55  ;;  %v4124_v52 = vunpack.i.h.bf16 %v7476_v12  ;;  %v6424_v49 = vrot.slane %v3422_v22, %v4656_v55 }
 0x1a7   : > { %v3454_v48 = vcombine.high %v6397_v15, %v6400_v45  ;;  %v2278_v5 = vcombine.low %v2234_v13, %v2266_v14  ;;  %v3205_v34 = vcombine.low %v6377_v9, %v3154_v18  ;;  %v7477_v56 = vcombine.high %v7446_v32, %v7445_v37 }
 0x1a8   : > { %4281 = vrot.lane.b32.xlu0 %v4280_v30, %s4453_s26  ;;  %v2669_v51 = vcombine.high %v2624_v63, %v2656_v40  ;;  %v2670_v41 = vcombine.low %v6413_v47, %v6394_v54  ;;  %v6434_v0 = vrot.slane %v3390_v4, %v4656_v55  ;;  %v7478_v10 = vcombine.high %v6002_v28, %v6005_v58  ;;  %v7482_v28 = vld [vmem:[#allocation74_spill] sm:$0xff] }
 0x1a9   : > { %v4305_v17 = vpack.i.bf16 %v3454_v48, %v7477_v56  ;;  %v4290_v29 = vpack.i.bf16 %v2668_v36, %v2278_v5  ;;  %v3189_v40 = vcombine.low %v6354_v59, %v6381_v57  ;;  %v2279_v4 = vcombine.high %v2234_v13, %v2266_v14  ;;  %v7479_v5 = vld [vmem:[#allocation3_spill] sm:$0xff]  ;;  %v7480_v56 = vld [vmem:[#allocation4_spill] sm:$0xff] }
 0x1aa   : > { %v3162_v31 = vpop.permute.xlu0 %3161  ;;  %v6442_v30 = vrot.slane %v7478_v10, %v4656_v55  ;;  %v3166_v63 = vpop.permute.xlu1 %3165  ;;  %v2280_v36 = vcombine.low %v6420_v46, %v6410_v1  ;;  %v7481_v21 = vcombine.low %v7479_v5, %v7480_v56  ;;  %v3455_v10 = vcombine.low %v6434_v0, %v6424_v49 }
 0x1ab   : > { %4306 = vrot.lane.b32.xlu1 %v4305_v17, %s4448_s21  ;;  %v2281_v17 = vcombine.high %v6420_v46, %v6410_v1  ;;  %v3213_v14 = vrot.slane %v3205_v34, %v4584_v16  ;;  %v3221_v13 = vcombine.low %v3158_v62, %v3166_v63  ;;  %v4300_v53 = vpack.i.bf16 %v2669_v51, %v2279_v4 }
 0x1ac   : > { %v6454_v22 = vsel %vm738_vm5, %v7481_v21, %v4124_v52  ;;  %4291 = vrot.lane.b32.xlu0 %v4290_v29, %s4452_s25  ;;  %v4315_v48 = vpack.i.bf16 %v2670_v41, %v2280_v36  ;;  %v2091_v5 = vcombine.high %v6241_v11, %v6209_v38  ;;  %v3206_v21 = vcombine.high %v6377_v9, %v3154_v18 }
 0x1ad   : > { %v2533_v29 = vcombine.high %v6290_v60, %v6276_v2  ;;  %v2671_v56 = vcombine.high %v6413_v47, %v6394_v54  ;;  %v3197_v58 = vrot.slane %v3189_v40, %v4584_v16  ;;  %v3222_v1 = vcombine.high %v3158_v62, %v3166_v63 }
 0x1ae   : > { %v3170_v52 = vpop.permute.xlu0 %3169  ;;  %v6471_v46 = vpop.permute.xlu1 %3531  ;;  %v2513_v38 = vcombine.high %v6232_v7, %v6236_v43  ;;  %v3190_v11 = vcombine.high %v6354_v59, %v6381_v57  ;;  %v2143_v9 = vcombine.high %v6309_v24, %v6283_v19  ;;  %v7483_v2 = vcombine.low %v6132_v61, %v6114_v6  ;;  %v7484_v43 = vld [vmem:[#allocation63_spill] sm:$0xff] }
 0x1af   : > { %v3237_v34 = vcombine.low %v3162_v31, %v3170_v52  ;;  %v3238_v51 = vcombine.high %v3162_v31, %v3170_v52  ;;  %4316 = vrot.lane.b32.xlu1 %v4315_v48, %s4454_s27  ;;  %v3253_v54 = vcombine.low %v3197_v58, %v3213_v14  ;;  %v3229_v18 = vrot.slane %v3221_v13, %v4584_v16 }
 0x1b0   : > { %4301 = vrot.lane.b32.xlu0 %v4300_v53, %s4451_s24  ;;  %v4325_v60 = vpack.i.bf16 %v3455_v10, %v7483_v2  ;;  %v2123_v7 = vcombine.high %v6225_v3, %v6212_v50  ;;  %v2481_v59 = vcombine.high %v7484_v43, %v6220_v27  ;;  %v6494_v24 = vrot.slane %v3206_v21, %v4584_v16  ;;  %v7486_v2 = vld [vmem:[#allocation37_spill] sm:$0xff] }
 0x1b1   : > { %v3245_v47 = vrot.slane %v3237_v34, %v4584_v16  ;;  %v6487_v62 = vrot.slane %v3238_v51, %v4584_v16  ;;  %v4310_v57 = vpack.i.bf16 %v2533_v29, %v2143_v9  ;;  %v3254_v53 = vcombine.high %v3197_v58, %v3213_v14 }
 0x1b2   : > { %v6496_v19 = vpop.permute.xlu0 %3533  ;;  %v6499_v41 = vrot.slane %v3222_v1, %v4584_v16  ;;  %v6501_v40 = vpop.permute.xlu1 %3535  ;;  %v6505_v50 = vrot.slane %v2513_v38, %v4656_v55  ;;  %v6508_v27 = vrot.slane %v3190_v11, %v4584_v16  ;;  %v4335_v3 = vpack.i.bf16 %v2671_v56, %v2281_v17 }
 0x1b3   : > { %v3285_v31 = vcombine.low %v3229_v18, %v3245_v47  ;;  %v3286_v48 = vcombine.high %v3229_v18, %v3245_v47  ;;  %4326 = vrot.lane.b32.xlu1 %v4325_v60, %s4450_s23  ;;  %v3456_v63 = vcombine.high %v6434_v0, %v6424_v49  ;;  %v6514_v4 = vrot.slane %v3253_v54, %v4656_v55  ;;  %v7487_v60 = vld [vmem:[#allocation35_spill] sm:$0xff] }
 0x1b4   : > { %4311 = vrot.lane.b32.xlu0 %v4310_v57, %s4451_s24  ;;  %v3301_v10 = vcombine.low %v6499_v41, %v6487_v62  ;;  %v4128_v14 = vunpack.i.l.bf16 %v7482_v28  ;;  %v6526_v17 = vrot.slane %v2123_v7, %v4656_v55  ;;  %v6529_v49 = vrot.slane %v2481_v59, %v4656_v55  ;;  %v7493_v7 = vld [vmem:[#allocation73_spill] sm:$0xff]  ;;  %v7495_v57 = vld [vmem:[#allocation64_spill] sm:$0xff] }
 0x1b5   : > { %v6517_v36 = vrot.slane %v3285_v31, %v4656_v55  ;;  %v6520_v58 = vrot.slane %v3286_v48, %v4656_v55  ;;  %v3374_v0 = vcombine.high %v6320_v20, %v6349_v42  ;;  %v3268_v21 = vrot.slane %v3254_v53, %v4656_v55  ;;  %v7494_v59 = vld [vmem:[#allocation25_spill] sm:$0xff] }
 0x1b6   : > { %v6533_v13 = vpop.permute.xlu0 %3537  ;;  %v3269_v52 = vcombine.low %v6508_v27, %v6494_v24  ;;  %v6540_v56 = vpop.permute.xlu1 %3539  ;;  %v6546_v34 = vrot.slane %v2091_v5, %v4656_v55  ;;  %v3342_v42 = vcombine.high %v6248_v25, %v6285_v26  ;;  %v3358_v20 = vcombine.high %v6294_v44, %v6327_v39  ;;  %v7490_v26 = vld [vmem:[#allocation9_spill] sm:$0xff]  ;;  %v7491_v44 = vld [vmem:[#allocation10_spill] sm:$0xff] }
 0x1b7   : > { %4336 = vrot.lane.b32.xlu1 %v4335_v3, %s4453_s26  ;;  %v3318_v1 = vcombine.high %v6514_v4, %v6517_v36  ;;  %v2534_v51 = vcombine.low %v6529_v49, %v6505_v50  ;;  %v6555_v38 = vrot.slane %v3301_v10, %v4656_v55  ;;  %v7485_v11 = vcombine.high %v6132_v61, %v6114_v6 }
 0x1b8   : > { %v7488_v5 = vcombine.high %v7486_v2, %v7487_v60  ;;  %v3320_v18 = vcombine.high %v3268_v21, %v6520_v58  ;;  %v7489_v25 = vunpack.i.l.bf16 %v7476_v12  ;;  %v7492_v39 = vcombine.low %v7490_v26, %v7491_v44 }
 0x1b9   : > { %v4345_v9 = vpack.i.bf16 %v3456_v63, %v7485_v11  ;;  %v4134_v43 = vunpack.i.h.bf16 %v7493_v7  ;;  %v3326_v53 = vcombine.high %v7495_v57, %v7494_v59  ;;  %v3388_v6 = vrot.slane %v3374_v0, %v4584_v16 }
 0x1ba   : > { %v4320_v54 = vpack.i.bf16 %v3318_v1, %v7488_v5  ;;  %v739_v47 = vsel %vm738_vm5, %v7492_v39, %v7489_v25  ;;  %v6574_v61 = vpop.permute.xlu0 %3541  ;;  %v4133_v48 = vunpack.i.l.bf16 %v7493_v7  ;;  %v6579_v12 = vrot.slane %v3269_v52, %v4656_v55  ;;  %v6581_v3 = vpop.permute.xlu1 %3543  ;;  %v7498_v25 = vld [vmem:[#allocation57_spill] sm:$0xff] }
 0x1bb   : > { %v741_v31 = vsel %vm740_vm6, %v739_v47, %v4128_v14  ;;  %4346 = vrot.lane.b32.xlu1 %v4345_v9, %s4449_s22  ;;  %v2144_v63 = vcombine.low %v6546_v34, %v6526_v17  ;;  %v7496_v10 = vunpack.i.h.bf16 %v7482_v28  ;;  %v7497_v14 = vld [vmem:[#allocation17_spill] sm:$0xff]  ;;  %v3356_v11 = vrot.slane %v3342_v42, %v4584_v16  ;;  %v7499_v9 = vld [vmem:[#allocation52_spill] sm:$0xff]  ;;  %v7501_v42 = vld [vmem:[#allocation47_spill] sm:$0xff] }
 0x1bc   : > { %4321 = vrot.lane.b32.xlu0 %v4320_v54, %s4448_s21  ;;  %v4139_v1 = vunpack.i.h.bf16 %v7497_v14  ;;  %v3372_v52 = vrot.slane %v3358_v20, %v4584_v16  ;;  %v4138_v5 = vunpack.i.l.bf16 %v7497_v14  ;;  %v7500_v26 = vcombine.high %v7498_v25, %v7499_v9  ;;  %v7502_v20 = vld [vmem:[#allocation60_spill] sm:$0xff] }
 0x1bd   : > { %v753_v0 = vsel %vm740_vm6, %v6454_v22, %v7496_v10  ;;  %v4330_v44 = vpack.i.bf16 %v2534_v51, %v2144_v63  ;;  %v3321_v39 = vcombine.low %v6579_v12, %v6555_v38  ;;  %v3340_v28 = vrot.slane %v3326_v53, %v4584_v16  ;;  %v7504_v53 = vld [vmem:[#allocation40_spill] sm:$0xff] }
 0x1be   : > { %v4355_v54 = vpack.i.bf16 %v3320_v18, %v7500_v26  ;;  %v3437_v47 = vcombine.low %v3372_v52, %v3388_v6  ;;  %v6601_v22 = vpop.permute.xlu0 %3545  ;;  %v3319_v7 = vcombine.low %v3268_v21, %v6520_v58  ;;  %v7503_v59 = vcombine.high %v7501_v42, %v7502_v20  ;;  %v6612_v18 = vpop.permute.xlu1 %3547  ;;  %v7505_v42 = vld [vmem:[#allocation23_spill] sm:$0xff] }
 0x1bf   : > { %v743_v10 = vsel %vm742_vm7, %v741_v31, %v4133_v48  ;;  %v754_v51 = vsel %vm742_vm7, %v753_v0, %v4134_v43  ;;  %v4144_v58 = vunpack.i.h.bf16 %v7504_v53  ;;  %v4143_v21 = vunpack.i.l.bf16 %v7504_v53  ;;  %v7506_v43 = vld [vmem:[#allocation55_spill] sm:$0xff] }
 0x1c0   : > { %v6608_v57 = vrot.slane %v7503_v59, %v4656_v55  ;;  %4356 = vrot.lane.b32.xlu1 %v4355_v54, %s4449_s22  ;;  %4331 = vrot.lane.b32.xlu0 %v4330_v44, %s4454_s27  ;;  %v3405_v63 = vcombine.low %v3340_v28, %v3356_v11  ;;  %v3438_v14 = vcombine.high %v3372_v52, %v3388_v6  ;;  %v4149_v31 = vunpack.i.h.bf16 %v7505_v42 }
 0x1c1   : > { %v745_v26 = vsel %vm744_vm8, %v743_v10, %v4138_v5  ;;  %v7507_v48 = vcombine.low %v6175_v35, %v7506_v43  ;;  %v755_v54 = vsel %vm744_vm8, %v754_v51, %v4139_v1  ;;  %v3406_v20 = vcombine.high %v3340_v28, %v3356_v11  ;;  %v7509_v11 = vld [vmem:[#allocation43_spill] sm:$0xff] }
 0x1c2   : > { %v3445_v44 = vrot.slane %v3437_v47, %v4656_v55  ;;  %v6625_v59 = vpop.permute.xlu0 %3549  ;;  %v7508_v53 = vcombine.low %v7498_v25, %v7499_v9  ;;  %v2535_v6 = vcombine.high %v6529_v49, %v6505_v50  ;;  %v4148_v52 = vunpack.i.l.bf16 %v7505_v42  ;;  %v6633_v5 = vpop.permute.xlu1 %3551 }
 0x1c3   : > { %v4365_v0 = vpack.i.bf16 %v3321_v39, %v7507_v48  ;;  %v3070_v1 = vcombine.high %v6387_v8, %v6442_v30  ;;  %v7510_v39 = vld [vmem:[#allocation61_spill] sm:$0xff]  ;;  %v3413_v25 = vrot.slane %v3405_v63, %v4656_v55  ;;  %v3452_v50 = vrot.slane %v3438_v14, %v4656_v55 }
 0x1c4   : > { %v4340_v29 = vpack.i.bf16 %v3319_v7, %v7508_v53  ;;  %v7511_v28 = vcombine.high %v7509_v11, %v7510_v39  ;;  %v2145_v49 = vcombine.high %v6546_v34, %v6526_v17  ;;  %v756_v9 = vsel %vm746_vm9, %v755_v54, %v4144_v58  ;;  %v7512_v7 = vld [vmem:[#allocation18_spill] sm:$0xff] }
 0x1c5   : > { %4366 = vrot.lane.b32.xlu1 %v4365_v0, %s4452_s25  ;;  %v4154_v10 = vunpack.i.h.bf16 %v7512_v7  ;;  %v4153_v51 = vunpack.i.l.bf16 %v7512_v7  ;;  %v757_v42 = vsel %vm748_vm10, %v756_v9, %v4149_v31  ;;  %v747_v48 = vsel %vm746_vm9, %v745_v26, %v4143_v21 }
 0x1c6   : > { %v6642_v47 = vrot.slane %v7511_v28, %v4656_v55  ;;  %4341 = vrot.lane.b32.xlu0 %v4340_v29, %s4450_s23  ;;  %v3420_v0 = vrot.slane %v3406_v20, %v4656_v55  ;;  %v3595_v63 = vcombine.low %v6501_v40, %v6581_v3  ;;  %v6657_v14 = vpop.permute.xlu0 %3553  ;;  %v4350_v29 = vpack.i.bf16 %v2535_v6, %v2145_v49  ;;  %v6661_v34 = vpop.permute.xlu1 %3555 }
 0x1c7   : > { %v3457_v53 = vcombine.low %v3413_v25, %v3445_v44  ;;  %v3731_v17 = vcombine.low %v6533_v13, %v6601_v22  ;;  %v3458_v58 = vcombine.high %v3413_v25, %v3445_v44  ;;  %v3069_v31 = vcombine.low %v6387_v8, %v6442_v30 }
 0x1c8   : > { %v749_v21 = vsel %vm748_vm10, %v747_v48, %v4148_v52  ;;  %v3579_v26 = vcombine.low %v6471_v46, %v6540_v56  ;;  %v3460_v54 = vcombine.high %v3420_v0, %v3452_v50  ;;  %v2934_v20 = vcombine.high %v6608_v57, %v6642_v47 }
 0x1c9   : > { %v2933_v6 = vcombine.low %v6608_v57, %v6642_v47  ;;  %v3270_v44 = vcombine.high %v6508_v27, %v6494_v24  ;;  %v3715_v8 = vcombine.low %v6496_v19, %v6574_v61  ;;  %v3459_v30 = vcombine.low %v3420_v0, %v3452_v50 }
 0x1ca   : > { %4351 = vrot.lane.b32.xlu0 %v4350_v29, %s4453_s26  ;;  %v6678_v52 = vsel %vm750_vm11, %v757_v42, %v4154_v10  ;;  %v6681_v11 = vrot.slane %v3595_v63, %v4584_v16  ;;  %v3611_v39 = vcombine.low %v6612_v18, %v6661_v34  ;;  %v6685_v28 = vpop.permute.xlu0 %3557  ;;  %v7513_v25 = vcombine.low %v6193_v23, %v6365_v33  ;;  %v6698_v7 = vpop.permute.xlu1 %3559 }
 0x1cb   : > { %v6691_v24 = vsel %vm750_vm11, %v749_v21, %v4153_v51  ;;  %v3302_v27 = vcombine.high %v6499_v41, %v6487_v62  ;;  %v3580_v50 = vcombine.high %v6471_v46, %v6540_v56  ;;  %v3739_v9 = vrot.slane %v3731_v17, %v4584_v16 }
 0x1cc   : > { %v4360_v49 = vpack.i.bf16 %v3457_v53, %v7513_v25  ;;  %v7514_v10 = vcombine.high %v6193_v23, %v6365_v33  ;;  %v3587_v48 = vrot.slane %v3579_v26, %v4584_v16  ;;  %v3627_v51 = vcombine.low %v6633_v5, %v6698_v7 }
 0x1cd   : > { %v3322_v62 = vcombine.high %v6579_v12, %v6555_v38  ;;  %v6709_v41 = vpack.i.bf16 %v3460_v54, %v3070_v1  ;;  %v6712_v46 = vrot.slane %v3270_v44, %v4656_v55  ;;  %v3723_v56 = vrot.slane %v3715_v8, %v4584_v16 }
 0x1ce   : > { %v4370_v42 = vpack.i.bf16 %v3458_v58, %v7514_v10  ;;  %4361 = vrot.lane.b32.xlu0 %v4360_v49, %s4452_s25  ;;  %v3747_v23 = vcombine.low %v6625_v59, %v6685_v28  ;;  %v6717_v33 = vpack.i.bf16 %v3459_v30, %v3069_v31  ;;  %v3643_v0 = vcombine.low %v3587_v48, %v6681_v11  ;;  %v3562_v12 = vpop.permute.xlu0 %3561  ;;  %v4157_v58 = vpop.permute.xlu1 %4156 }
 0x1cf   : > { %v3732_v63 = vcombine.high %v6533_v13, %v6601_v22  ;;  %v3619_v29 = vrot.slane %v3611_v39, %v4584_v16  ;;  %v3635_v38 = vrot.slane %v3627_v51, %v4584_v16  ;;  %v6725_v1 = vrot.slane %v3302_v27, %v4656_v55 }
 0x1d0   : > { %v6728_v53 = vrot.slane %v3580_v50, %v4584_v16  ;;  %v3779_v17 = vcombine.low %v3723_v56, %v3739_v9  ;;  %v3763_v31 = vcombine.low %v6657_v14, %v3562_v12  ;;  %v3596_v21 = vcombine.high %v6501_v40, %v6581_v3 }
 0x1d1   : > { %v3716_v13 = vcombine.high %v6496_v19, %v6574_v61  ;;  %v3675_v22 = vcombine.low %v3619_v29, %v3635_v38  ;;  %v7515_v26 = vcombine.high %v6175_v35, %v7506_v43  ;;  %v3644_v44 = vcombine.high %v3587_v48, %v6681_v11 }
 0x1d2   : > { %4371 = vrot.lane.b32.xlu0 %v4370_v42, %s4451_s24  ;;  %v3676_v8 = vcombine.high %v3619_v29, %v3635_v38  ;;  %v3755_v30 = vrot.slane %v3747_v23, %v4584_v16  ;;  %v3771_v39 = vrot.slane %v3763_v31, %v4584_v16  ;;  %v6743_v25 = vrot.slane %v3643_v0, %v4656_v55  ;;  %v4162_v35 = vpop.permute.xlu0 %4161  ;;  %v4167_v27 = vpop.permute.xlu1 %4166  ;;  %v7516_v31 = vld [vmem:[#allocation46_spill] sm:$0xff] }
 0x1d3   : > { %v4380_v54 = vpack.i.bf16 %v3322_v62, %v7515_v26  ;;  %v6746_v40 = vrot.slane %v3732_v63, %v4584_v16  ;;  %v6749_v19 = vrot.slane %v3675_v22, %v4656_v55  ;;  %v3764_v61 = vcombine.high %v6657_v14, %v3562_v12 }
 0x1d4   : > { %v3780_v3 = vcombine.high %v3723_v56, %v3739_v9  ;;  %v6753_v43 = vrot.slane %v3779_v17, %v4656_v55  ;;  %v3811_v11 = vcombine.low %v3755_v30, %v3771_v39  ;;  %v3812_v49 = vcombine.high %v3755_v30, %v3771_v39 }
 0x1d5   : > { %v3612_v50 = vcombine.high %v6612_v18, %v6661_v34  ;;  %v3628_v10 = vcombine.high %v6633_v5, %v6698_v7  ;;  %v3707_v42 = vcombine.low %v6743_v25, %v6749_v19  ;;  %v3748_v14 = vcombine.high %v6625_v59, %v6685_v28 }
 0x1d6   : > { %4381 = vrot.lane.b32.xlu0 %v4380_v54, %s4451_s24  ;;  %v6765_v9 = vrot.slane %v3676_v8, %v4656_v55  ;;  %v4159_v48 = vunpack.i.h.bf16 %v4157_v58  ;;  %v6768_v51 = vrot.slane %v3811_v11, %v4656_v55  ;;  %v6771_v18 = vrot.slane %v3812_v49, %v4656_v55  ;;  %v4172_v28 = vpop.permute.xlu0 %4171  ;;  %v4177_v63 = vpop.permute.xlu1 %4176  ;;  %v7520_v8 = vld [vmem:[#allocation12_spill] sm:$0xff] }
 0x1d7   : > { %v6774_v5 = vrot.slane %v3596_v21, %v4584_v16  ;;  %v6777_v34 = vrot.slane %v3716_v13, %v4584_v16  ;;  %v4158_v7 = vunpack.i.l.bf16 %v4157_v58  ;;  %v3778_v59 = vrot.slane %v3764_v61, %v4584_v16  ;;  %v7517_v21 = vld [vmem:[#allocation44_spill] sm:$0xff] }
 0x1d8   : > { %v6781_v62 = vrot.slane %v3644_v44, %v4656_v55  ;;  %v6784_v56 = vrot.slane %v3780_v3, %v4656_v55  ;;  %v3843_v23 = vcombine.low %v6753_v43, %v6768_v51  ;;  %v4164_v0 = vunpack.i.h.bf16 %v4162_v35  ;;  %v7519_v44 = vld [vmem:[#allocation38_spill] sm:$0xff] }
 0x1d9   : > { %v3795_v29 = vcombine.low %v6777_v34, %v6746_v40  ;;  %v3626_v38 = vrot.slane %v3612_v50, %v4584_v16  ;;  %v3762_v12 = vrot.slane %v3748_v14, %v4584_v16  ;;  %v4163_v17 = vunpack.i.l.bf16 %v4162_v35 }
 0x1da   : > { %v3642_v58 = vrot.slane %v3628_v10, %v4584_v16  ;;  %v7518_v13 = vcombine.low %v7516_v31, %v7517_v21  ;;  %v3709_v26 = vcombine.low %v6781_v62, %v6765_v9  ;;  %v3845_v54 = vcombine.low %v6784_v56, %v6771_v18  ;;  %v6805_v35 = vpop.permute.xlu0 %4181  ;;  %v4187_v10 = vpop.permute.xlu1 %4186 }
 0x1db   : > { %v7521_v30 = vcombine.low %v7519_v44, %v7520_v8  ;;  %v3827_v61 = vcombine.low %v3762_v12, %v3778_v59  ;;  %v3708_v16 = vcombine.high %v6743_v25, %v6749_v19  ;;  %v3844_v3 = vcombine.high %v6753_v43, %v6768_v51 }
 0x1dc   : > { %v1151_v22 = vsel %vm738_vm5, %v7518_v13, %v4159_v48  ;;  %v4169_v11 = vunpack.i.h.bf16 %v4167_v27  ;;  %v4168_v49 = vunpack.i.l.bf16 %v4167_v27  ;;  %v4390_v14 = vpack.i.bf16 %v3845_v54, %v3709_v26 }
 0x1dd   : > { %v1158_v39 = vsel %vm738_vm5, %v7521_v30, %v4158_v7  ;;  %v1152_v50 = vsel %vm740_vm6, %v1151_v22, %v4164_v0  ;;  %v4174_v31 = vunpack.i.h.bf16 %v4172_v28  ;;  %v4173_v21 = vunpack.i.l.bf16 %v4172_v28 }
 0x1de   : > { %v1159_v48 = vsel %vm740_vm6, %v1158_v39, %v4163_v17  ;;  %v4375_v7 = vpack.i.bf16 %v3844_v3, %v3708_v16  ;;  %v3659_v13 = vcombine.low %v6728_v53, %v6774_v5  ;;  %v3691_v44 = vcombine.low %v3626_v38, %v3642_v58  ;;  %4391 = vrot.lane.b32.xlu0 %v4390_v14, %s4450_s23  ;;  %v6825_v26 = vpop.permute.xlu0 %4191 }
 0x1df   : > { %v3324_v8 = vcombine.high %v6712_v46, %v6725_v1  ;;  %v3323_v27 = vcombine.low %v6712_v46, %v6725_v1  ;;  %v3796_v0 = vcombine.high %v6777_v34, %v6746_v40  ;;  %v3803_v17 = vrot.slane %v3795_v29, %v4656_v55  ;;  %v6829_v3 = vpop.permute.xlu1 %4196 }
 0x1e0   : > { %v3828_v22 = vcombine.high %v3762_v12, %v3778_v59  ;;  %v3835_v28 = vrot.slane %v3827_v61, %v4656_v55  ;;  %4376 = vrot.lane.b32.xlu1 %v4375_v7, %s4448_s21  ;;  %v4179_v54 = vunpack.i.h.bf16 %v4177_v63  ;;  %v4178_v30 = vunpack.i.l.bf16 %v4177_v63 }
 0x1e1   : > { %v1153_v39 = vsel %vm742_vm7, %v1152_v50, %v4169_v11  ;;  %v1160_v16 = vsel %vm742_vm7, %v1159_v48, %v4168_v49  ;;  %v4189_v40 = vunpack.i.h.bf16 %v4187_v10  ;;  %v4188_v34 = vunpack.i.l.bf16 %v4187_v10 }
 0x1e2   : > { %v1154_v46 = vsel %vm744_vm8, %v1153_v39, %v4174_v31  ;;  %v1161_v1 = vsel %vm744_vm8, %v1160_v16, %v4173_v21  ;;  %v3692_v59 = vcombine.high %v3626_v38, %v3642_v58  ;;  %v3699_v29 = vrot.slane %v3691_v44, %v4656_v55  ;;  %4401 = vrot.lane.b32.xlu0 %v6709_v41, %s4453_s26  ;;  %v4202_v58 = vpop.permute.xlu0 %4201 }
 0x1e3   : > { %v4410_v63 = vpack.i.bf16 %v3324_v8, %v2934_v20  ;;  %v4395_v12 = vpack.i.bf16 %v3323_v27, %v2933_v6  ;;  %v3660_v61 = vcombine.high %v6728_v53, %v6774_v5  ;;  %v3667_v11 = vrot.slane %v3659_v13, %v4656_v55 }
 0x1e4   : > { %v3842_v38 = vrot.slane %v3828_v22, %v4656_v55  ;;  %4386 = vrot.lane.b32.xlu1 %v6717_v33, %s4454_s27  ;;  %v3848_v41 = vcombine.high %v3803_v17, %v3835_v28  ;;  %v6848_v49 = vpop.permute.xlu1 %4206  ;;  %v4204_v50 = vunpack.i.h.bf16 %v4202_v58  ;;  %v4203_v20 = vunpack.i.l.bf16 %v4202_v58  ;;  %v7522_v58 = vld [vmem:[#allocation24_spill] sm:$0xff] }
 0x1e5   : > { %v1162_v10 = vsel %vm746_vm9, %v1161_v1, %v4178_v30  ;;  %v1155_v57 = vsel %vm746_vm9, %v1154_v46, %v4179_v54  ;;  %v3810_v47 = vrot.slane %v3796_v0, %v4656_v55  ;;  %v3846_v6 = vcombine.high %v6784_v56, %v6771_v18 }
 0x1e6   : > { %v1163_v53 = vsel %vm748_vm10, %v1162_v10, %v4188_v34  ;;  %v1156_v5 = vsel %vm748_vm10, %v1155_v57, %v4189_v40  ;;  %v3706_v33 = vrot.slane %v3692_v59, %v4656_v55  ;;  %4411 = vrot.lane.b32.xlu0 %v4410_v63, %s4453_s26  ;;  %v3712_v14 = vcombine.high %v3667_v11, %v3699_v29  ;;  %v7525_v10 = vld [vmem:[#allocation59_spill] sm:$0xff]  ;;  %v7526_v57 = vld [vmem:[#allocation58_spill] sm:$0xff] }
 0x1e7   : > { %v1164_v48 = vsel %vm750_vm11, %v1163_v53, %v4203_v20  ;;  %v1157_v31 = vsel %vm750_vm11, %v1156_v5, %v4204_v50  ;;  %v3710_v21 = vcombine.high %v6781_v62, %v6765_v9  ;;  %v3674_v7 = vrot.slane %v3660_v61, %v4656_v55  ;;  %v4212_v22 = vpop.permute.xlu0 %4211 }
 0x1e8   : > { %4396 = vrot.lane.b32.xlu1 %v4395_v12, %s4454_s27  ;;  %v3923_v18 = vpack.c.bf16 %v1164_v48, %v6678_v52  ;;  %v3922_v56 = vpack.c.bf16 %v1157_v31, %v6691_v24  ;;  %v6867_v13 = vpop.permute.xlu1 %4216  ;;  %v4420_v44 = vpack.i.bf16 %v3848_v41, %v3712_v14  ;;  %v3850_v8 = vcombine.high %v3810_v47, %v3842_v38  ;;  %v7523_v41 = vld [vmem:[#allocation14_spill] sm:$0xff] }
 0x1e9   : > { %v4405_v27 = vpack.i.bf16 %v3846_v6, %v3710_v21  ;;  %v3847_v0 = vcombine.low %v3803_v17, %v3835_v28  ;;  %v3714_v54 = vcombine.high %v3674_v7, %v3706_v33  ;;  %v3711_v9 = vcombine.low %v3667_v11, %v3699_v29 }
 0x1ea   : > { %3943 = vmatprep.subr.bf16.mxu0 %v3923_v18  ;;  %4421 = vrot.lane.b32.xlu0 %v4420_v44, %s4451_s24  ;;  %v3849_v55 = vcombine.low %v3810_v47, %v3842_v38  ;;  %v4455_v30 = vmov 0   ;;  %v3713_v17 = vcombine.low %v3674_v7, %v3706_v33  ;;  %v4184_v1 = vunpack.i.h.bf16 %v6805_v35 }
 0x1eb   : > { %3944 = vmatpush1.bf16.msra.mxu0 %v3922_v56  ;;  %v4430_v24 = vpack.i.bf16 %v3850_v8, %v3714_v54  ;;  %v4415_v62 = vpack.i.bf16 %v3847_v0, %v3711_v9  ;;  %3975 = vmatprep.mubr.bf16.mxu0 %v4455_v30  ;;  %v4222_v28 = vpop.permute.xlu0 %4221  ;;  %v4183_v40 = vunpack.i.l.bf16 %v6805_v35  ;;  %v4199_v34 = vunpack.i.h.bf16 %v6829_v3 }
 0x1ec   : > { %4406 = vrot.lane.b32.xlu1 %v4405_v27, %s4449_s22  ;;  %v6871_v52 = vpop.permute.xlu1 %4226  ;;  %v4425_v16 = vpack.i.bf16 %v3849_v55, %v3713_v17  ;;  %v4198_v59 = vunpack.i.l.bf16 %v6829_v3  ;;  %v4214_v63 = vunpack.i.h.bf16 %v4212_v22  ;;  %v4213_v12 = vunpack.i.l.bf16 %v4212_v22 }
 0x1ed   : > { %v4224_v61 = vunpack.i.h.bf16 %v4222_v28  ;;  %v4223_v11 = vunpack.i.l.bf16 %v4222_v28  ;;  %v7524_v50 = vcombine.low %v7522_v58, %v7523_v41  ;;  %v7527_v47 = vcombine.low %v7525_v10, %v7526_v57  ;;  %v7531_v41 = vld [vmem:[#allocation69_spill] sm:$0xff] }
 0x1ee   : > { %4431 = vrot.lane.b32.xlu0 %v4430_v24, %s4453_s26  ;;  %v4194_v28 = vunpack.i.h.bf16 %v6825_v26 }
 0x1ef   : > { %v4232_v29 = vpop.permute.xlu0 %4231  ;;  %v1955_v20 = vsel %vm738_vm5, %v7524_v50, %v4184_v1  ;;  %v1548_v35 = vsel %vm738_vm5, %v7527_v47, %v4183_v40  ;;  %v4209_v1 = vunpack.i.h.bf16 %v6848_v49  ;;  %v4208_v40 = vunpack.i.l.bf16 %v6848_v49  ;;  %v7532_v50 = vld [vmem:[#allocation67_spill] sm:$0xff] }
 0x1f0   : > { %4416 = vrot.lane.b32.xlu1 %v4415_v62, %s4452_s25  ;;  %v6875_v39 = vpop.permute.xlu1 %4236  ;;  %v4234_v6 = vunpack.i.h.bf16 %v4232_v29  ;;  %v4233_v53 = vunpack.i.l.bf16 %v4232_v29  ;;  %v1549_v3 = vsel %vm740_vm6, %v1548_v35, %v4198_v59  ;;  %v1956_v5 = vsel %vm740_vm6, %v1955_v20, %v4199_v34 }
 0x1f1   : > { %v1550_v48 = vsel %vm742_vm7, %v1549_v3, %v4213_v12  ;;  %v1957_v31 = vsel %vm742_vm7, %v1956_v5, %v4214_v63  ;;  %v4219_v34 = vunpack.i.h.bf16 %v6867_v13  ;;  %v4218_v59 = vunpack.i.l.bf16 %v6867_v13 }
 0x1f2   : > { %v1551_v21 = vsel %vm744_vm8, %v1550_v48, %v4223_v11  ;;  %v1958_v18 = vsel %vm744_vm8, %v1957_v31, %v4224_v61  ;;  %v4229_v29 = vunpack.i.h.bf16 %v6871_v52  ;;  %v4228_v63 = vunpack.i.l.bf16 %v6871_v52  ;;  %v7528_v61 = vld [vmem:[#allocation6_spill] sm:$0xff] }
 0x1f3   : > { %v1552_v7 = vsel %vm746_vm9, %v1551_v21, %v4233_v53  ;;  %v1959_v44 = vsel %vm746_vm9, %v1958_v18, %v4234_v6  ;;  %v4242_v62 = vpop.permute.xlu0 %4241  ;;  %v7529_v11 = vld [vmem:[#allocation34_spill] sm:$0xff]  ;;  %v7533_v20 = vcombine.low %v7531_v41, %v7532_v50 }
 0x1f4   : > { %4426 = vrot.lane.b32.xlu1 %v4425_v16, %s4454_s27  ;;  %v4247_v46 = vpop.permute.xlu1 %4246  ;;  %v4193_v16 = vunpack.i.l.bf16 %v6825_v26  ;;  %v7530_v58 = vcombine.low %v7528_v61, %v7529_v11  ;;  %v4244_v10 = vunpack.i.h.bf16 %v4242_v62  ;;  %v4243_v57 = vunpack.i.l.bf16 %v4242_v62  ;;  %v7537_v11 = vld [vmem:[#allocation45_spill] sm:$0xff] }
 0x1f5   : > { %v4249_v33 = vunpack.i.h.bf16 %v4247_v46  ;;  %v4248_v14 = vunpack.i.l.bf16 %v4247_v46 }
 0x1f6   : > { %v1948_v26 = vsel %vm738_vm5, %v7530_v58, %v4194_v28  ;;  %v1541_v49 = vsel %vm738_vm5, %v7533_v20, %v4193_v16  ;;  %v7538_v58 = vld [vmem:[#allocation49_spill] sm:$0xff] }
 0x1f7   : > { %v1553_v0 = vsel %vm748_vm10, %v1552_v7, %v4248_v14  ;;  %v1960_v22 = vsel %vm748_vm10, %v1959_v44, %v4249_v33  ;;  %v1542_v13 = vsel %vm740_vm6, %v1541_v49, %v4208_v40  ;;  %v1949_v47 = vsel %vm740_vm6, %v1948_v26, %v4209_v1 }
 0x1f8   : > { %v6882_v38 = vpop.permute.xlu1 %4256  ;;  %v1543_v6 = vsel %vm742_vm7, %v1542_v13, %v4218_v59  ;;  %v1950_v53 = vsel %vm742_vm7, %v1949_v47, %v4219_v34  ;;  %v7534_v59 = vld [vmem:[#allocation53_spill] sm:$0xff]  ;;  %v7539_v26 = vcombine.low %v7537_v11, %v7538_v58 }
 0x1f9   : > { %v1544_v5 = vsel %vm744_vm8, %v1543_v6, %v4228_v63  ;;  %v1951_v33 = vsel %vm744_vm8, %v1950_v53, %v4229_v29  ;;  %v4258_v62 = vunpack.i.l.bf16 %v6882_v38  ;;  %v7535_v29 = vld [vmem:[#allocation39_spill] sm:$0xff] }
 0x1fa   : > { %v1545_v48 = vsel %vm746_vm9, %v1544_v5, %v4243_v57  ;;  %v1952_v31 = vsel %vm746_vm9, %v1951_v33, %v4244_v10  ;;  %v7536_v63 = vcombine.low %v7534_v59, %v7535_v29 }
 0x1fc   : > { %v4267_v56 = vpop.permute.xlu1 %4266 }
 0x1fd   : > { %v4269_v8 = vunpack.i.h.bf16 %v4267_v56  ;;  %v4268_v27 = vunpack.i.l.bf16 %v4267_v56 }
 0x1ff   : > { %v1554_v54 = vsel %vm750_vm11, %v1553_v0, %v4268_v27  ;;  %v1961_v9 = vsel %vm750_vm11, %v1960_v22, %v4269_v8 }
 0x200   : > { %v3925_v24 = vpack.c.bf16 %v1961_v9, %v1554_v54  ;;  %v4277_v30 = vpop.permute.xlu1 %4276  ;;  %v4239_v54 = vunpack.i.h.bf16 %v6875_v39  ;;  %v4238_v9 = vunpack.i.l.bf16 %v6875_v39 }
 0x201   : > { %v4279_v28 = vunpack.i.h.bf16 %v4277_v30  ;;  %v4278_v16 = vunpack.i.l.bf16 %v4277_v30 }
 0x202   : > { %3945 = vmatprep.subr.bf16.mxu0 %v3925_v24  ;;  %v4259_v24 = vunpack.i.h.bf16 %v6882_v38  ;;  %v2345_v61 = vsel %vm738_vm5, %v7536_v63, %v4238_v9  ;;  %v2735_v39 = vsel %vm738_vm5, %v7539_v26, %v4239_v54  ;;  %v7540_v9 = vld [vmem:[#allocation26_spill] sm:$0xff] }
 0x203   : > { %v2346_v38 = vsel %vm740_vm6, %v2345_v61, %v4258_v62 }
 0x204   : > { %v2736_v20 = vsel %vm740_vm6, %v2735_v39, %v4259_v24  ;;  %v2347_v49 = vsel %vm742_vm7, %v2346_v38, %v4278_v16  ;;  %v7541_v24 = vld [vmem:[#allocation16_spill] sm:$0xff]  ;;  %v7544_v16 = vld [vmem:[#allocation41_spill] sm:$0xff] }
 0x205   : > { %v2737_v10 = vsel %vm742_vm7, %v2736_v20, %v4279_v28  ;;  %v7542_v62 = vcombine.low %v7540_v9, %v7541_v24  ;;  %v7543_v28 = vld [vmem:[#allocation56_spill] sm:$0xff]  ;;  %v7546_v9 = vcombine.low %v7446_v32, %v7445_v37  ;;  %v7549_v32 = vcombine.low %v7486_v2, %v7487_v60 }
 0x20d   : > { %v6904_v55 = vpop.permute.xlu0 %4251  ;;  %v6908_v46 = vpop.permute.xlu1 %4286 }
 0x20e   : > { %v4289_v59 = vunpack.i.h.bf16 %v6908_v46  ;;  %v4288_v29 = vunpack.i.l.bf16 %v6908_v46 }
 0x211   : > { %v6930_v3 = vpop.permute.xlu1 %4296 }
 0x212   : > { %v4262_v17 = vpop.permute.xlu0 %4261  ;;  %v4299_v26 = vunpack.i.h.bf16 %v6930_v3  ;;  %v4298_v39 = vunpack.i.l.bf16 %v6930_v3 }
 0x213   : > { %v4264_v35 = vunpack.i.h.bf16 %v4262_v17  ;;  %v4263_v52 = vunpack.i.l.bf16 %v4262_v17 }
 0x215   : > { %v1546_v56 = vsel %vm748_vm10, %v1545_v48, %v4263_v52  ;;  %v1953_v7 = vsel %vm748_vm10, %v1952_v31, %v4264_v35 }
 0x216   : > { %v6916_v12 = vpop.permute.xlu0 %4271 }
 0x21a   : > { %v4282_v14 = vpop.permute.xlu0 %4281 }
 0x21b   : > { %v4284_v21 = vunpack.i.h.bf16 %v4282_v14  ;;  %v4283_v18 = vunpack.i.l.bf16 %v4282_v14 }
 0x21d   : > { %v6938_v44 = vpop.permute.xlu1 %4306  ;;  %v1547_v8 = vsel %vm750_vm11, %v1546_v56, %v4283_v18  ;;  %v1954_v27 = vsel %vm750_vm11, %v1953_v7, %v4284_v21 }
 0x21e   : > { %v4292_v0 = vpop.permute.xlu0 %4291  ;;  %v3924_v22 = vpack.c.bf16 %v1954_v27, %v1547_v8  ;;  %v4254_v8 = vunpack.i.h.bf16 %v6904_v55  ;;  %v4253_v27 = vunpack.i.l.bf16 %v6904_v55 }
 0x21f   : > { %v4294_v40 = vunpack.i.h.bf16 %v4292_v0  ;;  %v4293_v34 = vunpack.i.l.bf16 %v4292_v0  ;;  %v4274_v0 = vunpack.i.h.bf16 %v6916_v12 }
 0x220   : > { %3946 = vmatpush1.bf16.msra.mxu0 %v3924_v22  ;;  %v4273_v22 = vunpack.i.l.bf16 %v6916_v12 }
 0x221   : > { %v4317_v17 = vpop.permute.xlu1 %4316  ;;  %v2738_v57 = vsel %vm744_vm8, %v2737_v10, %v4294_v40  ;;  %v2348_v13 = vsel %vm744_vm8, %v2347_v49, %v4293_v34 }
 0x222   : > { %v4302_v1 = vpop.permute.xlu0 %4301  ;;  %v4319_v47 = vunpack.i.h.bf16 %v4317_v17  ;;  %v4318_v35 = vunpack.i.l.bf16 %v4317_v17  ;;  %v2728_v17 = vsel %vm738_vm5, %v7542_v62, %v4254_v8  ;;  %v7547_v62 = vcombine.low %v6397_v15, %v6400_v45 }
 0x223   : > { %v4304_v41 = vunpack.i.h.bf16 %v4302_v1  ;;  %v4303_v50 = vunpack.i.l.bf16 %v4302_v1  ;;  %v7545_v1 = vcombine.low %v7543_v28, %v7544_v16  ;;  %v2729_v55 = vsel %vm740_vm6, %v2728_v17, %v4274_v0 }
 0x224   : > { %v2730_v61 = vsel %vm742_vm7, %v2729_v55, %v4289_v59 }
 0x225   : > { %v6956_v30 = vpop.permute.xlu1 %4326  ;;  %v2349_v52 = vsel %vm746_vm9, %v2348_v13, %v4303_v50  ;;  %v2739_v6 = vsel %vm746_vm9, %v2738_v57, %v4304_v41  ;;  %v2338_v40 = vsel %vm738_vm5, %v7545_v1, %v4253_v27  ;;  %v2731_v20 = vsel %vm744_vm8, %v2730_v61, %v4299_v26 }
 0x226   : > { %v4312_v53 = vpop.permute.xlu0 %4311  ;;  %v2350_v48 = vsel %vm748_vm10, %v2349_v52, %v4318_v35  ;;  %v2740_v31 = vsel %vm748_vm10, %v2739_v6, %v4319_v47  ;;  %v2339_v34 = vsel %vm740_vm6, %v2338_v40, %v4273_v22  ;;  %v7548_v1 = vcombine.low %v6514_v4, %v6517_v36 }
 0x227   : > { %v2340_v63 = vsel %vm742_vm7, %v2339_v34, %v4288_v29  ;;  %v4314_v11 = vunpack.i.h.bf16 %v4312_v53  ;;  %v4313_v58 = vunpack.i.l.bf16 %v4312_v53 }
 0x228   : > { %v2341_v38 = vsel %vm744_vm8, %v2340_v63, %v4298_v39 }
 0x229   : > { %v4337_v5 = vpop.permute.xlu1 %4336  ;;  %v2342_v46 = vsel %vm746_vm9, %v2341_v38, %v4313_v58  ;;  %v2732_v10 = vsel %vm746_vm9, %v2731_v20, %v4314_v11 }
 0x22a   : > { %v4339_v33 = vunpack.i.h.bf16 %v4337_v5  ;;  %v4338_v14 = vunpack.i.l.bf16 %v4337_v5 }
 0x22c   : > { %v2351_v21 = vsel %vm750_vm11, %v2350_v48, %v4338_v14  ;;  %v2741_v18 = vsel %vm750_vm11, %v2740_v31, %v4339_v33  ;;  %v4309_v48 = vunpack.i.h.bf16 %v6938_v44  ;;  %v4308_v31 = vunpack.i.l.bf16 %v6938_v44 }
 0x22d   : > { %v3927_v7 = vpack.c.bf16 %v2741_v18, %v2351_v21  ;;  %v4347_v5 = vpop.permute.xlu1 %4346  ;;  %v4329_v18 = vunpack.i.h.bf16 %v6956_v30 }
 0x22e   : > { %v4322_v56 = vpop.permute.xlu0 %4321  ;;  %v3134_v24 = vsel %vm738_vm5, %v7546_v9, %v4308_v31  ;;  %v3524_v44 = vsel %vm738_vm5, %v7547_v62, %v4309_v48  ;;  %v4349_v17 = vunpack.i.h.bf16 %v4347_v5  ;;  %v4348_v28 = vunpack.i.l.bf16 %v4347_v5 }
 0x22f   : > { %3947 = vmatprep.subr.bf16.mxu0 %v3927_v7  ;;  %v4328_v7 = vunpack.i.l.bf16 %v6956_v30  ;;  %v4324_v8 = vunpack.i.h.bf16 %v4322_v56  ;;  %v4323_v27 = vunpack.i.l.bf16 %v4322_v56  ;;  %v3525_v56 = vsel %vm740_vm6, %v3524_v44, %v4329_v18 }
 0x230   : > { %v3526_v36 = vsel %vm742_vm7, %v3525_v56, %v4349_v17 }
 0x231   : > { %v3135_v30 = vsel %vm740_vm6, %v3134_v24, %v4328_v7  ;;  %v3517_v37 = vsel %vm738_vm5, %v7548_v1, %v4324_v8  ;;  %v3127_v15 = vsel %vm738_vm5, %v7549_v32, %v4323_v27 }
 0x232   : > { %v4332_v54 = vpop.permute.xlu0 %4331  ;;  %v4357_v14 = vpop.permute.xlu1 %4356  ;;  %v3136_v4 = vsel %vm742_vm7, %v3135_v30, %v4348_v28 }
 0x233   : > { %v4334_v41 = vunpack.i.h.bf16 %v4332_v54  ;;  %v4333_v50 = vunpack.i.l.bf16 %v4332_v54  ;;  %v4359_v29 = vunpack.i.h.bf16 %v4357_v14 }
 0x235   : > { %v2343_v47 = vsel %vm748_vm10, %v2342_v46, %v4333_v50  ;;  %v2733_v35 = vsel %vm748_vm10, %v2732_v10, %v4334_v41 }
 0x237   : > { %v4367_v0 = vpop.permute.xlu1 %4366 }
 0x238   : > { %v4342_v12 = vpop.permute.xlu0 %4341  ;;  %v4368_v11 = vunpack.i.l.bf16 %v4367_v0 }
 0x239   : > { %v4344_v22 = vunpack.i.h.bf16 %v4342_v12  ;;  %v4343_v54 = vunpack.i.l.bf16 %v4342_v12  ;;  %v4358_v12 = vunpack.i.l.bf16 %v4357_v14 }
 0x23b   : > { %v3128_v40 = vsel %vm740_vm6, %v3127_v15, %v4343_v54  ;;  %v3518_v34 = vsel %vm740_vm6, %v3517_v37, %v4344_v22 }
 0x23c   : > { %v4352_v49 = vpop.permute.xlu0 %4351  ;;  %v3129_v2 = vsel %vm742_vm7, %v3128_v40, %v4358_v12  ;;  %v3519_v60 = vsel %vm742_vm7, %v3518_v34, %v4359_v29 }
 0x23d   : > { %v4354_v57 = vunpack.i.h.bf16 %v4352_v49  ;;  %v4353_v13 = vunpack.i.l.bf16 %v4352_v49 }
 0x23f   : > { %v2344_v52 = vsel %vm750_vm11, %v2343_v47, %v4353_v13  ;;  %v2734_v3 = vsel %vm750_vm11, %v2733_v35, %v4354_v57  ;;  %v4369_v47 = vunpack.i.h.bf16 %v4367_v0  ;;  %v3130_v35 = vsel %vm744_vm8, %v3129_v2, %v4368_v11 }
 0x240   : > { %v3926_v6 = vpack.c.bf16 %v2734_v3, %v2344_v52  ;;  %v4362_v53 = vpop.permute.xlu0 %4361 }
 0x241   : > { %v4364_v55 = vunpack.i.h.bf16 %v4362_v53  ;;  %v4363_v59 = vunpack.i.l.bf16 %v4362_v53  ;;  %v3520_v31 = vsel %vm744_vm8, %v3519_v60, %v4369_v47 }
 0x242   : > { %3948 = vmatpush1.bf16.msra.mxu0 %v3926_v6 }
 0x243   : > { %v3527_v50 = vsel %vm744_vm8, %v3526_v36, %v4364_v55  ;;  %v3137_v38 = vsel %vm744_vm8, %v3136_v4, %v4363_v59 }
 0x244   : > { %v4372_v33 = vpop.permute.xlu0 %4371 }
 0x245   : > { %v4374_v63 = vunpack.i.h.bf16 %v4372_v33  ;;  %v4373_v61 = vunpack.i.l.bf16 %v4372_v33 }
 0x247   : > { %v3138_v46 = vsel %vm746_vm9, %v3137_v38, %v4373_v61  ;;  %v3528_v10 = vsel %vm746_vm9, %v3527_v50, %v4374_v63  ;;  %v3921_v38 = vld [vmem:[%s7080_s1] sm:$0xf] }
 0x248   : > { %v4382_v21 = vpop.permute.xlu0 %4381 }
 0x249   : > { %v4384_v57 = vunpack.i.h.bf16 %v4382_v21  ;;  %v4383_v13 = vunpack.i.l.bf16 %v4382_v21 }
 0x24b   : > { %v3131_v8 = vsel %vm746_vm9, %v3130_v35, %v4383_v13  ;;  %v3521_v27 = vsel %vm746_vm9, %v3520_v31, %v4384_v57 }
 0x250   : > { %v7008_v16 = vpop.permute.xlu0 %4391 }
 0x251   : > { %v4394_v17 = vunpack.i.h.bf16 %v7008_v16  ;;  %v4393_v28 = vunpack.i.l.bf16 %v7008_v16 }
 0x252   : > { %v4377_v45 = vpop.permute.xlu1 %4376 }
 0x253   : > { %v4379_v0 = vunpack.i.h.bf16 %v4377_v45  ;;  %v4378_v22 = vunpack.i.l.bf16 %v4377_v45 }
 0x254   : > { %v4402_v58 = vpop.permute.xlu0 %4401 }
 0x255   : > { %v4404_v39 = vunpack.i.h.bf16 %v4402_v58  ;;  %v4403_v41 = vunpack.i.l.bf16 %v4402_v58  ;;  %v3907_v1 = vsel %vm738_vm5, %v3707_v42, %v4378_v22  ;;  %v3914_v37 = vsel %vm738_vm5, %v3843_v23, %v4379_v0 }
 0x256   : > { %v4387_v26 = vpop.permute.xlu1 %4386  ;;  %v3915_v40 = vsel %vm740_vm6, %v3914_v37, %v4394_v17  ;;  %v3908_v16 = vsel %vm740_vm6, %v3907_v1, %v4393_v28 }
 0x257   : > { %v4389_v20 = vunpack.i.h.bf16 %v4387_v26  ;;  %v4388_v49 = vunpack.i.l.bf16 %v4387_v26 }
 0x258   : > { %v4412_v6 = vpop.permute.xlu0 %4411 }
 0x259   : > { %v3139_v52 = vsel %vm748_vm10, %v3138_v46, %v4388_v49  ;;  %v3529_v3 = vsel %vm748_vm10, %v3528_v10, %v4389_v20  ;;  %v4414_v5 = vunpack.i.h.bf16 %v4412_v6  ;;  %v4413_v33 = vunpack.i.l.bf16 %v4412_v6 }
 0x25a   : > { %v4397_v53 = vpop.permute.xlu1 %4396  ;;  %v3140_v14 = vsel %vm750_vm11, %v3139_v52, %v4403_v41  ;;  %v3530_v48 = vsel %vm750_vm11, %v3529_v3, %v4404_v39 }
 0x25b   : > { %v4399_v18 = vunpack.i.h.bf16 %v4397_v53  ;;  %v4398_v7 = vunpack.i.l.bf16 %v4397_v53  ;;  %v3929_v21 = vpack.c.bf16 %v3530_v48, %v3140_v14 }
 0x25c   : > { %v4422_v30 = vpop.permute.xlu0 %4421 }
 0x25d   : > { %v3132_v54 = vsel %vm748_vm10, %v3131_v8, %v4398_v7  ;;  %v3522_v9 = vsel %vm748_vm10, %v3521_v27, %v4399_v18  ;;  %3949 = vmatprep.subr.bf16.mxu0 %v3929_v21  ;;  %v4424_v51 = vunpack.i.h.bf16 %v4422_v30  ;;  %v4423_v23 = vunpack.i.l.bf16 %v4422_v30 }
 0x25e   : > { %v4407_v24 = vpop.permute.xlu1 %4406  ;;  %v3133_v62 = vsel %vm750_vm11, %v3132_v54, %v4413_v33  ;;  %v3523_v44 = vsel %vm750_vm11, %v3522_v9, %v4414_v5 }
 0x25f   : > { %v3928_v56 = vpack.c.bf16 %v3523_v44, %v3133_v62  ;;  %v4409_v32 = vunpack.i.h.bf16 %v4407_v24  ;;  %v4408_v15 = vunpack.i.l.bf16 %v4407_v24 }
 0x260   : > { %v4432_v42 = vpop.permute.xlu0 %4431 }
 0x261   : > { %3950 = vmatpush1.bf16.msra.mxu0 %v3928_v56  ;;  %v3909_v59 = vsel %vm742_vm7, %v3908_v16, %v4408_v15  ;;  %v3916_v25 = vsel %vm742_vm7, %v3915_v40, %v4409_v32  ;;  %v4434_v61 = vunpack.i.h.bf16 %v4432_v42  ;;  %v4433_v4 = vunpack.i.l.bf16 %v4432_v42 }
 0x262   : > { %v4417_v45 = vpop.permute.xlu1 %4416 }
 0x263   : > { %v4419_v34 = vunpack.i.h.bf16 %v4417_v45  ;;  %v4418_v55 = vunpack.i.l.bf16 %v4417_v45 }
 0x265   : > { %v3910_v19 = vsel %vm744_vm8, %v3909_v59, %v4418_v55  ;;  %v3917_v43 = vsel %vm744_vm8, %v3916_v25, %v4419_v34 }
 0x266   : > { %v4427_v29 = vpop.permute.xlu1 %4426  ;;  %v3918_v36 = vsel %vm746_vm9, %v3917_v43, %v4424_v51  ;;  %v3911_v11 = vsel %vm746_vm9, %v3910_v19, %v4423_v23 }
 0x267   : > { %v4429_v12 = vunpack.i.h.bf16 %v4427_v29  ;;  %v4428_v63 = vunpack.i.l.bf16 %v4427_v29 }
 0x269   : > { %v3919_v58 = vsel %vm748_vm10, %v3918_v36, %v4429_v12  ;;  %v3912_v2 = vsel %vm748_vm10, %v3911_v11, %v4428_v63 }
 0x26a   : > { %v3920_v60 = vsel %vm750_vm11, %v3919_v58, %v4434_v61  ;;  %v3913_v26 = vsel %vm750_vm11, %v3912_v2, %v4433_v4 }
 0x26b   : > { %v3931_v39 = vpack.c.bf16 %v3920_v60, %v3920_v60  ;;  %v3930_v41 = vpack.c.bf16 %v3913_v26, %v3913_v26 }
 0x26d   : > { %4093 = vmatprep.subr.msk.bf16.mxu0 %vm3936_vm12, %v3931_v39  ;;  %v3938_v50 = vsel %vm3936_vm12, %v3930_v41, 0 }
 0x26e   : > { %3952 = vmatpush1.bf16.msra.mxu0 %v3938_v50 }
 0x271   : > { %4094 = vmatmul.mubr.msk.bf16.vlgmr.msra.gmra.mrb[0].mxu0 %vm3932_vm13, %v3921_v38 }
 0x344   : > { %v3977_v20 = vpop.f32.mrb[0].mxu0 }
 0x345   : > { %3984 = vst [vmem:[%s177_s6] sm:$0xff] %v3977_v20  ;;  %v3989_v49 = vmul.f32 %v3977_v20, %v3977_v20  ;;  %v3979_v46 = vpop.f32.mrb[1].mxu0 }
 0x346   : > { %3985 = vst [vmem:[%s177_s6 + $0x8] sm:$0xff] %v3979_v46  ;;  %v3986_v10 = vadd.f32 %v3979_v46, %v3977_v20  ;;  %v3990_v57 = vmul.f32 %v3979_v46, %v3979_v46  ;;  %v3981_v13 = vpop.f32.mrb[2].mxu0 }
 0x347   : > { %v3982_v47 = vpop.f32.mrb[3].mxu0 }
 0x348   : > { %3987 = vadd.xlane.f32.xlu1 %v3986_v10  ;;  %v3991_v35 = vadd.f32 %v3990_v57, %v3989_v49 }
 0x34a   : > { %3992 = vadd.xlane.f32.xlu0 %v3991_v35 }
 0x3d5   : > { %v3988_v52 = vpop.xlane.xlu1 %3987 }
 0x3d7   : > { %v3993_v3 = vpop.xlane.xlu0 %3992 }
 0x3d8   : > { %v3994_v6 = vsel %vm360_vm1, %v3988_v52, %v3993_v3 }
 0x3d9   : > { %3996 = vst.msk [vmem:[%s181_s10] sm:$0xff] %vm3995_vm14, %v3994_v6 }
 0x3da PF: > { %s14_s12 = sadd.s32 1, %s4441_s12  }
 0x3db   : > { %p11_p4 = scmp.ge.s32.totalorder %s14_s12, 4  }
 0x3dd   :  { %13 = sbr.rel (!%p11_p4) target bundleno = 1 (0x1), region = 70 }

</bundles_post_ra>
